<compile_context>
chip_gen: v7x
topology: tpu7x:2x2x1
jax: 0.10.0
libtpu: 0.0.40
codegen_flags: <defaults>
</compile_context>

<pallas_src>
import functools
import math

import jax
import jax.numpy as jnp
from jax import lax
from jax.experimental import pallas as pl
from jax.experimental.pallas import tpu as pltpu

VMEM = pltpu.MemorySpace.VMEM
MXU_DTYPE = jnp.bfloat16  # MXU operand dtype for conv matmuls (accumulation stays f32)


def _vspec():
    # whole-array block resident in VMEM (used for the tiny tail kernel)
    return pl.BlockSpec(memory_space=VMEM)


# ----------------------------- in-kernel math helpers -----------------------------

def _erf(x):
    # Abramowitz & Stegun 7.1.26 polynomial erf (float32-accurate to ~1.5e-7).
    a1, a2, a3, a4, a5 = 0.254829592, -0.284496736, 1.421413741, -1.453152027, 1.061405429
    p = 0.3275911
    s = jnp.where(x >= 0.0, 1.0, -1.0)
    ax = jnp.abs(x)
    t = 1.0 / (1.0 + p * ax)
    poly = ((((a5 * t + a4) * t + a3) * t + a2) * t + a1) * t
    return s * (1.0 - poly * jnp.exp(-ax * ax))


def _gelu(x):
    # exact GELU: x * 0.5 * (1 + erf(x / sqrt(2)))  (PyTorch F.gelu default)
    # TODO(synk): on v5e a tanh-form GELU (EUP tanh) would shorten the VALU-bound epilogue
    # at ~1e-3 deviation from exact GELU; kept erf-exact here for fidelity.
    return 0.5 * x * (1.0 + _erf(x * 0.7071067811865476))


def _apply_act(y, act):
    if act == "relu":
        return jnp.maximum(y, 0.0)
    if act == "gelu":
        return _gelu(y)
    return y


# ----------------------------- fused conv + GroupNorm + (res) + act kernel -----------------------------

def _conv_gn_kernel(p_ref, w_ref, g_ref, b_ref, *rest, act, eps, has_res):
    # One grid step == one sample: p_ref block (1, HW, K), output block (1, HW, Cout).
    o_ref = rest[-1]
    y = jnp.dot(p_ref[0], w_ref[...], preferred_element_type=jnp.float32)  # (HW, Cout) f32
    hw, c = y.shape
    inv_n = 1.0 / float(hw * c)
    # GroupNorm(num_groups=1): stats over the whole (HW, Cout) tile of this sample.
    # One-pass mean / E[y^2]; gamma folded into the rsqrt scale (2 full-tile passes total).
    s1 = jnp.sum(jnp.sum(y, axis=1, keepdims=True), axis=0, keepdims=True)        # (1,1)
    s2 = jnp.sum(jnp.sum(y * y, axis=1, keepdims=True), axis=0, keepdims=True)    # (1,1)
    mean = s1 * inv_n
    var = jnp.maximum(s2 * inv_n - mean * mean, 0.0)
    scale = g_ref[...] * lax.rsqrt(var + eps)          # (1, Cout)
    shift = b_ref[...] - mean * scale                  # (1, Cout)
    yn = y * scale + shift                             # normalized + per-channel affine
    if has_res:
        yn = yn + rest[0][0]                           # residual added after GN (matches BasicBlock)
    o_ref[0] = _apply_act(yn, act)


def conv_gn_act(x, w_hwio, gamma, beta, stride, pad, act, residual=None):
    """Conv2d(bias=False) -> GroupNorm(1, C) -> (+residual) -> activation, one pallas_call."""
    kh, kw, cin, cout = w_hwio.shape
    patches, (b, ho, wo) = im2col(x, kh, kw, stride, pad)   # (B, Ho*Wo, kh*kw*Cin)
    hw, k = ho * wo, kh * kw * cin

    p_bf = patches.astype(MXU_DTYPE)
    w_bf = w_hwio.reshape(k, cout).astype(MXU_DTYPE)
    g = gamma.reshape(1, cout)
    bt = beta.reshape(1, cout)

    in_specs = [
        pl.BlockSpec((1, hw, k), lambda i: (i, 0, 0)),
        pl.BlockSpec((k, cout), lambda i: (0, 0)),
        pl.BlockSpec((1, cout), lambda i: (0, 0)),
        pl.BlockSpec((1, cout), lambda i: (0, 0)),
    ]
    args = [p_bf, w_bf, g, bt]
    if residual is not None:
        args.append(residual.reshape(b, hw, cout))
        in_specs.append(pl.BlockSpec((1, hw, cout), lambda i: (i, 0, 0)))

    kern = functools.partial(_conv_gn_kernel, act=act, eps=1e-5, has_res=residual is not None)
    out = pl.pallas_call(
        kern,
        out_shape=jax.ShapeDtypeStruct((b, hw, cout), jnp.float32),
        grid=(b,),
        in_specs=in_specs,
        out_specs=pl.BlockSpec((1, hw, cout), lambda i: (i, 0, 0)),
        compiler_params=pltpu.CompilerParams(dimension_semantics=("parallel",)),
    )(*args)
    return out.reshape(b, ho, wo, cout)


# ----------------------------- fused tail: avgpool + trunk MLP + merge -----------------------------

def _tail_kernel(*refs, n_layers):
    # refs = (x, freqs, w0, b0, ..., w_{n-1}, b_{n-1}, bias, out)
    x_ref, f_ref = refs[0], refs[1]
    bias_ref, o_ref = refs[-2], refs[-1]
    branch = jnp.mean(x_ref[...], axis=1)                   # AdaptiveAvgPool2d((1,1)) + flatten
    t = f_ref[...]                                          # (n_freq, 1)
    for i in range(n_layers):                               # trunk FNN + activation_trunk => relu everywhere
        w = refs[2 + 2 * i][...]
        bb = refs[3 + 2 * i][...]
        t = jnp.maximum(jnp.dot(t, w, preferred_element_type=jnp.float32) + bb, 0.0)
    # einsum("bi,ni->bn") + bias, contracting on last dims (no explicit transpose)
    o_ref[...] = lax.dot_general(branch, t, (((1,), (1,)), ((), ())),
                                 preferred_element_type=jnp.float32) + bias_ref[...]


def pallas_tail(x_bhwc, freqs, trunk, b0):
    b, h, w, c = x_bhwc.shape
    x = x_bhwc.reshape(b, h * w, c)
    args = [x, freqs]
    for (wt, bt) in trunk:
        args += [wt, bt.reshape(1, -1)]
    args.append(b0)
    n_freq = freqs.shape[0]
    kern = functools.partial(_tail_kernel, n_layers=len(trunk))
    return pl.pallas_call(
        kern,
        out_shape=jax.ShapeDtypeStruct((b, n_freq), jnp.float32),
        in_specs=[_vspec()] * len(args),
        out_specs=_vspec(),
    )(*args)


# ----------------------------- plain-JAX glue -----------------------------

def im2col(x, kh, kw, stride, pad):
    """x: (B, H, W, C) NHWC -> patches (B, Ho*Wo, kh*kw*C), K ordered [ki, kj, C]."""
    # TODO(synk): im2col/padding still runs as plain-JAX glue between kernels; in-kernel
    # im2col (shifted strided slices feeding per-tap MXU accumulation) would remove the
    # kh*kw-blown-up patches HBM traffic once the model is scaled beyond this toy config.
    b, h, w, c = x.shape
    xp = jnp.pad(x, ((0, 0), (pad, pad), (pad, pad), (0, 0)))
    ho = (h + 2 * pad - kh) // stride + 1
    wo = (w + 2 * pad - kw) // stride + 1
    cols = []
    for i in range(kh):
        for j in range(kw):
            cols.append(
                xp[:, i: i + stride * (ho - 1) + 1: stride,
                      j: j + stride * (wo - 1) + 1: stride, :]
            )
    patches = jnp.concatenate(cols, axis=-1)                # (B, Ho, Wo, kh*kw*C)
    return patches.reshape(b, ho * wo, kh * kw * c), (b, ho, wo)


def basic_block(x, p, stride):
    out = conv_gn_act(x, p["conv1_w"], p["gn1_g"], p["gn1_b"], stride, 1, "relu")
    if "sc_w" in p:
        sc = conv_gn_act(x, p["sc_w"], p["sc_gn_g"], p["sc_gn_b"], stride, 0, "none")
    else:
        sc = x
    out = conv_gn_act(out, p["conv2_w"], p["gn2_g"], p["gn2_b"], 1, 1, "gelu", residual=sc)
    return out


def deeponet_forward(params, x_nchw):
    # PyTorch NCHW input -> internal NHWC
    x = jnp.transpose(x_nchw, (0, 2, 3, 1)).astype(jnp.float32)

    # ResNet backbone branch: stem conv7x7/s2 + GN + GELU, 4 stages of BasicBlocks
    out = conv_gn_act(x, params["stem_w"], params["stem_g"], params["stem_b"], 2, 3, "gelu")
    for blk in params["blocks"]:
        out = basic_block(out, blk["p"], blk["stride"])

    # Fused tail: avgpool + trunk MLP (relu) + DeepONetCartesianProd merge + bias
    return pallas_tail(out, params["freqs"], params["trunk"], params["b0"])


# ----------------------------- deterministic parameter init -----------------------------

def init_params(key, hidden_channels, decoder, n_freq):
    keys = iter(jax.random.split(key, 256))

    def nk():
        return next(keys)

    def conv_w(kh, kw, cin, cout):
        return jax.random.normal(nk(), (kh, kw, cin, cout), jnp.float32) / math.sqrt(kh * kw * cin)

    def gn(c):
        g = 1.0 + 0.1 * jax.random.normal(nk(), (c,), jnp.float32)
        bb = 0.1 * jax.random.normal(nk(), (c,), jnp.float32)
        return g, bb

    params = {}
    c0 = hidden_channels[0]
    params["stem_w"] = conv_w(7, 7, 1, c0)
    params["stem_g"], params["stem_b"] = gn(c0)

    blocks = []
    in_c = c0
    num_blocks = [2, 2, 2, 2]
    layer_strides = [1, 2, 2, 2]
    for li, planes in enumerate(hidden_channels):
        strides = [layer_strides[li]] + [1] * (num_blocks[li] - 1)
        for s in strides:
            p = {}
            p["conv1_w"] = conv_w(3, 3, in_c, planes)
            p["gn1_g"], p["gn1_b"] = gn(planes)
            p["conv2_w"] = conv_w(3, 3, planes, planes)
            p["gn2_g"], p["gn2_b"] = gn(planes)
            if s != 1 or in_c != planes:
                p["sc_w"] = conv_w(1, 1, in_c, planes)
                p["sc_gn_g"], p["sc_gn_b"] = gn(planes)
            blocks.append({"p": p, "stride": s})
            in_c = planes
    params["blocks"] = blocks

    # trunk FNN: layer_sizes_trunk = [1] + decoder, Glorot-normal weights, zero bias
    sizes = [1] + list(decoder)
    trunk = []
    for fi, fo in zip(sizes[:-1], sizes[1:]):
        std = math.sqrt(2.0 / (fi + fo))
        trunk.append((std * jax.random.normal(nk(), (fi, fo), jnp.float32),
                      jnp.zeros((fo,), jnp.float32)))
    params["trunk"] = trunk

    params["freqs"] = jnp.linspace(-1.0, 1.0, n_freq, dtype=jnp.float32).reshape(-1, 1)
    params["b0"] = jnp.zeros((1, 1), jnp.float32)  # DeepONetCartesianProd bias (zero-init)
    return params


# ----------------------------- main -----------------------------

if __name__ == "__main__":
    key = jax.random.PRNGKey(0)
    k_param, k_x = jax.random.split(key)

    # small synthetic config (module contract: hidden_channels[-1] == decoder[-1])
    hidden_channels = [8, 16, 16, 32]   # encoder.hidden_channels
    decoder = [16, 16, 16, 32]          # trunk widths; last must match branch output dim
    n_frequencies = 8
    batch = 2

    params = init_params(k_param, hidden_channels, decoder, n_frequencies)
    x = jax.random.normal(k_x, (batch, 1, 16, 16), jnp.float32)  # NCHW, 1 input channel

    fwd = jax.jit(lambda inp: deeponet_forward(params, inp))
    out = jax.block_until_ready(fwd(x))
    assert out.shape == (batch, n_frequencies), out.shape
    assert out.dtype == jnp.float32
    # TODO(synk): conditional=True path (Film modulation) is not exercised (module default is False).
    print("KERNEL_OK")
</pallas_src>

<mosaic_0001>
module attributes {stable_mosaic.version = 11 : i64} {
  func.func @_conv_gn_kernel(%arg0: i32, %arg1: memref<1x64x49xbf16, #tpu.memory_space<vmem>>, %arg2: memref<49x8xbf16, #tpu.memory_space<vmem>>, %arg3: memref<1x8xf32, #tpu.memory_space<vmem>>, %arg4: memref<1x8xf32, #tpu.memory_space<vmem>>, %arg5: memref<1x64x8xf32, #tpu.memory_space<vmem>>) attributes {dimension_semantics = [#tpu.dimension_semantics<parallel>], iteration_bounds = array<i64: 2>, scalar_prefetch = 0 : i64, scratch_operands = 0 : i64, tpu.core_type = #tpu.core_type<tc>, window_params = [{transform_indices = @transform_0, window_bounds = array<i64: 1, 64, 49>}, {pipeline_mode = #tpu.pipeline_mode<synchronous>, transform_indices = @transform_1, window_bounds = array<i64: 49, 8>}, {pipeline_mode = #tpu.pipeline_mode<synchronous>, transform_indices = @transform_2, window_bounds = array<i64: 1, 8>}, {pipeline_mode = #tpu.pipeline_mode<synchronous>, transform_indices = @transform_3, window_bounds = array<i64: 1, 8>}, {transform_indices = @transform_4, window_bounds = array<i64: 1, 64, 8>}]} {
    %c0 = arith.constant 0 : index
    %c0_0 = arith.constant 0 : index
    %c0_1 = arith.constant 0 : index
    %0 = vector.load %arg1[%c0, %c0_0, %c0_1] : memref<1x64x49xbf16, #tpu.memory_space<vmem>>, vector<1x64x49xbf16>
    %1 = vector.shape_cast %0 : vector<1x64x49xbf16> to vector<64x49xbf16>
    %c0_2 = arith.constant 0 : index
    %c0_3 = arith.constant 0 : index
    %2 = vector.load %arg2[%c0_2, %c0_3] : memref<49x8xbf16, #tpu.memory_space<vmem>>, vector<49x8xbf16>
    %cst = arith.constant dense<0.000000e+00> : vector<64x8xf32>
    %3 = tpu.matmul %1, %2, %cst {dimension_numbers = #tpu.dot_dimension_numbers<[1], [0], [0], [1], [0, 0, 1, 1], [], []>} : vector<64x49xbf16>, vector<49x8xbf16>, vector<64x8xf32> -> vector<64x8xf32>
    %cst_4 = arith.constant dense<0.000000e+00> : vector<64xf32>
    %4 = vector.multi_reduction <add>, %3, %cst_4 [1] : vector<64x8xf32> to vector<64xf32>
    %5 = vector.shape_cast %4 : vector<64xf32> to vector<64x1xf32>
    %cst_5 = arith.constant dense<0.000000e+00> : vector<1xf32>
    %6 = vector.multi_reduction <add>, %5, %cst_5 [0] : vector<64x1xf32> to vector<1xf32>
    %7 = vector.shape_cast %6 : vector<1xf32> to vector<1x1xf32>
    %8 = arith.mulf %3, %3 : vector<64x8xf32>
    %cst_6 = arith.constant dense<0.000000e+00> : vector<64xf32>
    %9 = vector.multi_reduction <add>, %8, %cst_6 [1] : vector<64x8xf32> to vector<64xf32>
    %10 = vector.shape_cast %9 : vector<64xf32> to vector<64x1xf32>
    %cst_7 = arith.constant dense<0.000000e+00> : vector<1xf32>
    %11 = vector.multi_reduction <add>, %10, %cst_7 [0] : vector<64x1xf32> to vector<1xf32>
    %12 = vector.shape_cast %11 : vector<1xf32> to vector<1x1xf32>
    %cst_8 = arith.constant 0.001953125 : f32
    %13 = vector.broadcast %cst_8 : f32 to vector<1x1xf32>
    %14 = arith.mulf %7, %13 : vector<1x1xf32>
    %cst_9 = arith.constant 0.001953125 : f32
    %15 = vector.broadcast %cst_9 : f32 to vector<1x1xf32>
    %16 = arith.mulf %12, %15 : vector<1x1xf32>
    %17 = arith.mulf %14, %14 : vector<1x1xf32>
    %18 = arith.subf %16, %17 : vector<1x1xf32>
    %cst_10 = arith.constant 0.000000e+00 : f32
    %19 = vector.broadcast %cst_10 : f32 to vector<1x1xf32>
    %20 = arith.maximumf %18, %19 : vector<1x1xf32>
    %c0_11 = arith.constant 0 : index
    %c0_12 = arith.constant 0 : index
    %21 = vector.load %arg3[%c0_11, %c0_12] : memref<1x8xf32, #tpu.memory_space<vmem>>, vector<1x8xf32>
    %cst_13 = arith.constant 9.99999974E-6 : f32
    %22 = vector.broadcast %cst_13 : f32 to vector<1x1xf32>
    %23 = arith.addf %20, %22 : vector<1x1xf32>
    %24 = math.rsqrt %23 : vector<1x1xf32>
    %25 = vector.broadcast %24 : vector<1x1xf32> to vector<1x8xf32>
    %26 = arith.mulf %21, %25 : vector<1x8xf32>
    %c0_14 = arith.constant 0 : index
    %c0_15 = arith.constant 0 : index
    %27 = vector.load %arg4[%c0_14, %c0_15] : memref<1x8xf32, #tpu.memory_space<vmem>>, vector<1x8xf32>
    %28 = vector.broadcast %14 : vector<1x1xf32> to vector<1x8xf32>
    %29 = arith.mulf %28, %26 : vector<1x8xf32>
    %30 = arith.subf %27, %29 : vector<1x8xf32>
    %31 = vector.broadcast %26 : vector<1x8xf32> to vector<64x8xf32>
    %32 = arith.mulf %3, %31 : vector<64x8xf32>
    %33 = vector.broadcast %30 : vector<1x8xf32> to vector<64x8xf32>
    %34 = arith.addf %32, %33 : vector<64x8xf32>
    %cst_16 = arith.constant 5.000000e-01 : f32
    %35 = vector.broadcast %cst_16 : f32 to vector<64x8xf32>
    %36 = arith.mulf %35, %34 : vector<64x8xf32>
    %cst_17 = arith.constant 0.707106769 : f32
    %37 = vector.broadcast %cst_17 : f32 to vector<64x8xf32>
    %38 = arith.mulf %34, %37 : vector<64x8xf32>
    %cst_18 = arith.constant 0.000000e+00 : f32
    %39 = vector.broadcast %cst_18 : f32 to vector<64x8xf32>
    %40 = arith.cmpf oge, %38, %39 : vector<64x8xf32>
    %cst_19 = arith.constant 1.000000e+00 : f32
    %cst_20 = arith.constant -1.000000e+00 : f32
    %41 = vector.broadcast %cst_19 : f32 to vector<64x8xf32>
    %42 = vector.broadcast %cst_20 : f32 to vector<64x8xf32>
    %43 = arith.select %40, %41, %42 : vector<64x8xi1>, vector<64x8xf32>
    %44 = math.absf %38 : vector<64x8xf32>
    %cst_21 = arith.constant 0.327591091 : f32
    %45 = vector.broadcast %cst_21 : f32 to vector<64x8xf32>
    %46 = arith.mulf %45, %44 : vector<64x8xf32>
    %cst_22 = arith.constant 1.000000e+00 : f32
    %47 = vector.broadcast %cst_22 : f32 to vector<64x8xf32>
    %48 = arith.addf %47, %46 : vector<64x8xf32>
    %cst_23 = arith.constant 1.000000e+00 : f32
    %49 = vector.broadcast %cst_23 : f32 to vector<64x8xf32>
    %50 = arith.divf %49, %48 : vector<64x8xf32>
    %cst_24 = arith.constant 1.06140542 : f32
    %51 = vector.broadcast %cst_24 : f32 to vector<64x8xf32>
    %52 = arith.mulf %51, %50 : vector<64x8xf32>
    %cst_25 = arith.constant -1.45315206 : f32
    %53 = vector.broadcast %cst_25 : f32 to vector<64x8xf32>
    %54 = arith.addf %52, %53 : vector<64x8xf32>
    %55 = arith.mulf %54, %50 : vector<64x8xf32>
    %cst_26 = arith.constant 1.42141378 : f32
    %56 = vector.broadcast %cst_26 : f32 to vector<64x8xf32>
    %57 = arith.addf %55, %56 : vector<64x8xf32>
    %58 = arith.mulf %57, %50 : vector<64x8xf32>
    %cst_27 = arith.constant -0.284496725 : f32
    %59 = vector.broadcast %cst_27 : f32 to vector<64x8xf32>
    %60 = arith.addf %58, %59 : vector<64x8xf32>
    %61 = arith.mulf %60, %50 : vector<64x8xf32>
    %cst_28 = arith.constant 0.254829586 : f32
    %62 = vector.broadcast %cst_28 : f32 to vector<64x8xf32>
    %63 = arith.addf %61, %62 : vector<64x8xf32>
    %64 = arith.mulf %63, %50 : vector<64x8xf32>
    %cst_29 = arith.constant 0.000000e+00 : f32
    %65 = vector.broadcast %cst_29 : f32 to vector<64x8xf32>
    %66 = arith.subf %65, %44 : vector<64x8xf32>
    %67 = arith.mulf %66, %44 : vector<64x8xf32>
    %68 = math.exp %67 : vector<64x8xf32>
    %69 = arith.mulf %64, %68 : vector<64x8xf32>
    %cst_30 = arith.constant 1.000000e+00 : f32
    %70 = vector.broadcast %cst_30 : f32 to vector<64x8xf32>
    %71 = arith.subf %70, %69 : vector<64x8xf32>
    %72 = arith.mulf %43, %71 : vector<64x8xf32>
    %cst_31 = arith.constant 1.000000e+00 : f32
    %73 = vector.broadcast %cst_31 : f32 to vector<64x8xf32>
    %74 = arith.addf %73, %72 : vector<64x8xf32>
    %75 = arith.mulf %36, %74 : vector<64x8xf32>
    %c0_32 = arith.constant 0 : index
    %c0_33 = arith.constant 0 : index
    %c0_34 = arith.constant 0 : index
    %76 = vector.load %arg5[%c0_32, %c0_33, %c0_34] : memref<1x64x8xf32, #tpu.memory_space<vmem>>, vector<1x64x8xf32>
    %77 = vector.shape_cast %76 : vector<1x64x8xf32> to vector<64x8xf32>
    %78 = vector.shape_cast %75 : vector<64x8xf32> to vector<1x64x8xf32>
    tpu.vector_store %arg5[%c0_32, %c0_33, %c0_34], %78 {strides = array<i32>} : memref<1x64x8xf32, #tpu.memory_space<vmem>>, vector<1x64x8xf32>,
    return
  }
  func.func @transform_0(%arg0: i32) -> (i32, i32, i32) {
    %c0_i32 = arith.constant 0 : i32
    %c0_i32_0 = arith.constant 0 : i32
    %c0_i32_1 = arith.constant 0 : i32
    return %arg0, %c0_i32, %c0_i32_0 : i32, i32, i32
  }
  func.func @transform_1(%arg0: i32) -> (i32, i32) {
    %c0_i32 = arith.constant 0 : i32
    %c0_i32_0 = arith.constant 0 : i32
    %c0_i32_1 = arith.constant 0 : i32
    return %c0_i32, %c0_i32_0 : i32, i32
  }
  func.func @transform_2(%arg0: i32) -> (i32, i32) {
    %c0_i32 = arith.constant 0 : i32
    %c0_i32_0 = arith.constant 0 : i32
    %c0_i32_1 = arith.constant 0 : i32
    return %c0_i32, %c0_i32_0 : i32, i32
  }
  func.func @transform_3(%arg0: i32) -> (i32, i32) {
    %c0_i32 = arith.constant 0 : i32
    %c0_i32_0 = arith.constant 0 : i32
    %c0_i32_1 = arith.constant 0 : i32
    return %c0_i32, %c0_i32_0 : i32, i32
  }
  func.func @transform_4(%arg0: i32) -> (i32, i32, i32) {
    %c0_i32 = arith.constant 0 : i32
    %c0_i32_0 = arith.constant 0 : i32
    %c0_i32_1 = arith.constant 0 : i32
    return %arg0, %c0_i32, %c0_i32_0 : i32, i32, i32
  }
}

module attributes {stable_mosaic.version = 11 : i64} {
  func.func @_conv_gn_kernel(%arg0: i32, %arg1: memref<1x64x72xbf16, #tpu.memory_space<vmem>>, %arg2: memref<72x8xbf16, #tpu.memory_space<vmem>>, %arg3: memref<1x8xf32, #tpu.memory_space<vmem>>, %arg4: memref<1x8xf32, #tpu.memory_space<vmem>>, %arg5: memref<1x64x8xf32, #tpu.memory_space<vmem>>) attributes {dimension_semantics = [#tpu.dimension_semantics<parallel>], iteration_bounds = array<i64: 2>, scalar_prefetch = 0 : i64, scratch_operands = 0 : i64, tpu.core_type = #tpu.core_type<tc>, window_params = [{transform_indices = @transform_0, window_bounds = array<i64: 1, 64, 72>}, {pipeline_mode = #tpu.pipeline_mode<synchronous>, transform_indices = @transform_1, window_bounds = array<i64: 72, 8>}, {pipeline_mode = #tpu.pipeline_mode<synchronous>, transform_indices = @transform_2, window_bounds = array<i64: 1, 8>}, {pipeline_mode = #tpu.pipeline_mode<synchronous>, transform_indices = @transform_3, window_bounds = array<i64: 1, 8>}, {transform_indices = @transform_4, window_bounds = array<i64: 1, 64, 8>}]} {
    %c0 = arith.constant 0 : index
    %c0_0 = arith.constant 0 : index
    %c0_1 = arith.constant 0 : index
    %0 = vector.load %arg1[%c0, %c0_0, %c0_1] : memref<1x64x72xbf16, #tpu.memory_space<vmem>>, vector<1x64x72xbf16>
    %1 = vector.shape_cast %0 : vector<1x64x72xbf16> to vector<64x72xbf16>
    %c0_2 = arith.constant 0 : index
    %c0_3 = arith.constant 0 : index
    %2 = vector.load %arg2[%c0_2, %c0_3] : memref<72x8xbf16, #tpu.memory_space<vmem>>, vector<72x8xbf16>
    %cst = arith.constant dense<0.000000e+00> : vector<64x8xf32>
    %3 = tpu.matmul %1, %2, %cst {dimension_numbers = #tpu.dot_dimension_numbers<[1], [0], [0], [1], [0, 0, 1, 1], [], []>} : vector<64x72xbf16>, vector<72x8xbf16>, vector<64x8xf32> -> vector<64x8xf32>
    %cst_4 = arith.constant dense<0.000000e+00> : vector<64xf32>
    %4 = vector.multi_reduction <add>, %3, %cst_4 [1] : vector<64x8xf32> to vector<64xf32>
    %5 = vector.shape_cast %4 : vector<64xf32> to vector<64x1xf32>
    %cst_5 = arith.constant dense<0.000000e+00> : vector<1xf32>
    %6 = vector.multi_reduction <add>, %5, %cst_5 [0] : vector<64x1xf32> to vector<1xf32>
    %7 = vector.shape_cast %6 : vector<1xf32> to vector<1x1xf32>
    %8 = arith.mulf %3, %3 : vector<64x8xf32>
    %cst_6 = arith.constant dense<0.000000e+00> : vector<64xf32>
    %9 = vector.multi_reduction <add>, %8, %cst_6 [1] : vector<64x8xf32> to vector<64xf32>
    %10 = vector.shape_cast %9 : vector<64xf32> to vector<64x1xf32>
    %cst_7 = arith.constant dense<0.000000e+00> : vector<1xf32>
    %11 = vector.multi_reduction <add>, %10, %cst_7 [0] : vector<64x1xf32> to vector<1xf32>
    %12 = vector.shape_cast %11 : vector<1xf32> to vector<1x1xf32>
    %cst_8 = arith.constant 0.001953125 : f32
    %13 = vector.broadcast %cst_8 : f32 to vector<1x1xf32>
    %14 = arith.mulf %7, %13 : vector<1x1xf32>
    %cst_9 = arith.constant 0.001953125 : f32
    %15 = vector.broadcast %cst_9 : f32 to vector<1x1xf32>
    %16 = arith.mulf %12, %15 : vector<1x1xf32>
    %17 = arith.mulf %14, %14 : vector<1x1xf32>
    %18 = arith.subf %16, %17 : vector<1x1xf32>
    %cst_10 = arith.constant 0.000000e+00 : f32
    %19 = vector.broadcast %cst_10 : f32 to vector<1x1xf32>
    %20 = arith.maximumf %18, %19 : vector<1x1xf32>
    %c0_11 = arith.constant 0 : index
    %c0_12 = arith.constant 0 : index
    %21 = vector.load %arg3[%c0_11, %c0_12] : memref<1x8xf32, #tpu.memory_space<vmem>>, vector<1x8xf32>
    %cst_13 = arith.constant 9.99999974E-6 : f32
    %22 = vector.broadcast %cst_13 : f32 to vector<1x1xf32>
    %23 = arith.addf %20, %22 : vector<1x1xf32>
    %24 = math.rsqrt %23 : vector<1x1xf32>
    %25 = vector.broadcast %24 : vector<1x1xf32> to vector<1x8xf32>
    %26 = arith.mulf %21, %25 : vector<1x8xf32>
    %c0_14 = arith.constant 0 : index
    %c0_15 = arith.constant 0 : index
    %27 = vector.load %arg4[%c0_14, %c0_15] : memref<1x8xf32, #tpu.memory_space<vmem>>, vector<1x8xf32>
    %28 = vector.broadcast %14 : vector<1x1xf32> to vector<1x8xf32>
    %29 = arith.mulf %28, %26 : vector<1x8xf32>
    %30 = arith.subf %27, %29 : vector<1x8xf32>
    %31 = vector.broadcast %26 : vector<1x8xf32> to vector<64x8xf32>
    %32 = arith.mulf %3, %31 : vector<64x8xf32>
    %33 = vector.broadcast %30 : vector<1x8xf32> to vector<64x8xf32>
    %34 = arith.addf %32, %33 : vector<64x8xf32>
    %cst_16 = arith.constant 0.000000e+00 : f32
    %35 = vector.broadcast %cst_16 : f32 to vector<64x8xf32>
    %36 = arith.maximumf %34, %35 : vector<64x8xf32>
    %c0_17 = arith.constant 0 : index
    %c0_18 = arith.constant 0 : index
    %c0_19 = arith.constant 0 : index
    %37 = vector.load %arg5[%c0_17, %c0_18, %c0_19] : memref<1x64x8xf32, #tpu.memory_space<vmem>>, vector<1x64x8xf32>
    %38 = vector.shape_cast %37 : vector<1x64x8xf32> to vector<64x8xf32>
    %39 = vector.shape_cast %36 : vector<64x8xf32> to vector<1x64x8xf32>
    tpu.vector_store %arg5[%c0_17, %c0_18, %c0_19], %39 {strides = array<i32>} : memref<1x64x8xf32, #tpu.memory_space<vmem>>, vector<1x64x8xf32>,
    return
  }
  func.func @transform_0(%arg0: i32) -> (i32, i32, i32) {
    %c0_i32 = arith.constant 0 : i32
    %c0_i32_0 = arith.constant 0 : i32
    %c0_i32_1 = arith.constant 0 : i32
    return %arg0, %c0_i32, %c0_i32_0 : i32, i32, i32
  }
  func.func @transform_1(%arg0: i32) -> (i32, i32) {
    %c0_i32 = arith.constant 0 : i32
    %c0_i32_0 = arith.constant 0 : i32
    %c0_i32_1 = arith.constant 0 : i32
    return %c0_i32, %c0_i32_0 : i32, i32
  }
  func.func @transform_2(%arg0: i32) -> (i32, i32) {
    %c0_i32 = arith.constant 0 : i32
    %c0_i32_0 = arith.constant 0 : i32
    %c0_i32_1 = arith.constant 0 : i32
    return %c0_i32, %c0_i32_0 : i32, i32
  }
  func.func @transform_3(%arg0: i32) -> (i32, i32) {
    %c0_i32 = arith.constant 0 : i32
    %c0_i32_0 = arith.constant 0 : i32
    %c0_i32_1 = arith.constant 0 : i32
    return %c0_i32, %c0_i32_0 : i32, i32
  }
  func.func @transform_4(%arg0: i32) -> (i32, i32, i32) {
    %c0_i32 = arith.constant 0 : i32
    %c0_i32_0 = arith.constant 0 : i32
    %c0_i32_1 = arith.constant 0 : i32
    return %arg0, %c0_i32, %c0_i32_0 : i32, i32, i32
  }
}

module attributes {stable_mosaic.version = 11 : i64} {
  func.func @_conv_gn_kernel(%arg0: i32, %arg1: memref<1x64x72xbf16, #tpu.memory_space<vmem>>, %arg2: memref<72x8xbf16, #tpu.memory_space<vmem>>, %arg3: memref<1x8xf32, #tpu.memory_space<vmem>>, %arg4: memref<1x8xf32, #tpu.memory_space<vmem>>, %arg5: memref<1x64x8xf32, #tpu.memory_space<vmem>>, %arg6: memref<1x64x8xf32, #tpu.memory_space<vmem>>) attributes {dimension_semantics = [#tpu.dimension_semantics<parallel>], iteration_bounds = array<i64: 2>, scalar_prefetch = 0 : i64, scratch_operands = 0 : i64, tpu.core_type = #tpu.core_type<tc>, window_params = [{transform_indices = @transform_0, window_bounds = array<i64: 1, 64, 72>}, {pipeline_mode = #tpu.pipeline_mode<synchronous>, transform_indices = @transform_1, window_bounds = array<i64: 72, 8>}, {pipeline_mode = #tpu.pipeline_mode<synchronous>, transform_indices = @transform_2, window_bounds = array<i64: 1, 8>}, {pipeline_mode = #tpu.pipeline_mode<synchronous>, transform_indices = @transform_3, window_bounds = array<i64: 1, 8>}, {transform_indices = @transform_4, window_bounds = array<i64: 1, 64, 8>}, {transform_indices = @transform_5, window_bounds = array<i64: 1, 64, 8>}]} {
    %c0 = arith.constant 0 : index
    %c0_0 = arith.constant 0 : index
    %c0_1 = arith.constant 0 : index
    %0 = vector.load %arg1[%c0, %c0_0, %c0_1] : memref<1x64x72xbf16, #tpu.memory_space<vmem>>, vector<1x64x72xbf16>
    %1 = vector.shape_cast %0 : vector<1x64x72xbf16> to vector<64x72xbf16>
    %c0_2 = arith.constant 0 : index
    %c0_3 = arith.constant 0 : index
    %2 = vector.load %arg2[%c0_2, %c0_3] : memref<72x8xbf16, #tpu.memory_space<vmem>>, vector<72x8xbf16>
    %cst = arith.constant dense<0.000000e+00> : vector<64x8xf32>
    %3 = tpu.matmul %1, %2, %cst {dimension_numbers = #tpu.dot_dimension_numbers<[1], [0], [0], [1], [0, 0, 1, 1], [], []>} : vector<64x72xbf16>, vector<72x8xbf16>, vector<64x8xf32> -> vector<64x8xf32>
    %cst_4 = arith.constant dense<0.000000e+00> : vector<64xf32>
    %4 = vector.multi_reduction <add>, %3, %cst_4 [1] : vector<64x8xf32> to vector<64xf32>
    %5 = vector.shape_cast %4 : vector<64xf32> to vector<64x1xf32>
    %cst_5 = arith.constant dense<0.000000e+00> : vector<1xf32>
    %6 = vector.multi_reduction <add>, %5, %cst_5 [0] : vector<64x1xf32> to vector<1xf32>
    %7 = vector.shape_cast %6 : vector<1xf32> to vector<1x1xf32>
    %8 = arith.mulf %3, %3 : vector<64x8xf32>
    %cst_6 = arith.constant dense<0.000000e+00> : vector<64xf32>
    %9 = vector.multi_reduction <add>, %8, %cst_6 [1] : vector<64x8xf32> to vector<64xf32>
    %10 = vector.shape_cast %9 : vector<64xf32> to vector<64x1xf32>
    %cst_7 = arith.constant dense<0.000000e+00> : vector<1xf32>
    %11 = vector.multi_reduction <add>, %10, %cst_7 [0] : vector<64x1xf32> to vector<1xf32>
    %12 = vector.shape_cast %11 : vector<1xf32> to vector<1x1xf32>
    %cst_8 = arith.constant 0.001953125 : f32
    %13 = vector.broadcast %cst_8 : f32 to vector<1x1xf32>
    %14 = arith.mulf %7, %13 : vector<1x1xf32>
    %cst_9 = arith.constant 0.001953125 : f32
    %15 = vector.broadcast %cst_9 : f32 to vector<1x1xf32>
    %16 = arith.mulf %12, %15 : vector<1x1xf32>
    %17 = arith.mulf %14, %14 : vector<1x1xf32>
    %18 = arith.subf %16, %17 : vector<1x1xf32>
    %cst_10 = arith.constant 0.000000e+00 : f32
    %19 = vector.broadcast %cst_10 : f32 to vector<1x1xf32>
    %20 = arith.maximumf %18, %19 : vector<1x1xf32>
    %c0_11 = arith.constant 0 : index
    %c0_12 = arith.constant 0 : index
    %21 = vector.load %arg3[%c0_11, %c0_12] : memref<1x8xf32, #tpu.memory_space<vmem>>, vector<1x8xf32>
    %cst_13 = arith.constant 9.99999974E-6 : f32
    %22 = vector.broadcast %cst_13 : f32 to vector<1x1xf32>
    %23 = arith.addf %20, %22 : vector<1x1xf32>
    %24 = math.rsqrt %23 : vector<1x1xf32>
    %25 = vector.broadcast %24 : vector<1x1xf32> to vector<1x8xf32>
    %26 = arith.mulf %21, %25 : vector<1x8xf32>
    %c0_14 = arith.constant 0 : index
    %c0_15 = arith.constant 0 : index
    %27 = vector.load %arg4[%c0_14, %c0_15] : memref<1x8xf32, #tpu.memory_space<vmem>>, vector<1x8xf32>
    %28 = vector.broadcast %14 : vector<1x1xf32> to vector<1x8xf32>
    %29 = arith.mulf %28, %26 : vector<1x8xf32>
    %30 = arith.subf %27, %29 : vector<1x8xf32>
    %31 = vector.broadcast %26 : vector<1x8xf32> to vector<64x8xf32>
    %32 = arith.mulf %3, %31 : vector<64x8xf32>
    %33 = vector.broadcast %30 : vector<1x8xf32> to vector<64x8xf32>
    %34 = arith.addf %32, %33 : vector<64x8xf32>
    %c0_16 = arith.constant 0 : index
    %c0_17 = arith.constant 0 : index
    %c0_18 = arith.constant 0 : index
    %35 = vector.load %arg5[%c0_16, %c0_17, %c0_18] : memref<1x64x8xf32, #tpu.memory_space<vmem>>, vector<1x64x8xf32>
    %36 = vector.shape_cast %35 : vector<1x64x8xf32> to vector<64x8xf32>
    %37 = arith.addf %34, %36 : vector<64x8xf32>
    %cst_19 = arith.constant 5.000000e-01 : f32
    %38 = vector.broadcast %cst_19 : f32 to vector<64x8xf32>
    %39 = arith.mulf %38, %37 : vector<64x8xf32>
    %cst_20 = arith.constant 0.707106769 : f32
    %40 = vector.broadcast %cst_20 : f32 to vector<64x8xf32>
    %41 = arith.mulf %37, %40 : vector<64x8xf32>
    %cst_21 = arith.constant 0.000000e+00 : f32
    %42 = vector.broadcast %cst_21 : f32 to vector<64x8xf32>
    %43 = arith.cmpf oge, %41, %42 : vector<64x8xf32>
    %cst_22 = arith.constant 1.000000e+00 : f32
    %cst_23 = arith.constant -1.000000e+00 : f32
    %44 = vector.broadcast %cst_22 : f32 to vector<64x8xf32>
    %45 = vector.broadcast %cst_23 : f32 to vector<64x8xf32>
    %46 = arith.select %43, %44, %45 : vector<64x8xi1>, vector<64x8xf32>
    %47 = math.absf %41 : vector<64x8xf32>
    %cst_24 = arith.constant 0.327591091 : f32
    %48 = vector.broadcast %cst_24 : f32 to vector<64x8xf32>
    %49 = arith.mulf %48, %47 : vector<64x8xf32>
    %cst_25 = arith.constant 1.000000e+00 : f32
    %50 = vector.broadcast %cst_25 : f32 to vector<64x8xf32>
    %51 = arith.addf %50, %49 : vector<64x8xf32>
    %cst_26 = arith.constant 1.000000e+00 : f32
    %52 = vector.broadcast %cst_26 : f32 to vector<64x8xf32>
    %53 = arith.divf %52, %51 : vector<64x8xf32>
    %cst_27 = arith.constant 1.06140542 : f32
    %54 = vector.broadcast %cst_27 : f32 to vector<64x8xf32>
    %55 = arith.mulf %54, %53 : vector<64x8xf32>
    %cst_28 = arith.constant -1.45315206 : f32
    %56 = vector.broadcast %cst_28 : f32 to vector<64x8xf32>
    %57 = arith.addf %55, %56 : vector<64x8xf32>
    %58 = arith.mulf %57, %53 : vector<64x8xf32>
    %cst_29 = arith.constant 1.42141378 : f32
    %59 = vector.broadcast %cst_29 : f32 to vector<64x8xf32>
    %60 = arith.addf %58, %59 : vector<64x8xf32>
    %61 = arith.mulf %60, %53 : vector<64x8xf32>
    %cst_30 = arith.constant -0.284496725 : f32
    %62 = vector.broadcast %cst_30 : f32 to vector<64x8xf32>
    %63 = arith.addf %61, %62 : vector<64x8xf32>
    %64 = arith.mulf %63, %53 : vector<64x8xf32>
    %cst_31 = arith.constant 0.254829586 : f32
    %65 = vector.broadcast %cst_31 : f32 to vector<64x8xf32>
    %66 = arith.addf %64, %65 : vector<64x8xf32>
    %67 = arith.mulf %66, %53 : vector<64x8xf32>
    %cst_32 = arith.constant 0.000000e+00 : f32
    %68 = vector.broadcast %cst_32 : f32 to vector<64x8xf32>
    %69 = arith.subf %68, %47 : vector<64x8xf32>
    %70 = arith.mulf %69, %47 : vector<64x8xf32>
    %71 = math.exp %70 : vector<64x8xf32>
    %72 = arith.mulf %67, %71 : vector<64x8xf32>
    %cst_33 = arith.constant 1.000000e+00 : f32
    %73 = vector.broadcast %cst_33 : f32 to vector<64x8xf32>
    %74 = arith.subf %73, %72 : vector<64x8xf32>
    %75 = arith.mulf %46, %74 : vector<64x8xf32>
    %cst_34 = arith.constant 1.000000e+00 : f32
    %76 = vector.broadcast %cst_34 : f32 to vector<64x8xf32>
    %77 = arith.addf %76, %75 : vector<64x8xf32>
    %78 = arith.mulf %39, %77 : vector<64x8xf32>
    %c0_35 = arith.constant 0 : index
    %c0_36 = arith.constant 0 : index
    %c0_37 = arith.constant 0 : index
    %79 = vector.load %arg6[%c0_35, %c0_36, %c0_37] : memref<1x64x8xf32, #tpu.memory_space<vmem>>, vector<1x64x8xf32>
    %80 = vector.shape_cast %79 : vector<1x64x8xf32> to vector<64x8xf32>
    %81 = vector.shape_cast %78 : vector<64x8xf32> to vector<1x64x8xf32>
    tpu.vector_store %arg6[%c0_35, %c0_36, %c0_37], %81 {strides = array<i32>} : memref<1x64x8xf32, #tpu.memory_space<vmem>>, vector<1x64x8xf32>,
    return
  }
  func.func @transform_0(%arg0: i32) -> (i32, i32, i32) {
    %c0_i32 = arith.constant 0 : i32
    %c0_i32_0 = arith.constant 0 : i32
    %c0_i32_1 = arith.constant 0 : i32
    return %arg0, %c0_i32, %c0_i32_0 : i32, i32, i32
  }
  func.func @transform_1(%arg0: i32) -> (i32, i32) {
    %c0_i32 = arith.constant 0 : i32
    %c0_i32_0 = arith.constant 0 : i32
    %c0_i32_1 = arith.constant 0 : i32
    return %c0_i32, %c0_i32_0 : i32, i32
  }
  func.func @transform_2(%arg0: i32) -> (i32, i32) {
    %c0_i32 = arith.constant 0 : i32
    %c0_i32_0 = arith.constant 0 : i32
    %c0_i32_1 = arith.constant 0 : i32
    return %c0_i32, %c0_i32_0 : i32, i32
  }
  func.func @transform_3(%arg0: i32) -> (i32, i32) {
    %c0_i32 = arith.constant 0 : i32
    %c0_i32_0 = arith.constant 0 : i32
    %c0_i32_1 = arith.constant 0 : i32
    return %c0_i32, %c0_i32_0 : i32, i32
  }
  func.func @transform_4(%arg0: i32) -> (i32, i32, i32) {
    %c0_i32 = arith.constant 0 : i32
    %c0_i32_0 = arith.constant 0 : i32
    %c0_i32_1 = arith.constant 0 : i32
    return %arg0, %c0_i32, %c0_i32_0 : i32, i32, i32
  }
  func.func @transform_5(%arg0: i32) -> (i32, i32, i32) {
    %c0_i32 = arith.constant 0 : i32
    %c0_i32_0 = arith.constant 0 : i32
    %c0_i32_1 = arith.constant 0 : i32
    return %arg0, %c0_i32, %c0_i32_0 : i32, i32, i32
  }
}

module attributes {stable_mosaic.version = 11 : i64} {
  func.func @_conv_gn_kernel(%arg0: i32, %arg1: memref<1x16x72xbf16, #tpu.memory_space<vmem>>, %arg2: memref<72x16xbf16, #tpu.memory_space<vmem>>, %arg3: memref<1x16xf32, #tpu.memory_space<vmem>>, %arg4: memref<1x16xf32, #tpu.memory_space<vmem>>, %arg5: memref<1x16x16xf32, #tpu.memory_space<vmem>>) attributes {dimension_semantics = [#tpu.dimension_semantics<parallel>], iteration_bounds = array<i64: 2>, scalar_prefetch = 0 : i64, scratch_operands = 0 : i64, tpu.core_type = #tpu.core_type<tc>, window_params = [{transform_indices = @transform_0, window_bounds = array<i64: 1, 16, 72>}, {pipeline_mode = #tpu.pipeline_mode<synchronous>, transform_indices = @transform_1, window_bounds = array<i64: 72, 16>}, {pipeline_mode = #tpu.pipeline_mode<synchronous>, transform_indices = @transform_2, window_bounds = array<i64: 1, 16>}, {pipeline_mode = #tpu.pipeline_mode<synchronous>, transform_indices = @transform_3, window_bounds = array<i64: 1, 16>}, {transform_indices = @transform_4, window_bounds = array<i64: 1, 16, 16>}]} {
    %c0 = arith.constant 0 : index
    %c0_0 = arith.constant 0 : index
    %c0_1 = arith.constant 0 : index
    %0 = vector.load %arg1[%c0, %c0_0, %c0_1] : memref<1x16x72xbf16, #tpu.memory_space<vmem>>, vector<1x16x72xbf16>
    %1 = vector.shape_cast %0 : vector<1x16x72xbf16> to vector<16x72xbf16>
    %c0_2 = arith.constant 0 : index
    %c0_3 = arith.constant 0 : index
    %2 = vector.load %arg2[%c0_2, %c0_3] : memref<72x16xbf16, #tpu.memory_space<vmem>>, vector<72x16xbf16>
    %cst = arith.constant dense<0.000000e+00> : vector<16x16xf32>
    %3 = tpu.matmul %1, %2, %cst {dimension_numbers = #tpu.dot_dimension_numbers<[1], [0], [0], [1], [0, 0, 1, 1], [], []>} : vector<16x72xbf16>, vector<72x16xbf16>, vector<16x16xf32> -> vector<16x16xf32>
    %cst_4 = arith.constant dense<0.000000e+00> : vector<16xf32>
    %4 = vector.multi_reduction <add>, %3, %cst_4 [1] : vector<16x16xf32> to vector<16xf32>
    %5 = vector.shape_cast %4 : vector<16xf32> to vector<16x1xf32>
    %cst_5 = arith.constant dense<0.000000e+00> : vector<1xf32>
    %6 = vector.multi_reduction <add>, %5, %cst_5 [0] : vector<16x1xf32> to vector<1xf32>
    %7 = vector.shape_cast %6 : vector<1xf32> to vector<1x1xf32>
    %8 = arith.mulf %3, %3 : vector<16x16xf32>
    %cst_6 = arith.constant dense<0.000000e+00> : vector<16xf32>
    %9 = vector.multi_reduction <add>, %8, %cst_6 [1] : vector<16x16xf32> to vector<16xf32>
    %10 = vector.shape_cast %9 : vector<16xf32> to vector<16x1xf32>
    %cst_7 = arith.constant dense<0.000000e+00> : vector<1xf32>
    %11 = vector.multi_reduction <add>, %10, %cst_7 [0] : vector<16x1xf32> to vector<1xf32>
    %12 = vector.shape_cast %11 : vector<1xf32> to vector<1x1xf32>
    %cst_8 = arith.constant 3.906250e-03 : f32
    %13 = vector.broadcast %cst_8 : f32 to vector<1x1xf32>
    %14 = arith.mulf %7, %13 : vector<1x1xf32>
    %cst_9 = arith.constant 3.906250e-03 : f32
    %15 = vector.broadcast %cst_9 : f32 to vector<1x1xf32>
    %16 = arith.mulf %12, %15 : vector<1x1xf32>
    %17 = arith.mulf %14, %14 : vector<1x1xf32>
    %18 = arith.subf %16, %17 : vector<1x1xf32>
    %cst_10 = arith.constant 0.000000e+00 : f32
    %19 = vector.broadcast %cst_10 : f32 to vector<1x1xf32>
    %20 = arith.maximumf %18, %19 : vector<1x1xf32>
    %c0_11 = arith.constant 0 : index
    %c0_12 = arith.constant 0 : index
    %21 = vector.load %arg3[%c0_11, %c0_12] : memref<1x16xf32, #tpu.memory_space<vmem>>, vector<1x16xf32>
    %cst_13 = arith.constant 9.99999974E-6 : f32
    %22 = vector.broadcast %cst_13 : f32 to vector<1x1xf32>
    %23 = arith.addf %20, %22 : vector<1x1xf32>
    %24 = math.rsqrt %23 : vector<1x1xf32>
    %25 = vector.broadcast %24 : vector<1x1xf32> to vector<1x16xf32>
    %26 = arith.mulf %21, %25 : vector<1x16xf32>
    %c0_14 = arith.constant 0 : index
    %c0_15 = arith.constant 0 : index
    %27 = vector.load %arg4[%c0_14, %c0_15] : memref<1x16xf32, #tpu.memory_space<vmem>>, vector<1x16xf32>
    %28 = vector.broadcast %14 : vector<1x1xf32> to vector<1x16xf32>
    %29 = arith.mulf %28, %26 : vector<1x16xf32>
    %30 = arith.subf %27, %29 : vector<1x16xf32>
    %31 = vector.broadcast %26 : vector<1x16xf32> to vector<16x16xf32>
    %32 = arith.mulf %3, %31 : vector<16x16xf32>
    %33 = vector.broadcast %30 : vector<1x16xf32> to vector<16x16xf32>
    %34 = arith.addf %32, %33 : vector<16x16xf32>
    %cst_16 = arith.constant 0.000000e+00 : f32
    %35 = vector.broadcast %cst_16 : f32 to vector<16x16xf32>
    %36 = arith.maximumf %34, %35 : vector<16x16xf32>
    %c0_17 = arith.constant 0 : index
    %c0_18 = arith.constant 0 : index
    %c0_19 = arith.constant 0 : index
    %37 = vector.load %arg5[%c0_17, %c0_18, %c0_19] : memref<1x16x16xf32, #tpu.memory_space<vmem>>, vector<1x16x16xf32>
    %38 = vector.shape_cast %37 : vector<1x16x16xf32> to vector<16x16xf32>
    %39 = vector.shape_cast %36 : vector<16x16xf32> to vector<1x16x16xf32>
    tpu.vector_store %arg5[%c0_17, %c0_18, %c0_19], %39 {strides = array<i32>} : memref<1x16x16xf32, #tpu.memory_space<vmem>>, vector<1x16x16xf32>,
    return
  }
  func.func @transform_0(%arg0: i32) -> (i32, i32, i32) {
    %c0_i32 = arith.constant 0 : i32
    %c0_i32_0 = arith.constant 0 : i32
    %c0_i32_1 = arith.constant 0 : i32
    return %arg0, %c0_i32, %c0_i32_0 : i32, i32, i32
  }
  func.func @transform_1(%arg0: i32) -> (i32, i32) {
    %c0_i32 = arith.constant 0 : i32
    %c0_i32_0 = arith.constant 0 : i32
    %c0_i32_1 = arith.constant 0 : i32
    return %c0_i32, %c0_i32_0 : i32, i32
  }
  func.func @transform_2(%arg0: i32) -> (i32, i32) {
    %c0_i32 = arith.constant 0 : i32
    %c0_i32_0 = arith.constant 0 : i32
    %c0_i32_1 = arith.constant 0 : i32
    return %c0_i32, %c0_i32_0 : i32, i32
  }
  func.func @transform_3(%arg0: i32) -> (i32, i32) {
    %c0_i32 = arith.constant 0 : i32
    %c0_i32_0 = arith.constant 0 : i32
    %c0_i32_1 = arith.constant 0 : i32
    return %c0_i32, %c0_i32_0 : i32, i32
  }
  func.func @transform_4(%arg0: i32) -> (i32, i32, i32) {
    %c0_i32 = arith.constant 0 : i32
    %c0_i32_0 = arith.constant 0 : i32
    %c0_i32_1 = arith.constant 0 : i32
    return %arg0, %c0_i32, %c0_i32_0 : i32, i32, i32
  }
}

module attributes {stable_mosaic.version = 11 : i64} {
  func.func @_conv_gn_kernel(%arg0: i32, %arg1: memref<1x16x8xbf16, #tpu.memory_space<vmem>>, %arg2: memref<8x16xbf16, #tpu.memory_space<vmem>>, %arg3: memref<1x16xf32, #tpu.memory_space<vmem>>, %arg4: memref<1x16xf32, #tpu.memory_space<vmem>>, %arg5: memref<1x16x16xf32, #tpu.memory_space<vmem>>) attributes {dimension_semantics = [#tpu.dimension_semantics<parallel>], iteration_bounds = array<i64: 2>, scalar_prefetch = 0 : i64, scratch_operands = 0 : i64, tpu.core_type = #tpu.core_type<tc>, window_params = [{transform_indices = @transform_0, window_bounds = array<i64: 1, 16, 8>}, {pipeline_mode = #tpu.pipeline_mode<synchronous>, transform_indices = @transform_1, window_bounds = array<i64: 8, 16>}, {pipeline_mode = #tpu.pipeline_mode<synchronous>, transform_indices = @transform_2, window_bounds = array<i64: 1, 16>}, {pipeline_mode = #tpu.pipeline_mode<synchronous>, transform_indices = @transform_3, window_bounds = array<i64: 1, 16>}, {transform_indices = @transform_4, window_bounds = array<i64: 1, 16, 16>}]} {
    %c0 = arith.constant 0 : index
    %c0_0 = arith.constant 0 : index
    %c0_1 = arith.constant 0 : index
    %0 = vector.load %arg1[%c0, %c0_0, %c0_1] : memref<1x16x8xbf16, #tpu.memory_space<vmem>>, vector<1x16x8xbf16>
    %1 = vector.shape_cast %0 : vector<1x16x8xbf16> to vector<16x8xbf16>
    %c0_2 = arith.constant 0 : index
    %c0_3 = arith.constant 0 : index
    %2 = vector.load %arg2[%c0_2, %c0_3] : memref<8x16xbf16, #tpu.memory_space<vmem>>, vector<8x16xbf16>
    %cst = arith.constant dense<0.000000e+00> : vector<16x16xf32>
    %3 = tpu.matmul %1, %2, %cst {dimension_numbers = #tpu.dot_dimension_numbers<[1], [0], [0], [1], [0, 0, 1, 1], [], []>} : vector<16x8xbf16>, vector<8x16xbf16>, vector<16x16xf32> -> vector<16x16xf32>
    %cst_4 = arith.constant dense<0.000000e+00> : vector<16xf32>
    %4 = vector.multi_reduction <add>, %3, %cst_4 [1] : vector<16x16xf32> to vector<16xf32>
    %5 = vector.shape_cast %4 : vector<16xf32> to vector<16x1xf32>
    %cst_5 = arith.constant dense<0.000000e+00> : vector<1xf32>
    %6 = vector.multi_reduction <add>, %5, %cst_5 [0] : vector<16x1xf32> to vector<1xf32>
    %7 = vector.shape_cast %6 : vector<1xf32> to vector<1x1xf32>
    %8 = arith.mulf %3, %3 : vector<16x16xf32>
    %cst_6 = arith.constant dense<0.000000e+00> : vector<16xf32>
    %9 = vector.multi_reduction <add>, %8, %cst_6 [1] : vector<16x16xf32> to vector<16xf32>
    %10 = vector.shape_cast %9 : vector<16xf32> to vector<16x1xf32>
    %cst_7 = arith.constant dense<0.000000e+00> : vector<1xf32>
    %11 = vector.multi_reduction <add>, %10, %cst_7 [0] : vector<16x1xf32> to vector<1xf32>
    %12 = vector.shape_cast %11 : vector<1xf32> to vector<1x1xf32>
    %cst_8 = arith.constant 3.906250e-03 : f32
    %13 = vector.broadcast %cst_8 : f32 to vector<1x1xf32>
    %14 = arith.mulf %7, %13 : vector<1x1xf32>
    %cst_9 = arith.constant 3.906250e-03 : f32
    %15 = vector.broadcast %cst_9 : f32 to vector<1x1xf32>
    %16 = arith.mulf %12, %15 : vector<1x1xf32>
    %17 = arith.mulf %14, %14 : vector<1x1xf32>
    %18 = arith.subf %16, %17 : vector<1x1xf32>
    %cst_10 = arith.constant 0.000000e+00 : f32
    %19 = vector.broadcast %cst_10 : f32 to vector<1x1xf32>
    %20 = arith.maximumf %18, %19 : vector<1x1xf32>
    %c0_11 = arith.constant 0 : index
    %c0_12 = arith.constant 0 : index
    %21 = vector.load %arg3[%c0_11, %c0_12] : memref<1x16xf32, #tpu.memory_space<vmem>>, vector<1x16xf32>
    %cst_13 = arith.constant 9.99999974E-6 : f32
    %22 = vector.broadcast %cst_13 : f32 to vector<1x1xf32>
    %23 = arith.addf %20, %22 : vector<1x1xf32>
    %24 = math.rsqrt %23 : vector<1x1xf32>
    %25 = vector.broadcast %24 : vector<1x1xf32> to vector<1x16xf32>
    %26 = arith.mulf %21, %25 : vector<1x16xf32>
    %c0_14 = arith.constant 0 : index
    %c0_15 = arith.constant 0 : index
    %27 = vector.load %arg4[%c0_14, %c0_15] : memref<1x16xf32, #tpu.memory_space<vmem>>, vector<1x16xf32>
    %28 = vector.broadcast %14 : vector<1x1xf32> to vector<1x16xf32>
    %29 = arith.mulf %28, %26 : vector<1x16xf32>
    %30 = arith.subf %27, %29 : vector<1x16xf32>
    %31 = vector.broadcast %26 : vector<1x16xf32> to vector<16x16xf32>
    %32 = arith.mulf %3, %31 : vector<16x16xf32>
    %33 = vector.broadcast %30 : vector<1x16xf32> to vector<16x16xf32>
    %34 = arith.addf %32, %33 : vector<16x16xf32>
    %c0_16 = arith.constant 0 : index
    %c0_17 = arith.constant 0 : index
    %c0_18 = arith.constant 0 : index
    %35 = vector.load %arg5[%c0_16, %c0_17, %c0_18] : memref<1x16x16xf32, #tpu.memory_space<vmem>>, vector<1x16x16xf32>
    %36 = vector.shape_cast %35 : vector<1x16x16xf32> to vector<16x16xf32>
    %37 = vector.shape_cast %34 : vector<16x16xf32> to vector<1x16x16xf32>
    tpu.vector_store %arg5[%c0_16, %c0_17, %c0_18], %37 {strides = array<i32>} : memref<1x16x16xf32, #tpu.memory_space<vmem>>, vector<1x16x16xf32>,
    return
  }
  func.func @transform_0(%arg0: i32) -> (i32, i32, i32) {
    %c0_i32 = arith.constant 0 : i32
    %c0_i32_0 = arith.constant 0 : i32
    %c0_i32_1 = arith.constant 0 : i32
    return %arg0, %c0_i32, %c0_i32_0 : i32, i32, i32
  }
  func.func @transform_1(%arg0: i32) -> (i32, i32) {
    %c0_i32 = arith.constant 0 : i32
    %c0_i32_0 = arith.constant 0 : i32
    %c0_i32_1 = arith.constant 0 : i32
    return %c0_i32, %c0_i32_0 : i32, i32
  }
  func.func @transform_2(%arg0: i32) -> (i32, i32) {
    %c0_i32 = arith.constant 0 : i32
    %c0_i32_0 = arith.constant 0 : i32
    %c0_i32_1 = arith.constant 0 : i32
    return %c0_i32, %c0_i32_0 : i32, i32
  }
  func.func @transform_3(%arg0: i32) -> (i32, i32) {
    %c0_i32 = arith.constant 0 : i32
    %c0_i32_0 = arith.constant 0 : i32
    %c0_i32_1 = arith.constant 0 : i32
    return %c0_i32, %c0_i32_0 : i32, i32
  }
  func.func @transform_4(%arg0: i32) -> (i32, i32, i32) {
    %c0_i32 = arith.constant 0 : i32
    %c0_i32_0 = arith.constant 0 : i32
    %c0_i32_1 = arith.constant 0 : i32
    return %arg0, %c0_i32, %c0_i32_0 : i32, i32, i32
  }
}

module attributes {stable_mosaic.version = 11 : i64} {
  func.func @_conv_gn_kernel(%arg0: i32, %arg1: memref<1x16x144xbf16, #tpu.memory_space<vmem>>, %arg2: memref<144x16xbf16, #tpu.memory_space<vmem>>, %arg3: memref<1x16xf32, #tpu.memory_space<vmem>>, %arg4: memref<1x16xf32, #tpu.memory_space<vmem>>, %arg5: memref<1x16x16xf32, #tpu.memory_space<vmem>>, %arg6: memref<1x16x16xf32, #tpu.memory_space<vmem>>) attributes {dimension_semantics = [#tpu.dimension_semantics<parallel>], iteration_bounds = array<i64: 2>, scalar_prefetch = 0 : i64, scratch_operands = 0 : i64, tpu.core_type = #tpu.core_type<tc>, window_params = [{transform_indices = @transform_0, window_bounds = array<i64: 1, 16, 144>}, {pipeline_mode = #tpu.pipeline_mode<synchronous>, transform_indices = @transform_1, window_bounds = array<i64: 144, 16>}, {pipeline_mode = #tpu.pipeline_mode<synchronous>, transform_indices = @transform_2, window_bounds = array<i64: 1, 16>}, {pipeline_mode = #tpu.pipeline_mode<synchronous>, transform_indices = @transform_3, window_bounds = array<i64: 1, 16>}, {transform_indices = @transform_4, window_bounds = array<i64: 1, 16, 16>}, {transform_indices = @transform_5, window_bounds = array<i64: 1, 16, 16>}]} {
    %c0 = arith.constant 0 : index
    %c0_0 = arith.constant 0 : index
    %c0_1 = arith.constant 0 : index
    %0 = vector.load %arg1[%c0, %c0_0, %c0_1] : memref<1x16x144xbf16, #tpu.memory_space<vmem>>, vector<1x16x144xbf16>
    %1 = vector.shape_cast %0 : vector<1x16x144xbf16> to vector<16x144xbf16>
    %c0_2 = arith.constant 0 : index
    %c0_3 = arith.constant 0 : index
    %2 = vector.load %arg2[%c0_2, %c0_3] : memref<144x16xbf16, #tpu.memory_space<vmem>>, vector<144x16xbf16>
    %cst = arith.constant dense<0.000000e+00> : vector<16x16xf32>
    %3 = tpu.matmul %1, %2, %cst {dimension_numbers = #tpu.dot_dimension_numbers<[1], [0], [0], [1], [0, 0, 1, 1], [], []>} : vector<16x144xbf16>, vector<144x16xbf16>, vector<16x16xf32> -> vector<16x16xf32>
    %cst_4 = arith.constant dense<0.000000e+00> : vector<16xf32>
    %4 = vector.multi_reduction <add>, %3, %cst_4 [1] : vector<16x16xf32> to vector<16xf32>
    %5 = vector.shape_cast %4 : vector<16xf32> to vector<16x1xf32>
    %cst_5 = arith.constant dense<0.000000e+00> : vector<1xf32>
    %6 = vector.multi_reduction <add>, %5, %cst_5 [0] : vector<16x1xf32> to vector<1xf32>
    %7 = vector.shape_cast %6 : vector<1xf32> to vector<1x1xf32>
    %8 = arith.mulf %3, %3 : vector<16x16xf32>
    %cst_6 = arith.constant dense<0.000000e+00> : vector<16xf32>
    %9 = vector.multi_reduction <add>, %8, %cst_6 [1] : vector<16x16xf32> to vector<16xf32>
    %10 = vector.shape_cast %9 : vector<16xf32> to vector<16x1xf32>
    %cst_7 = arith.constant dense<0.000000e+00> : vector<1xf32>
    %11 = vector.multi_reduction <add>, %10, %cst_7 [0] : vector<16x1xf32> to vector<1xf32>
    %12 = vector.shape_cast %11 : vector<1xf32> to vector<1x1xf32>
    %cst_8 = arith.constant 3.906250e-03 : f32
    %13 = vector.broadcast %cst_8 : f32 to vector<1x1xf32>
    %14 = arith.mulf %7, %13 : vector<1x1xf32>
    %cst_9 = arith.constant 3.906250e-03 : f32
    %15 = vector.broadcast %cst_9 : f32 to vector<1x1xf32>
    %16 = arith.mulf %12, %15 : vector<1x1xf32>
    %17 = arith.mulf %14, %14 : vector<1x1xf32>
    %18 = arith.subf %16, %17 : vector<1x1xf32>
    %cst_10 = arith.constant 0.000000e+00 : f32
    %19 = vector.broadcast %cst_10 : f32 to vector<1x1xf32>
    %20 = arith.maximumf %18, %19 : vector<1x1xf32>
    %c0_11 = arith.constant 0 : index
    %c0_12 = arith.constant 0 : index
    %21 = vector.load %arg3[%c0_11, %c0_12] : memref<1x16xf32, #tpu.memory_space<vmem>>, vector<1x16xf32>
    %cst_13 = arith.constant 9.99999974E-6 : f32
    %22 = vector.broadcast %cst_13 : f32 to vector<1x1xf32>
    %23 = arith.addf %20, %22 : vector<1x1xf32>
    %24 = math.rsqrt %23 : vector<1x1xf32>
    %25 = vector.broadcast %24 : vector<1x1xf32> to vector<1x16xf32>
    %26 = arith.mulf %21, %25 : vector<1x16xf32>
    %c0_14 = arith.constant 0 : index
    %c0_15 = arith.constant 0 : index
    %27 = vector.load %arg4[%c0_14, %c0_15] : memref<1x16xf32, #tpu.memory_space<vmem>>, vector<1x16xf32>
    %28 = vector.broadcast %14 : vector<1x1xf32> to vector<1x16xf32>
    %29 = arith.mulf %28, %26 : vector<1x16xf32>
    %30 = arith.subf %27, %29 : vector<1x16xf32>
    %31 = vector.broadcast %26 : vector<1x16xf32> to vector<16x16xf32>
    %32 = arith.mulf %3, %31 : vector<16x16xf32>
    %33 = vector.broadcast %30 : vector<1x16xf32> to vector<16x16xf32>
    %34 = arith.addf %32, %33 : vector<16x16xf32>
    %c0_16 = arith.constant 0 : index
    %c0_17 = arith.constant 0 : index
    %c0_18 = arith.constant 0 : index
    %35 = vector.load %arg5[%c0_16, %c0_17, %c0_18] : memref<1x16x16xf32, #tpu.memory_space<vmem>>, vector<1x16x16xf32>
    %36 = vector.shape_cast %35 : vector<1x16x16xf32> to vector<16x16xf32>
    %37 = arith.addf %34, %36 : vector<16x16xf32>
    %cst_19 = arith.constant 5.000000e-01 : f32
    %38 = vector.broadcast %cst_19 : f32 to vector<16x16xf32>
    %39 = arith.mulf %38, %37 : vector<16x16xf32>
    %cst_20 = arith.constant 0.707106769 : f32
    %40 = vector.broadcast %cst_20 : f32 to vector<16x16xf32>
    %41 = arith.mulf %37, %40 : vector<16x16xf32>
    %cst_21 = arith.constant 0.000000e+00 : f32
    %42 = vector.broadcast %cst_21 : f32 to vector<16x16xf32>
    %43 = arith.cmpf oge, %41, %42 : vector<16x16xf32>
    %cst_22 = arith.constant 1.000000e+00 : f32
    %cst_23 = arith.constant -1.000000e+00 : f32
    %44 = vector.broadcast %cst_22 : f32 to vector<16x16xf32>
    %45 = vector.broadcast %cst_23 : f32 to vector<16x16xf32>
    %46 = arith.select %43, %44, %45 : vector<16x16xi1>, vector<16x16xf32>
    %47 = math.absf %41 : vector<16x16xf32>
    %cst_24 = arith.constant 0.327591091 : f32
    %48 = vector.broadcast %cst_24 : f32 to vector<16x16xf32>
    %49 = arith.mulf %48, %47 : vector<16x16xf32>
    %cst_25 = arith.constant 1.000000e+00 : f32
    %50 = vector.broadcast %cst_25 : f32 to vector<16x16xf32>
    %51 = arith.addf %50, %49 : vector<16x16xf32>
    %cst_26 = arith.constant 1.000000e+00 : f32
    %52 = vector.broadcast %cst_26 : f32 to vector<16x16xf32>
    %53 = arith.divf %52, %51 : vector<16x16xf32>
    %cst_27 = arith.constant 1.06140542 : f32
    %54 = vector.broadcast %cst_27 : f32 to vector<16x16xf32>
    %55 = arith.mulf %54, %53 : vector<16x16xf32>
    %cst_28 = arith.constant -1.45315206 : f32
    %56 = vector.broadcast %cst_28 : f32 to vector<16x16xf32>
    %57 = arith.addf %55, %56 : vector<16x16xf32>
    %58 = arith.mulf %57, %53 : vector<16x16xf32>
    %cst_29 = arith.constant 1.42141378 : f32
    %59 = vector.broadcast %cst_29 : f32 to vector<16x16xf32>
    %60 = arith.addf %58, %59 : vector<16x16xf32>
    %61 = arith.mulf %60, %53 : vector<16x16xf32>
    %cst_30 = arith.constant -0.284496725 : f32
    %62 = vector.broadcast %cst_30 : f32 to vector<16x16xf32>
    %63 = arith.addf %61, %62 : vector<16x16xf32>
    %64 = arith.mulf %63, %53 : vector<16x16xf32>
    %cst_31 = arith.constant 0.254829586 : f32
    %65 = vector.broadcast %cst_31 : f32 to vector<16x16xf32>
    %66 = arith.addf %64, %65 : vector<16x16xf32>
    %67 = arith.mulf %66, %53 : vector<16x16xf32>
    %cst_32 = arith.constant 0.000000e+00 : f32
    %68 = vector.broadcast %cst_32 : f32 to vector<16x16xf32>
    %69 = arith.subf %68, %47 : vector<16x16xf32>
    %70 = arith.mulf %69, %47 : vector<16x16xf32>
    %71 = math.exp %70 : vector<16x16xf32>
    %72 = arith.mulf %67, %71 : vector<16x16xf32>
    %cst_33 = arith.constant 1.000000e+00 : f32
    %73 = vector.broadcast %cst_33 : f32 to vector<16x16xf32>
    %74 = arith.subf %73, %72 : vector<16x16xf32>
    %75 = arith.mulf %46, %74 : vector<16x16xf32>
    %cst_34 = arith.constant 1.000000e+00 : f32
    %76 = vector.broadcast %cst_34 : f32 to vector<16x16xf32>
    %77 = arith.addf %76, %75 : vector<16x16xf32>
    %78 = arith.mulf %39, %77 : vector<16x16xf32>
    %c0_35 = arith.constant 0 : index
    %c0_36 = arith.constant 0 : index
    %c0_37 = arith.constant 0 : index
    %79 = vector.load %arg6[%c0_35, %c0_36, %c0_37] : memref<1x16x16xf32, #tpu.memory_space<vmem>>, vector<1x16x16xf32>
    %80 = vector.shape_cast %79 : vector<1x16x16xf32> to vector<16x16xf32>
    %81 = vector.shape_cast %78 : vector<16x16xf32> to vector<1x16x16xf32>
    tpu.vector_store %arg6[%c0_35, %c0_36, %c0_37], %81 {strides = array<i32>} : memref<1x16x16xf32, #tpu.memory_space<vmem>>, vector<1x16x16xf32>,
    return
  }
  func.func @transform_0(%arg0: i32) -> (i32, i32, i32) {
    %c0_i32 = arith.constant 0 : i32
    %c0_i32_0 = arith.constant 0 : i32
    %c0_i32_1 = arith.constant 0 : i32
    return %arg0, %c0_i32, %c0_i32_0 : i32, i32, i32
  }
  func.func @transform_1(%arg0: i32) -> (i32, i32) {
    %c0_i32 = arith.constant 0 : i32
    %c0_i32_0 = arith.constant 0 : i32
    %c0_i32_1 = arith.constant 0 : i32
    return %c0_i32, %c0_i32_0 : i32, i32
  }
  func.func @transform_2(%arg0: i32) -> (i32, i32) {
    %c0_i32 = arith.constant 0 : i32
    %c0_i32_0 = arith.constant 0 : i32
    %c0_i32_1 = arith.constant 0 : i32
    return %c0_i32, %c0_i32_0 : i32, i32
  }
  func.func @transform_3(%arg0: i32) -> (i32, i32) {
    %c0_i32 = arith.constant 0 : i32
    %c0_i32_0 = arith.constant 0 : i32
    %c0_i32_1 = arith.constant 0 : i32
    return %c0_i32, %c0_i32_0 : i32, i32
  }
  func.func @transform_4(%arg0: i32) -> (i32, i32, i32) {
    %c0_i32 = arith.constant 0 : i32
    %c0_i32_0 = arith.constant 0 : i32
    %c0_i32_1 = arith.constant 0 : i32
    return %arg0, %c0_i32, %c0_i32_0 : i32, i32, i32
  }
  func.func @transform_5(%arg0: i32) -> (i32, i32, i32) {
    %c0_i32 = arith.constant 0 : i32
    %c0_i32_0 = arith.constant 0 : i32
    %c0_i32_1 = arith.constant 0 : i32
    return %arg0, %c0_i32, %c0_i32_0 : i32, i32, i32
  }
}

module attributes {stable_mosaic.version = 11 : i64} {
  func.func @_conv_gn_kernel(%arg0: i32, %arg1: memref<1x16x144xbf16, #tpu.memory_space<vmem>>, %arg2: memref<144x16xbf16, #tpu.memory_space<vmem>>, %arg3: memref<1x16xf32, #tpu.memory_space<vmem>>, %arg4: memref<1x16xf32, #tpu.memory_space<vmem>>, %arg5: memref<1x16x16xf32, #tpu.memory_space<vmem>>) attributes {dimension_semantics = [#tpu.dimension_semantics<parallel>], iteration_bounds = array<i64: 2>, scalar_prefetch = 0 : i64, scratch_operands = 0 : i64, tpu.core_type = #tpu.core_type<tc>, window_params = [{transform_indices = @transform_0, window_bounds = array<i64: 1, 16, 144>}, {pipeline_mode = #tpu.pipeline_mode<synchronous>, transform_indices = @transform_1, window_bounds = array<i64: 144, 16>}, {pipeline_mode = #tpu.pipeline_mode<synchronous>, transform_indices = @transform_2, window_bounds = array<i64: 1, 16>}, {pipeline_mode = #tpu.pipeline_mode<synchronous>, transform_indices = @transform_3, window_bounds = array<i64: 1, 16>}, {transform_indices = @transform_4, window_bounds = array<i64: 1, 16, 16>}]} {
    %c0 = arith.constant 0 : index
    %c0_0 = arith.constant 0 : index
    %c0_1 = arith.constant 0 : index
    %0 = vector.load %arg1[%c0, %c0_0, %c0_1] : memref<1x16x144xbf16, #tpu.memory_space<vmem>>, vector<1x16x144xbf16>
    %1 = vector.shape_cast %0 : vector<1x16x144xbf16> to vector<16x144xbf16>
    %c0_2 = arith.constant 0 : index
    %c0_3 = arith.constant 0 : index
    %2 = vector.load %arg2[%c0_2, %c0_3] : memref<144x16xbf16, #tpu.memory_space<vmem>>, vector<144x16xbf16>
    %cst = arith.constant dense<0.000000e+00> : vector<16x16xf32>
    %3 = tpu.matmul %1, %2, %cst {dimension_numbers = #tpu.dot_dimension_numbers<[1], [0], [0], [1], [0, 0, 1, 1], [], []>} : vector<16x144xbf16>, vector<144x16xbf16>, vector<16x16xf32> -> vector<16x16xf32>
    %cst_4 = arith.constant dense<0.000000e+00> : vector<16xf32>
    %4 = vector.multi_reduction <add>, %3, %cst_4 [1] : vector<16x16xf32> to vector<16xf32>
    %5 = vector.shape_cast %4 : vector<16xf32> to vector<16x1xf32>
    %cst_5 = arith.constant dense<0.000000e+00> : vector<1xf32>
    %6 = vector.multi_reduction <add>, %5, %cst_5 [0] : vector<16x1xf32> to vector<1xf32>
    %7 = vector.shape_cast %6 : vector<1xf32> to vector<1x1xf32>
    %8 = arith.mulf %3, %3 : vector<16x16xf32>
    %cst_6 = arith.constant dense<0.000000e+00> : vector<16xf32>
    %9 = vector.multi_reduction <add>, %8, %cst_6 [1] : vector<16x16xf32> to vector<16xf32>
    %10 = vector.shape_cast %9 : vector<16xf32> to vector<16x1xf32>
    %cst_7 = arith.constant dense<0.000000e+00> : vector<1xf32>
    %11 = vector.multi_reduction <add>, %10, %cst_7 [0] : vector<16x1xf32> to vector<1xf32>
    %12 = vector.shape_cast %11 : vector<1xf32> to vector<1x1xf32>
    %cst_8 = arith.constant 3.906250e-03 : f32
    %13 = vector.broadcast %cst_8 : f32 to vector<1x1xf32>
    %14 = arith.mulf %7, %13 : vector<1x1xf32>
    %cst_9 = arith.constant 3.906250e-03 : f32
    %15 = vector.broadcast %cst_9 : f32 to vector<1x1xf32>
    %16 = arith.mulf %12, %15 : vector<1x1xf32>
    %17 = arith.mulf %14, %14 : vector<1x1xf32>
    %18 = arith.subf %16, %17 : vector<1x1xf32>
    %cst_10 = arith.constant 0.000000e+00 : f32
    %19 = vector.broadcast %cst_10 : f32 to vector<1x1xf32>
    %20 = arith.maximumf %18, %19 : vector<1x1xf32>
    %c0_11 = arith.constant 0 : index
    %c0_12 = arith.constant 0 : index
    %21 = vector.load %arg3[%c0_11, %c0_12] : memref<1x16xf32, #tpu.memory_space<vmem>>, vector<1x16xf32>
    %cst_13 = arith.constant 9.99999974E-6 : f32
    %22 = vector.broadcast %cst_13 : f32 to vector<1x1xf32>
    %23 = arith.addf %20, %22 : vector<1x1xf32>
    %24 = math.rsqrt %23 : vector<1x1xf32>
    %25 = vector.broadcast %24 : vector<1x1xf32> to vector<1x16xf32>
    %26 = arith.mulf %21, %25 : vector<1x16xf32>
    %c0_14 = arith.constant 0 : index
    %c0_15 = arith.constant 0 : index
    %27 = vector.load %arg4[%c0_14, %c0_15] : memref<1x16xf32, #tpu.memory_space<vmem>>, vector<1x16xf32>
    %28 = vector.broadcast %14 : vector<1x1xf32> to vector<1x16xf32>
    %29 = arith.mulf %28, %26 : vector<1x16xf32>
    %30 = arith.subf %27, %29 : vector<1x16xf32>
    %31 = vector.broadcast %26 : vector<1x16xf32> to vector<16x16xf32>
    %32 = arith.mulf %3, %31 : vector<16x16xf32>
    %33 = vector.broadcast %30 : vector<1x16xf32> to vector<16x16xf32>
    %34 = arith.addf %32, %33 : vector<16x16xf32>
    %cst_16 = arith.constant 0.000000e+00 : f32
    %35 = vector.broadcast %cst_16 : f32 to vector<16x16xf32>
    %36 = arith.maximumf %34, %35 : vector<16x16xf32>
    %c0_17 = arith.constant 0 : index
    %c0_18 = arith.constant 0 : index
    %c0_19 = arith.constant 0 : index
    %37 = vector.load %arg5[%c0_17, %c0_18, %c0_19] : memref<1x16x16xf32, #tpu.memory_space<vmem>>, vector<1x16x16xf32>
    %38 = vector.shape_cast %37 : vector<1x16x16xf32> to vector<16x16xf32>
    %39 = vector.shape_cast %36 : vector<16x16xf32> to vector<1x16x16xf32>
    tpu.vector_store %arg5[%c0_17, %c0_18, %c0_19], %39 {strides = array<i32>} : memref<1x16x16xf32, #tpu.memory_space<vmem>>, vector<1x16x16xf32>,
    return
  }
  func.func @transform_0(%arg0: i32) -> (i32, i32, i32) {
    %c0_i32 = arith.constant 0 : i32
    %c0_i32_0 = arith.constant 0 : i32
    %c0_i32_1 = arith.constant 0 : i32
    return %arg0, %c0_i32, %c0_i32_0 : i32, i32, i32
  }
  func.func @transform_1(%arg0: i32) -> (i32, i32) {
    %c0_i32 = arith.constant 0 : i32
    %c0_i32_0 = arith.constant 0 : i32
    %c0_i32_1 = arith.constant 0 : i32
    return %c0_i32, %c0_i32_0 : i32, i32
  }
  func.func @transform_2(%arg0: i32) -> (i32, i32) {
    %c0_i32 = arith.constant 0 : i32
    %c0_i32_0 = arith.constant 0 : i32
    %c0_i32_1 = arith.constant 0 : i32
    return %c0_i32, %c0_i32_0 : i32, i32
  }
  func.func @transform_3(%arg0: i32) -> (i32, i32) {
    %c0_i32 = arith.constant 0 : i32
    %c0_i32_0 = arith.constant 0 : i32
    %c0_i32_1 = arith.constant 0 : i32
    return %c0_i32, %c0_i32_0 : i32, i32
  }
  func.func @transform_4(%arg0: i32) -> (i32, i32, i32) {
    %c0_i32 = arith.constant 0 : i32
    %c0_i32_0 = arith.constant 0 : i32
    %c0_i32_1 = arith.constant 0 : i32
    return %arg0, %c0_i32, %c0_i32_0 : i32, i32, i32
  }
}

module attributes {stable_mosaic.version = 11 : i64} {
  func.func @_conv_gn_kernel(%arg0: i32, %arg1: memref<1x4x144xbf16, #tpu.memory_space<vmem>>, %arg2: memref<144x16xbf16, #tpu.memory_space<vmem>>, %arg3: memref<1x16xf32, #tpu.memory_space<vmem>>, %arg4: memref<1x16xf32, #tpu.memory_space<vmem>>, %arg5: memref<1x4x16xf32, #tpu.memory_space<vmem>>) attributes {dimension_semantics = [#tpu.dimension_semantics<parallel>], iteration_bounds = array<i64: 2>, scalar_prefetch = 0 : i64, scratch_operands = 0 : i64, tpu.core_type = #tpu.core_type<tc>, window_params = [{transform_indices = @transform_0, window_bounds = array<i64: 1, 4, 144>}, {pipeline_mode = #tpu.pipeline_mode<synchronous>, transform_indices = @transform_1, window_bounds = array<i64: 144, 16>}, {pipeline_mode = #tpu.pipeline_mode<synchronous>, transform_indices = @transform_2, window_bounds = array<i64: 1, 16>}, {pipeline_mode = #tpu.pipeline_mode<synchronous>, transform_indices = @transform_3, window_bounds = array<i64: 1, 16>}, {transform_indices = @transform_4, window_bounds = array<i64: 1, 4, 16>}]} {
    %c0 = arith.constant 0 : index
    %c0_0 = arith.constant 0 : index
    %c0_1 = arith.constant 0 : index
    %0 = vector.load %arg1[%c0, %c0_0, %c0_1] : memref<1x4x144xbf16, #tpu.memory_space<vmem>>, vector<1x4x144xbf16>
    %1 = vector.shape_cast %0 : vector<1x4x144xbf16> to vector<4x144xbf16>
    %c0_2 = arith.constant 0 : index
    %c0_3 = arith.constant 0 : index
    %2 = vector.load %arg2[%c0_2, %c0_3] : memref<144x16xbf16, #tpu.memory_space<vmem>>, vector<144x16xbf16>
    %cst = arith.constant dense<0.000000e+00> : vector<4x16xf32>
    %3 = tpu.matmul %1, %2, %cst {dimension_numbers = #tpu.dot_dimension_numbers<[1], [0], [0], [1], [0, 0, 1, 1], [], []>} : vector<4x144xbf16>, vector<144x16xbf16>, vector<4x16xf32> -> vector<4x16xf32>
    %cst_4 = arith.constant dense<0.000000e+00> : vector<4xf32>
    %4 = vector.multi_reduction <add>, %3, %cst_4 [1] : vector<4x16xf32> to vector<4xf32>
    %5 = vector.shape_cast %4 : vector<4xf32> to vector<4x1xf32>
    %cst_5 = arith.constant dense<0.000000e+00> : vector<1xf32>
    %6 = vector.multi_reduction <add>, %5, %cst_5 [0] : vector<4x1xf32> to vector<1xf32>
    %7 = vector.shape_cast %6 : vector<1xf32> to vector<1x1xf32>
    %8 = arith.mulf %3, %3 : vector<4x16xf32>
    %cst_6 = arith.constant dense<0.000000e+00> : vector<4xf32>
    %9 = vector.multi_reduction <add>, %8, %cst_6 [1] : vector<4x16xf32> to vector<4xf32>
    %10 = vector.shape_cast %9 : vector<4xf32> to vector<4x1xf32>
    %cst_7 = arith.constant dense<0.000000e+00> : vector<1xf32>
    %11 = vector.multi_reduction <add>, %10, %cst_7 [0] : vector<4x1xf32> to vector<1xf32>
    %12 = vector.shape_cast %11 : vector<1xf32> to vector<1x1xf32>
    %cst_8 = arith.constant 1.562500e-02 : f32
    %13 = vector.broadcast %cst_8 : f32 to vector<1x1xf32>
    %14 = arith.mulf %7, %13 : vector<1x1xf32>
    %cst_9 = arith.constant 1.562500e-02 : f32
    %15 = vector.broadcast %cst_9 : f32 to vector<1x1xf32>
    %16 = arith.mulf %12, %15 : vector<1x1xf32>
    %17 = arith.mulf %14, %14 : vector<1x1xf32>
    %18 = arith.subf %16, %17 : vector<1x1xf32>
    %cst_10 = arith.constant 0.000000e+00 : f32
    %19 = vector.broadcast %cst_10 : f32 to vector<1x1xf32>
    %20 = arith.maximumf %18, %19 : vector<1x1xf32>
    %c0_11 = arith.constant 0 : index
    %c0_12 = arith.constant 0 : index
    %21 = vector.load %arg3[%c0_11, %c0_12] : memref<1x16xf32, #tpu.memory_space<vmem>>, vector<1x16xf32>
    %cst_13 = arith.constant 9.99999974E-6 : f32
    %22 = vector.broadcast %cst_13 : f32 to vector<1x1xf32>
    %23 = arith.addf %20, %22 : vector<1x1xf32>
    %24 = math.rsqrt %23 : vector<1x1xf32>
    %25 = vector.broadcast %24 : vector<1x1xf32> to vector<1x16xf32>
    %26 = arith.mulf %21, %25 : vector<1x16xf32>
    %c0_14 = arith.constant 0 : index
    %c0_15 = arith.constant 0 : index
    %27 = vector.load %arg4[%c0_14, %c0_15] : memref<1x16xf32, #tpu.memory_space<vmem>>, vector<1x16xf32>
    %28 = vector.broadcast %14 : vector<1x1xf32> to vector<1x16xf32>
    %29 = arith.mulf %28, %26 : vector<1x16xf32>
    %30 = arith.subf %27, %29 : vector<1x16xf32>
    %31 = vector.broadcast %26 : vector<1x16xf32> to vector<4x16xf32>
    %32 = arith.mulf %3, %31 : vector<4x16xf32>
    %33 = vector.broadcast %30 : vector<1x16xf32> to vector<4x16xf32>
    %34 = arith.addf %32, %33 : vector<4x16xf32>
    %cst_16 = arith.constant 0.000000e+00 : f32
    %35 = vector.broadcast %cst_16 : f32 to vector<4x16xf32>
    %36 = arith.maximumf %34, %35 : vector<4x16xf32>
    %c0_17 = arith.constant 0 : index
    %c0_18 = arith.constant 0 : index
    %c0_19 = arith.constant 0 : index
    %37 = vector.load %arg5[%c0_17, %c0_18, %c0_19] : memref<1x4x16xf32, #tpu.memory_space<vmem>>, vector<1x4x16xf32>
    %38 = vector.shape_cast %37 : vector<1x4x16xf32> to vector<4x16xf32>
    %39 = vector.shape_cast %36 : vector<4x16xf32> to vector<1x4x16xf32>
    tpu.vector_store %arg5[%c0_17, %c0_18, %c0_19], %39 {strides = array<i32>} : memref<1x4x16xf32, #tpu.memory_space<vmem>>, vector<1x4x16xf32>,
    return
  }
  func.func @transform_0(%arg0: i32) -> (i32, i32, i32) {
    %c0_i32 = arith.constant 0 : i32
    %c0_i32_0 = arith.constant 0 : i32
    %c0_i32_1 = arith.constant 0 : i32
    return %arg0, %c0_i32, %c0_i32_0 : i32, i32, i32
  }
  func.func @transform_1(%arg0: i32) -> (i32, i32) {
    %c0_i32 = arith.constant 0 : i32
    %c0_i32_0 = arith.constant 0 : i32
    %c0_i32_1 = arith.constant 0 : i32
    return %c0_i32, %c0_i32_0 : i32, i32
  }
  func.func @transform_2(%arg0: i32) -> (i32, i32) {
    %c0_i32 = arith.constant 0 : i32
    %c0_i32_0 = arith.constant 0 : i32
    %c0_i32_1 = arith.constant 0 : i32
    return %c0_i32, %c0_i32_0 : i32, i32
  }
  func.func @transform_3(%arg0: i32) -> (i32, i32) {
    %c0_i32 = arith.constant 0 : i32
    %c0_i32_0 = arith.constant 0 : i32
    %c0_i32_1 = arith.constant 0 : i32
    return %c0_i32, %c0_i32_0 : i32, i32
  }
  func.func @transform_4(%arg0: i32) -> (i32, i32, i32) {
    %c0_i32 = arith.constant 0 : i32
    %c0_i32_0 = arith.constant 0 : i32
    %c0_i32_1 = arith.constant 0 : i32
    return %arg0, %c0_i32, %c0_i32_0 : i32, i32, i32
  }
}

module attributes {stable_mosaic.version = 11 : i64} {
  func.func @_conv_gn_kernel(%arg0: i32, %arg1: memref<1x4x16xbf16, #tpu.memory_space<vmem>>, %arg2: memref<16x16xbf16, #tpu.memory_space<vmem>>, %arg3: memref<1x16xf32, #tpu.memory_space<vmem>>, %arg4: memref<1x16xf32, #tpu.memory_space<vmem>>, %arg5: memref<1x4x16xf32, #tpu.memory_space<vmem>>) attributes {dimension_semantics = [#tpu.dimension_semantics<parallel>], iteration_bounds = array<i64: 2>, scalar_prefetch = 0 : i64, scratch_operands = 0 : i64, tpu.core_type = #tpu.core_type<tc>, window_params = [{transform_indices = @transform_0, window_bounds = array<i64: 1, 4, 16>}, {pipeline_mode = #tpu.pipeline_mode<synchronous>, transform_indices = @transform_1, window_bounds = array<i64: 16, 16>}, {pipeline_mode = #tpu.pipeline_mode<synchronous>, transform_indices = @transform_2, window_bounds = array<i64: 1, 16>}, {pipeline_mode = #tpu.pipeline_mode<synchronous>, transform_indices = @transform_3, window_bounds = array<i64: 1, 16>}, {transform_indices = @transform_4, window_bounds = array<i64: 1, 4, 16>}]} {
    %c0 = arith.constant 0 : index
    %c0_0 = arith.constant 0 : index
    %c0_1 = arith.constant 0 : index
    %0 = vector.load %arg1[%c0, %c0_0, %c0_1] : memref<1x4x16xbf16, #tpu.memory_space<vmem>>, vector<1x4x16xbf16>
    %1 = vector.shape_cast %0 : vector<1x4x16xbf16> to vector<4x16xbf16>
    %c0_2 = arith.constant 0 : index
    %c0_3 = arith.constant 0 : index
    %2 = vector.load %arg2[%c0_2, %c0_3] : memref<16x16xbf16, #tpu.memory_space<vmem>>, vector<16x16xbf16>
    %cst = arith.constant dense<0.000000e+00> : vector<4x16xf32>
    %3 = tpu.matmul %1, %2, %cst {dimension_numbers = #tpu.dot_dimension_numbers<[1], [0], [0], [1], [0, 0, 1, 1], [], []>} : vector<4x16xbf16>, vector<16x16xbf16>, vector<4x16xf32> -> vector<4x16xf32>
    %cst_4 = arith.constant dense<0.000000e+00> : vector<4xf32>
    %4 = vector.multi_reduction <add>, %3, %cst_4 [1] : vector<4x16xf32> to vector<4xf32>
    %5 = vector.shape_cast %4 : vector<4xf32> to vector<4x1xf32>
    %cst_5 = arith.constant dense<0.000000e+00> : vector<1xf32>
    %6 = vector.multi_reduction <add>, %5, %cst_5 [0] : vector<4x1xf32> to vector<1xf32>
    %7 = vector.shape_cast %6 : vector<1xf32> to vector<1x1xf32>
    %8 = arith.mulf %3, %3 : vector<4x16xf32>
    %cst_6 = arith.constant dense<0.000000e+00> : vector<4xf32>
    %9 = vector.multi_reduction <add>, %8, %cst_6 [1] : vector<4x16xf32> to vector<4xf32>
    %10 = vector.shape_cast %9 : vector<4xf32> to vector<4x1xf32>
    %cst_7 = arith.constant dense<0.000000e+00> : vector<1xf32>
    %11 = vector.multi_reduction <add>, %10, %cst_7 [0] : vector<4x1xf32> to vector<1xf32>
    %12 = vector.shape_cast %11 : vector<1xf32> to vector<1x1xf32>
    %cst_8 = arith.constant 1.562500e-02 : f32
    %13 = vector.broadcast %cst_8 : f32 to vector<1x1xf32>
    %14 = arith.mulf %7, %13 : vector<1x1xf32>
    %cst_9 = arith.constant 1.562500e-02 : f32
    %15 = vector.broadcast %cst_9 : f32 to vector<1x1xf32>
    %16 = arith.mulf %12, %15 : vector<1x1xf32>
    %17 = arith.mulf %14, %14 : vector<1x1xf32>
    %18 = arith.subf %16, %17 : vector<1x1xf32>
    %cst_10 = arith.constant 0.000000e+00 : f32
    %19 = vector.broadcast %cst_10 : f32 to vector<1x1xf32>
    %20 = arith.maximumf %18, %19 : vector<1x1xf32>
    %c0_11 = arith.constant 0 : index
    %c0_12 = arith.constant 0 : index
    %21 = vector.load %arg3[%c0_11, %c0_12] : memref<1x16xf32, #tpu.memory_space<vmem>>, vector<1x16xf32>
    %cst_13 = arith.constant 9.99999974E-6 : f32
    %22 = vector.broadcast %cst_13 : f32 to vector<1x1xf32>
    %23 = arith.addf %20, %22 : vector<1x1xf32>
    %24 = math.rsqrt %23 : vector<1x1xf32>
    %25 = vector.broadcast %24 : vector<1x1xf32> to vector<1x16xf32>
    %26 = arith.mulf %21, %25 : vector<1x16xf32>
    %c0_14 = arith.constant 0 : index
    %c0_15 = arith.constant 0 : index
    %27 = vector.load %arg4[%c0_14, %c0_15] : memref<1x16xf32, #tpu.memory_space<vmem>>, vector<1x16xf32>
    %28 = vector.broadcast %14 : vector<1x1xf32> to vector<1x16xf32>
    %29 = arith.mulf %28, %26 : vector<1x16xf32>
    %30 = arith.subf %27, %29 : vector<1x16xf32>
    %31 = vector.broadcast %26 : vector<1x16xf32> to vector<4x16xf32>
    %32 = arith.mulf %3, %31 : vector<4x16xf32>
    %33 = vector.broadcast %30 : vector<1x16xf32> to vector<4x16xf32>
    %34 = arith.addf %32, %33 : vector<4x16xf32>
    %c0_16 = arith.constant 0 : index
    %c0_17 = arith.constant 0 : index
    %c0_18 = arith.constant 0 : index
    %35 = vector.load %arg5[%c0_16, %c0_17, %c0_18] : memref<1x4x16xf32, #tpu.memory_space<vmem>>, vector<1x4x16xf32>
    %36 = vector.shape_cast %35 : vector<1x4x16xf32> to vector<4x16xf32>
    %37 = vector.shape_cast %34 : vector<4x16xf32> to vector<1x4x16xf32>
    tpu.vector_store %arg5[%c0_16, %c0_17, %c0_18], %37 {strides = array<i32>} : memref<1x4x16xf32, #tpu.memory_space<vmem>>, vector<1x4x16xf32>,
    return
  }
  func.func @transform_0(%arg0: i32) -> (i32, i32, i32) {
    %c0_i32 = arith.constant 0 : i32
    %c0_i32_0 = arith.constant 0 : i32
    %c0_i32_1 = arith.constant 0 : i32
    return %arg0, %c0_i32, %c0_i32_0 : i32, i32, i32
  }
  func.func @transform_1(%arg0: i32) -> (i32, i32) {
    %c0_i32 = arith.constant 0 : i32
    %c0_i32_0 = arith.constant 0 : i32
    %c0_i32_1 = arith.constant 0 : i32
    return %c0_i32, %c0_i32_0 : i32, i32
  }
  func.func @transform_2(%arg0: i32) -> (i32, i32) {
    %c0_i32 = arith.constant 0 : i32
    %c0_i32_0 = arith.constant 0 : i32
    %c0_i32_1 = arith.constant 0 : i32
    return %c0_i32, %c0_i32_0 : i32, i32
  }
  func.func @transform_3(%arg0: i32) -> (i32, i32) {
    %c0_i32 = arith.constant 0 : i32
    %c0_i32_0 = arith.constant 0 : i32
    %c0_i32_1 = arith.constant 0 : i32
    return %c0_i32, %c0_i32_0 : i32, i32
  }
  func.func @transform_4(%arg0: i32) -> (i32, i32, i32) {
    %c0_i32 = arith.constant 0 : i32
    %c0_i32_0 = arith.constant 0 : i32
    %c0_i32_1 = arith.constant 0 : i32
    return %arg0, %c0_i32, %c0_i32_0 : i32, i32, i32
  }
}

module attributes {stable_mosaic.version = 11 : i64} {
  func.func @_conv_gn_kernel(%arg0: i32, %arg1: memref<1x4x144xbf16, #tpu.memory_space<vmem>>, %arg2: memref<144x16xbf16, #tpu.memory_space<vmem>>, %arg3: memref<1x16xf32, #tpu.memory_space<vmem>>, %arg4: memref<1x16xf32, #tpu.memory_space<vmem>>, %arg5: memref<1x4x16xf32, #tpu.memory_space<vmem>>, %arg6: memref<1x4x16xf32, #tpu.memory_space<vmem>>) attributes {dimension_semantics = [#tpu.dimension_semantics<parallel>], iteration_bounds = array<i64: 2>, scalar_prefetch = 0 : i64, scratch_operands = 0 : i64, tpu.core_type = #tpu.core_type<tc>, window_params = [{transform_indices = @transform_0, window_bounds = array<i64: 1, 4, 144>}, {pipeline_mode = #tpu.pipeline_mode<synchronous>, transform_indices = @transform_1, window_bounds = array<i64: 144, 16>}, {pipeline_mode = #tpu.pipeline_mode<synchronous>, transform_indices = @transform_2, window_bounds = array<i64: 1, 16>}, {pipeline_mode = #tpu.pipeline_mode<synchronous>, transform_indices = @transform_3, window_bounds = array<i64: 1, 16>}, {transform_indices = @transform_4, window_bounds = array<i64: 1, 4, 16>}, {transform_indices = @transform_5, window_bounds = array<i64: 1, 4, 16>}]} {
    %c0 = arith.constant 0 : index
    %c0_0 = arith.constant 0 : index
    %c0_1 = arith.constant 0 : index
    %0 = vector.load %arg1[%c0, %c0_0, %c0_1] : memref<1x4x144xbf16, #tpu.memory_space<vmem>>, vector<1x4x144xbf16>
    %1 = vector.shape_cast %0 : vector<1x4x144xbf16> to vector<4x144xbf16>
    %c0_2 = arith.constant 0 : index
    %c0_3 = arith.constant 0 : index
    %2 = vector.load %arg2[%c0_2, %c0_3] : memref<144x16xbf16, #tpu.memory_space<vmem>>, vector<144x16xbf16>
    %cst = arith.constant dense<0.000000e+00> : vector<4x16xf32>
    %3 = tpu.matmul %1, %2, %cst {dimension_numbers = #tpu.dot_dimension_numbers<[1], [0], [0], [1], [0, 0, 1, 1], [], []>} : vector<4x144xbf16>, vector<144x16xbf16>, vector<4x16xf32> -> vector<4x16xf32>
    %cst_4 = arith.constant dense<0.000000e+00> : vector<4xf32>
    %4 = vector.multi_reduction <add>, %3, %cst_4 [1] : vector<4x16xf32> to vector<4xf32>
    %5 = vector.shape_cast %4 : vector<4xf32> to vector<4x1xf32>
    %cst_5 = arith.constant dense<0.000000e+00> : vector<1xf32>
    %6 = vector.multi_reduction <add>, %5, %cst_5 [0] : vector<4x1xf32> to vector<1xf32>
    %7 = vector.shape_cast %6 : vector<1xf32> to vector<1x1xf32>
    %8 = arith.mulf %3, %3 : vector<4x16xf32>
    %cst_6 = arith.constant dense<0.000000e+00> : vector<4xf32>
    %9 = vector.multi_reduction <add>, %8, %cst_6 [1] : vector<4x16xf32> to vector<4xf32>
    %10 = vector.shape_cast %9 : vector<4xf32> to vector<4x1xf32>
    %cst_7 = arith.constant dense<0.000000e+00> : vector<1xf32>
    %11 = vector.multi_reduction <add>, %10, %cst_7 [0] : vector<4x1xf32> to vector<1xf32>
    %12 = vector.shape_cast %11 : vector<1xf32> to vector<1x1xf32>
    %cst_8 = arith.constant 1.562500e-02 : f32
    %13 = vector.broadcast %cst_8 : f32 to vector<1x1xf32>
    %14 = arith.mulf %7, %13 : vector<1x1xf32>
    %cst_9 = arith.constant 1.562500e-02 : f32
    %15 = vector.broadcast %cst_9 : f32 to vector<1x1xf32>
    %16 = arith.mulf %12, %15 : vector<1x1xf32>
    %17 = arith.mulf %14, %14 : vector<1x1xf32>
    %18 = arith.subf %16, %17 : vector<1x1xf32>
    %cst_10 = arith.constant 0.000000e+00 : f32
    %19 = vector.broadcast %cst_10 : f32 to vector<1x1xf32>
    %20 = arith.maximumf %18, %19 : vector<1x1xf32>
    %c0_11 = arith.constant 0 : index
    %c0_12 = arith.constant 0 : index
    %21 = vector.load %arg3[%c0_11, %c0_12] : memref<1x16xf32, #tpu.memory_space<vmem>>, vector<1x16xf32>
    %cst_13 = arith.constant 9.99999974E-6 : f32
    %22 = vector.broadcast %cst_13 : f32 to vector<1x1xf32>
    %23 = arith.addf %20, %22 : vector<1x1xf32>
    %24 = math.rsqrt %23 : vector<1x1xf32>
    %25 = vector.broadcast %24 : vector<1x1xf32> to vector<1x16xf32>
    %26 = arith.mulf %21, %25 : vector<1x16xf32>
    %c0_14 = arith.constant 0 : index
    %c0_15 = arith.constant 0 : index
    %27 = vector.load %arg4[%c0_14, %c0_15] : memref<1x16xf32, #tpu.memory_space<vmem>>, vector<1x16xf32>
    %28 = vector.broadcast %14 : vector<1x1xf32> to vector<1x16xf32>
    %29 = arith.mulf %28, %26 : vector<1x16xf32>
    %30 = arith.subf %27, %29 : vector<1x16xf32>
    %31 = vector.broadcast %26 : vector<1x16xf32> to vector<4x16xf32>
    %32 = arith.mulf %3, %31 : vector<4x16xf32>
    %33 = vector.broadcast %30 : vector<1x16xf32> to vector<4x16xf32>
    %34 = arith.addf %32, %33 : vector<4x16xf32>
    %c0_16 = arith.constant 0 : index
    %c0_17 = arith.constant 0 : index
    %c0_18 = arith.constant 0 : index
    %35 = vector.load %arg5[%c0_16, %c0_17, %c0_18] : memref<1x4x16xf32, #tpu.memory_space<vmem>>, vector<1x4x16xf32>
    %36 = vector.shape_cast %35 : vector<1x4x16xf32> to vector<4x16xf32>
    %37 = arith.addf %34, %36 : vector<4x16xf32>
    %cst_19 = arith.constant 5.000000e-01 : f32
    %38 = vector.broadcast %cst_19 : f32 to vector<4x16xf32>
    %39 = arith.mulf %38, %37 : vector<4x16xf32>
    %cst_20 = arith.constant 0.707106769 : f32
    %40 = vector.broadcast %cst_20 : f32 to vector<4x16xf32>
    %41 = arith.mulf %37, %40 : vector<4x16xf32>
    %cst_21 = arith.constant 0.000000e+00 : f32
    %42 = vector.broadcast %cst_21 : f32 to vector<4x16xf32>
    %43 = arith.cmpf oge, %41, %42 : vector<4x16xf32>
    %cst_22 = arith.constant 1.000000e+00 : f32
    %cst_23 = arith.constant -1.000000e+00 : f32
    %44 = vector.broadcast %cst_22 : f32 to vector<4x16xf32>
    %45 = vector.broadcast %cst_23 : f32 to vector<4x16xf32>
    %46 = arith.select %43, %44, %45 : vector<4x16xi1>, vector<4x16xf32>
    %47 = math.absf %41 : vector<4x16xf32>
    %cst_24 = arith.constant 0.327591091 : f32
    %48 = vector.broadcast %cst_24 : f32 to vector<4x16xf32>
    %49 = arith.mulf %48, %47 : vector<4x16xf32>
    %cst_25 = arith.constant 1.000000e+00 : f32
    %50 = vector.broadcast %cst_25 : f32 to vector<4x16xf32>
    %51 = arith.addf %50, %49 : vector<4x16xf32>
    %cst_26 = arith.constant 1.000000e+00 : f32
    %52 = vector.broadcast %cst_26 : f32 to vector<4x16xf32>
    %53 = arith.divf %52, %51 : vector<4x16xf32>
    %cst_27 = arith.constant 1.06140542 : f32
    %54 = vector.broadcast %cst_27 : f32 to vector<4x16xf32>
    %55 = arith.mulf %54, %53 : vector<4x16xf32>
    %cst_28 = arith.constant -1.45315206 : f32
    %56 = vector.broadcast %cst_28 : f32 to vector<4x16xf32>
    %57 = arith.addf %55, %56 : vector<4x16xf32>
    %58 = arith.mulf %57, %53 : vector<4x16xf32>
    %cst_29 = arith.constant 1.42141378 : f32
    %59 = vector.broadcast %cst_29 : f32 to vector<4x16xf32>
    %60 = arith.addf %58, %59 : vector<4x16xf32>
    %61 = arith.mulf %60, %53 : vector<4x16xf32>
    %cst_30 = arith.constant -0.284496725 : f32
    %62 = vector.broadcast %cst_30 : f32 to vector<4x16xf32>
    %63 = arith.addf %61, %62 : vector<4x16xf32>
    %64 = arith.mulf %63, %53 : vector<4x16xf32>
    %cst_31 = arith.constant 0.254829586 : f32
    %65 = vector.broadcast %cst_31 : f32 to vector<4x16xf32>
    %66 = arith.addf %64, %65 : vector<4x16xf32>
    %67 = arith.mulf %66, %53 : vector<4x16xf32>
    %cst_32 = arith.constant 0.000000e+00 : f32
    %68 = vector.broadcast %cst_32 : f32 to vector<4x16xf32>
    %69 = arith.subf %68, %47 : vector<4x16xf32>
    %70 = arith.mulf %69, %47 : vector<4x16xf32>
    %71 = math.exp %70 : vector<4x16xf32>
    %72 = arith.mulf %67, %71 : vector<4x16xf32>
    %cst_33 = arith.constant 1.000000e+00 : f32
    %73 = vector.broadcast %cst_33 : f32 to vector<4x16xf32>
    %74 = arith.subf %73, %72 : vector<4x16xf32>
    %75 = arith.mulf %46, %74 : vector<4x16xf32>
    %cst_34 = arith.constant 1.000000e+00 : f32
    %76 = vector.broadcast %cst_34 : f32 to vector<4x16xf32>
    %77 = arith.addf %76, %75 : vector<4x16xf32>
    %78 = arith.mulf %39, %77 : vector<4x16xf32>
    %c0_35 = arith.constant 0 : index
    %c0_36 = arith.constant 0 : index
    %c0_37 = arith.constant 0 : index
    %79 = vector.load %arg6[%c0_35, %c0_36, %c0_37] : memref<1x4x16xf32, #tpu.memory_space<vmem>>, vector<1x4x16xf32>
    %80 = vector.shape_cast %79 : vector<1x4x16xf32> to vector<4x16xf32>
    %81 = vector.shape_cast %78 : vector<4x16xf32> to vector<1x4x16xf32>
    tpu.vector_store %arg6[%c0_35, %c0_36, %c0_37], %81 {strides = array<i32>} : memref<1x4x16xf32, #tpu.memory_space<vmem>>, vector<1x4x16xf32>,
    return
  }
  func.func @transform_0(%arg0: i32) -> (i32, i32, i32) {
    %c0_i32 = arith.constant 0 : i32
    %c0_i32_0 = arith.constant 0 : i32
    %c0_i32_1 = arith.constant 0 : i32
    return %arg0, %c0_i32, %c0_i32_0 : i32, i32, i32
  }
  func.func @transform_1(%arg0: i32) -> (i32, i32) {
    %c0_i32 = arith.constant 0 : i32
    %c0_i32_0 = arith.constant 0 : i32
    %c0_i32_1 = arith.constant 0 : i32
    return %c0_i32, %c0_i32_0 : i32, i32
  }
  func.func @transform_2(%arg0: i32) -> (i32, i32) {
    %c0_i32 = arith.constant 0 : i32
    %c0_i32_0 = arith.constant 0 : i32
    %c0_i32_1 = arith.constant 0 : i32
    return %c0_i32, %c0_i32_0 : i32, i32
  }
  func.func @transform_3(%arg0: i32) -> (i32, i32) {
    %c0_i32 = arith.constant 0 : i32
    %c0_i32_0 = arith.constant 0 : i32
    %c0_i32_1 = arith.constant 0 : i32
    return %c0_i32, %c0_i32_0 : i32, i32
  }
  func.func @transform_4(%arg0: i32) -> (i32, i32, i32) {
    %c0_i32 = arith.constant 0 : i32
    %c0_i32_0 = arith.constant 0 : i32
    %c0_i32_1 = arith.constant 0 : i32
    return %arg0, %c0_i32, %c0_i32_0 : i32, i32, i32
  }
  func.func @transform_5(%arg0: i32) -> (i32, i32, i32) {
    %c0_i32 = arith.constant 0 : i32
    %c0_i32_0 = arith.constant 0 : i32
    %c0_i32_1 = arith.constant 0 : i32
    return %arg0, %c0_i32, %c0_i32_0 : i32, i32, i32
  }
}

module attributes {stable_mosaic.version = 11 : i64} {
  func.func @_conv_gn_kernel(%arg0: i32, %arg1: memref<1x1x144xbf16, #tpu.memory_space<vmem>>, %arg2: memref<144x32xbf16, #tpu.memory_space<vmem>>, %arg3: memref<1x32xf32, #tpu.memory_space<vmem>>, %arg4: memref<1x32xf32, #tpu.memory_space<vmem>>, %arg5: memref<1x1x32xf32, #tpu.memory_space<vmem>>) attributes {dimension_semantics = [#tpu.dimension_semantics<parallel>], iteration_bounds = array<i64: 2>, scalar_prefetch = 0 : i64, scratch_operands = 0 : i64, tpu.core_type = #tpu.core_type<tc>, window_params = [{transform_indices = @transform_0, window_bounds = array<i64: 1, 1, 144>}, {pipeline_mode = #tpu.pipeline_mode<synchronous>, transform_indices = @transform_1, window_bounds = array<i64: 144, 32>}, {pipeline_mode = #tpu.pipeline_mode<synchronous>, transform_indices = @transform_2, window_bounds = array<i64: 1, 32>}, {pipeline_mode = #tpu.pipeline_mode<synchronous>, transform_indices = @transform_3, window_bounds = array<i64: 1, 32>}, {transform_indices = @transform_4, window_bounds = array<i64: 1, 1, 32>}]} {
    %c0 = arith.constant 0 : index
    %c0_0 = arith.constant 0 : index
    %c0_1 = arith.constant 0 : index
    %0 = vector.load %arg1[%c0, %c0_0, %c0_1] : memref<1x1x144xbf16, #tpu.memory_space<vmem>>, vector<1x1x144xbf16>
    %1 = vector.shape_cast %0 : vector<1x1x144xbf16> to vector<1x144xbf16>
    %c0_2 = arith.constant 0 : index
    %c0_3 = arith.constant 0 : index
    %2 = vector.load %arg2[%c0_2, %c0_3] : memref<144x32xbf16, #tpu.memory_space<vmem>>, vector<144x32xbf16>
    %cst = arith.constant dense<0.000000e+00> : vector<1x32xf32>
    %3 = tpu.matmul %1, %2, %cst {dimension_numbers = #tpu.dot_dimension_numbers<[1], [0], [0], [1], [0, 0, 1, 1], [], []>} : vector<1x144xbf16>, vector<144x32xbf16>, vector<1x32xf32> -> vector<1x32xf32>
    %cst_4 = arith.constant dense<0.000000e+00> : vector<1xf32>
    %4 = vector.multi_reduction <add>, %3, %cst_4 [1] : vector<1x32xf32> to vector<1xf32>
    %5 = vector.shape_cast %4 : vector<1xf32> to vector<1x1xf32>
    %cst_5 = arith.constant dense<0.000000e+00> : vector<1xf32>
    %6 = vector.multi_reduction <add>, %5, %cst_5 [0] : vector<1x1xf32> to vector<1xf32>
    %7 = vector.shape_cast %6 : vector<1xf32> to vector<1x1xf32>
    %8 = arith.mulf %3, %3 : vector<1x32xf32>
    %cst_6 = arith.constant dense<0.000000e+00> : vector<1xf32>
    %9 = vector.multi_reduction <add>, %8, %cst_6 [1] : vector<1x32xf32> to vector<1xf32>
    %10 = vector.shape_cast %9 : vector<1xf32> to vector<1x1xf32>
    %cst_7 = arith.constant dense<0.000000e+00> : vector<1xf32>
    %11 = vector.multi_reduction <add>, %10, %cst_7 [0] : vector<1x1xf32> to vector<1xf32>
    %12 = vector.shape_cast %11 : vector<1xf32> to vector<1x1xf32>
    %cst_8 = arith.constant 3.125000e-02 : f32
    %13 = vector.broadcast %cst_8 : f32 to vector<1x1xf32>
    %14 = arith.mulf %7, %13 : vector<1x1xf32>
    %cst_9 = arith.constant 3.125000e-02 : f32
    %15 = vector.broadcast %cst_9 : f32 to vector<1x1xf32>
    %16 = arith.mulf %12, %15 : vector<1x1xf32>
    %17 = arith.mulf %14, %14 : vector<1x1xf32>
    %18 = arith.subf %16, %17 : vector<1x1xf32>
    %cst_10 = arith.constant 0.000000e+00 : f32
    %19 = vector.broadcast %cst_10 : f32 to vector<1x1xf32>
    %20 = arith.maximumf %18, %19 : vector<1x1xf32>
    %c0_11 = arith.constant 0 : index
    %c0_12 = arith.constant 0 : index
    %21 = vector.load %arg3[%c0_11, %c0_12] : memref<1x32xf32, #tpu.memory_space<vmem>>, vector<1x32xf32>
    %cst_13 = arith.constant 9.99999974E-6 : f32
    %22 = vector.broadcast %cst_13 : f32 to vector<1x1xf32>
    %23 = arith.addf %20, %22 : vector<1x1xf32>
    %24 = math.rsqrt %23 : vector<1x1xf32>
    %25 = vector.broadcast %24 : vector<1x1xf32> to vector<1x32xf32>
    %26 = arith.mulf %21, %25 : vector<1x32xf32>
    %c0_14 = arith.constant 0 : index
    %c0_15 = arith.constant 0 : index
    %27 = vector.load %arg4[%c0_14, %c0_15] : memref<1x32xf32, #tpu.memory_space<vmem>>, vector<1x32xf32>
    %28 = vector.broadcast %14 : vector<1x1xf32> to vector<1x32xf32>
    %29 = arith.mulf %28, %26 : vector<1x32xf32>
    %30 = arith.subf %27, %29 : vector<1x32xf32>
    %31 = arith.mulf %3, %26 : vector<1x32xf32>
    %32 = arith.addf %31, %30 : vector<1x32xf32>
    %cst_16 = arith.constant 0.000000e+00 : f32
    %33 = vector.broadcast %cst_16 : f32 to vector<1x32xf32>
    %34 = arith.maximumf %32, %33 : vector<1x32xf32>
    %c0_17 = arith.constant 0 : index
    %c0_18 = arith.constant 0 : index
    %c0_19 = arith.constant 0 : index
    %35 = vector.load %arg5[%c0_17, %c0_18, %c0_19] : memref<1x1x32xf32, #tpu.memory_space<vmem>>, vector<1x1x32xf32>
    %36 = vector.shape_cast %35 : vector<1x1x32xf32> to vector<1x32xf32>
    %37 = vector.shape_cast %34 : vector<1x32xf32> to vector<1x1x32xf32>
    tpu.vector_store %arg5[%c0_17, %c0_18, %c0_19], %37 {strides = array<i32>} : memref<1x1x32xf32, #tpu.memory_space<vmem>>, vector<1x1x32xf32>,
    return
  }
  func.func @transform_0(%arg0: i32) -> (i32, i32, i32) {
    %c0_i32 = arith.constant 0 : i32
    %c0_i32_0 = arith.constant 0 : i32
    %c0_i32_1 = arith.constant 0 : i32
    return %arg0, %c0_i32, %c0_i32_0 : i32, i32, i32
  }
  func.func @transform_1(%arg0: i32) -> (i32, i32) {
    %c0_i32 = arith.constant 0 : i32
    %c0_i32_0 = arith.constant 0 : i32
    %c0_i32_1 = arith.constant 0 : i32
    return %c0_i32, %c0_i32_0 : i32, i32
  }
  func.func @transform_2(%arg0: i32) -> (i32, i32) {
    %c0_i32 = arith.constant 0 : i32
    %c0_i32_0 = arith.constant 0 : i32
    %c0_i32_1 = arith.constant 0 : i32
    return %c0_i32, %c0_i32_0 : i32, i32
  }
  func.func @transform_3(%arg0: i32) -> (i32, i32) {
    %c0_i32 = arith.constant 0 : i32
    %c0_i32_0 = arith.constant 0 : i32
    %c0_i32_1 = arith.constant 0 : i32
    return %c0_i32, %c0_i32_0 : i32, i32
  }
  func.func @transform_4(%arg0: i32) -> (i32, i32, i32) {
    %c0_i32 = arith.constant 0 : i32
    %c0_i32_0 = arith.constant 0 : i32
    %c0_i32_1 = arith.constant 0 : i32
    return %arg0, %c0_i32, %c0_i32_0 : i32, i32, i32
  }
}

module attributes {stable_mosaic.version = 11 : i64} {
  func.func @_conv_gn_kernel(%arg0: i32, %arg1: memref<1x1x16xbf16, #tpu.memory_space<vmem>>, %arg2: memref<16x32xbf16, #tpu.memory_space<vmem>>, %arg3: memref<1x32xf32, #tpu.memory_space<vmem>>, %arg4: memref<1x32xf32, #tpu.memory_space<vmem>>, %arg5: memref<1x1x32xf32, #tpu.memory_space<vmem>>) attributes {dimension_semantics = [#tpu.dimension_semantics<parallel>], iteration_bounds = array<i64: 2>, scalar_prefetch = 0 : i64, scratch_operands = 0 : i64, tpu.core_type = #tpu.core_type<tc>, window_params = [{transform_indices = @transform_0, window_bounds = array<i64: 1, 1, 16>}, {pipeline_mode = #tpu.pipeline_mode<synchronous>, transform_indices = @transform_1, window_bounds = array<i64: 16, 32>}, {pipeline_mode = #tpu.pipeline_mode<synchronous>, transform_indices = @transform_2, window_bounds = array<i64: 1, 32>}, {pipeline_mode = #tpu.pipeline_mode<synchronous>, transform_indices = @transform_3, window_bounds = array<i64: 1, 32>}, {transform_indices = @transform_4, window_bounds = array<i64: 1, 1, 32>}]} {
    %c0 = arith.constant 0 : index
    %c0_0 = arith.constant 0 : index
    %c0_1 = arith.constant 0 : index
    %0 = vector.load %arg1[%c0, %c0_0, %c0_1] : memref<1x1x16xbf16, #tpu.memory_space<vmem>>, vector<1x1x16xbf16>
    %1 = vector.shape_cast %0 : vector<1x1x16xbf16> to vector<1x16xbf16>
    %c0_2 = arith.constant 0 : index
    %c0_3 = arith.constant 0 : index
    %2 = vector.load %arg2[%c0_2, %c0_3] : memref<16x32xbf16, #tpu.memory_space<vmem>>, vector<16x32xbf16>
    %cst = arith.constant dense<0.000000e+00> : vector<1x32xf32>
    %3 = tpu.matmul %1, %2, %cst {dimension_numbers = #tpu.dot_dimension_numbers<[1], [0], [0], [1], [0, 0, 1, 1], [], []>} : vector<1x16xbf16>, vector<16x32xbf16>, vector<1x32xf32> -> vector<1x32xf32>
    %cst_4 = arith.constant dense<0.000000e+00> : vector<1xf32>
    %4 = vector.multi_reduction <add>, %3, %cst_4 [1] : vector<1x32xf32> to vector<1xf32>
    %5 = vector.shape_cast %4 : vector<1xf32> to vector<1x1xf32>
    %cst_5 = arith.constant dense<0.000000e+00> : vector<1xf32>
    %6 = vector.multi_reduction <add>, %5, %cst_5 [0] : vector<1x1xf32> to vector<1xf32>
    %7 = vector.shape_cast %6 : vector<1xf32> to vector<1x1xf32>
    %8 = arith.mulf %3, %3 : vector<1x32xf32>
    %cst_6 = arith.constant dense<0.000000e+00> : vector<1xf32>
    %9 = vector.multi_reduction <add>, %8, %cst_6 [1] : vector<1x32xf32> to vector<1xf32>
    %10 = vector.shape_cast %9 : vector<1xf32> to vector<1x1xf32>
    %cst_7 = arith.constant dense<0.000000e+00> : vector<1xf32>
    %11 = vector.multi_reduction <add>, %10, %cst_7 [0] : vector<1x1xf32> to vector<1xf32>
    %12 = vector.shape_cast %11 : vector<1xf32> to vector<1x1xf32>
    %cst_8 = arith.constant 3.125000e-02 : f32
    %13 = vector.broadcast %cst_8 : f32 to vector<1x1xf32>
    %14 = arith.mulf %7, %13 : vector<1x1xf32>
    %cst_9 = arith.constant 3.125000e-02 : f32
    %15 = vector.broadcast %cst_9 : f32 to vector<1x1xf32>
    %16 = arith.mulf %12, %15 : vector<1x1xf32>
    %17 = arith.mulf %14, %14 : vector<1x1xf32>
    %18 = arith.subf %16, %17 : vector<1x1xf32>
    %cst_10 = arith.constant 0.000000e+00 : f32
    %19 = vector.broadcast %cst_10 : f32 to vector<1x1xf32>
    %20 = arith.maximumf %18, %19 : vector<1x1xf32>
    %c0_11 = arith.constant 0 : index
    %c0_12 = arith.constant 0 : index
    %21 = vector.load %arg3[%c0_11, %c0_12] : memref<1x32xf32, #tpu.memory_space<vmem>>, vector<1x32xf32>
    %cst_13 = arith.constant 9.99999974E-6 : f32
    %22 = vector.broadcast %cst_13 : f32 to vector<1x1xf32>
    %23 = arith.addf %20, %22 : vector<1x1xf32>
    %24 = math.rsqrt %23 : vector<1x1xf32>
    %25 = vector.broadcast %24 : vector<1x1xf32> to vector<1x32xf32>
    %26 = arith.mulf %21, %25 : vector<1x32xf32>
    %c0_14 = arith.constant 0 : index
    %c0_15 = arith.constant 0 : index
    %27 = vector.load %arg4[%c0_14, %c0_15] : memref<1x32xf32, #tpu.memory_space<vmem>>, vector<1x32xf32>
    %28 = vector.broadcast %14 : vector<1x1xf32> to vector<1x32xf32>
    %29 = arith.mulf %28, %26 : vector<1x32xf32>
    %30 = arith.subf %27, %29 : vector<1x32xf32>
    %31 = arith.mulf %3, %26 : vector<1x32xf32>
    %32 = arith.addf %31, %30 : vector<1x32xf32>
    %c0_16 = arith.constant 0 : index
    %c0_17 = arith.constant 0 : index
    %c0_18 = arith.constant 0 : index
    %33 = vector.load %arg5[%c0_16, %c0_17, %c0_18] : memref<1x1x32xf32, #tpu.memory_space<vmem>>, vector<1x1x32xf32>
    %34 = vector.shape_cast %33 : vector<1x1x32xf32> to vector<1x32xf32>
    %35 = vector.shape_cast %32 : vector<1x32xf32> to vector<1x1x32xf32>
    tpu.vector_store %arg5[%c0_16, %c0_17, %c0_18], %35 {strides = array<i32>} : memref<1x1x32xf32, #tpu.memory_space<vmem>>, vector<1x1x32xf32>,
    return
  }
  func.func @transform_0(%arg0: i32) -> (i32, i32, i32) {
    %c0_i32 = arith.constant 0 : i32
    %c0_i32_0 = arith.constant 0 : i32
    %c0_i32_1 = arith.constant 0 : i32
    return %arg0, %c0_i32, %c0_i32_0 : i32, i32, i32
  }
  func.func @transform_1(%arg0: i32) -> (i32, i32) {
    %c0_i32 = arith.constant 0 : i32
    %c0_i32_0 = arith.constant 0 : i32
    %c0_i32_1 = arith.constant 0 : i32
    return %c0_i32, %c0_i32_0 : i32, i32
  }
  func.func @transform_2(%arg0: i32) -> (i32, i32) {
    %c0_i32 = arith.constant 0 : i32
    %c0_i32_0 = arith.constant 0 : i32
    %c0_i32_1 = arith.constant 0 : i32
    return %c0_i32, %c0_i32_0 : i32, i32
  }
  func.func @transform_3(%arg0: i32) -> (i32, i32) {
    %c0_i32 = arith.constant 0 : i32
    %c0_i32_0 = arith.constant 0 : i32
    %c0_i32_1 = arith.constant 0 : i32
    return %c0_i32, %c0_i32_0 : i32, i32
  }
  func.func @transform_4(%arg0: i32) -> (i32, i32, i32) {
    %c0_i32 = arith.constant 0 : i32
    %c0_i32_0 = arith.constant 0 : i32
    %c0_i32_1 = arith.constant 0 : i32
    return %arg0, %c0_i32, %c0_i32_0 : i32, i32, i32
  }
}

module attributes {stable_mosaic.version = 11 : i64} {
  func.func @_conv_gn_kernel(%arg0: i32, %arg1: memref<1x1x288xbf16, #tpu.memory_space<vmem>>, %arg2: memref<288x32xbf16, #tpu.memory_space<vmem>>, %arg3: memref<1x32xf32, #tpu.memory_space<vmem>>, %arg4: memref<1x32xf32, #tpu.memory_space<vmem>>, %arg5: memref<1x1x32xf32, #tpu.memory_space<vmem>>, %arg6: memref<1x1x32xf32, #tpu.memory_space<vmem>>) attributes {dimension_semantics = [#tpu.dimension_semantics<parallel>], iteration_bounds = array<i64: 2>, scalar_prefetch = 0 : i64, scratch_operands = 0 : i64, tpu.core_type = #tpu.core_type<tc>, window_params = [{transform_indices = @transform_0, window_bounds = array<i64: 1, 1, 288>}, {pipeline_mode = #tpu.pipeline_mode<synchronous>, transform_indices = @transform_1, window_bounds = array<i64: 288, 32>}, {pipeline_mode = #tpu.pipeline_mode<synchronous>, transform_indices = @transform_2, window_bounds = array<i64: 1, 32>}, {pipeline_mode = #tpu.pipeline_mode<synchronous>, transform_indices = @transform_3, window_bounds = array<i64: 1, 32>}, {transform_indices = @transform_4, window_bounds = array<i64: 1, 1, 32>}, {transform_indices = @transform_5, window_bounds = array<i64: 1, 1, 32>}]} {
    %c0 = arith.constant 0 : index
    %c0_0 = arith.constant 0 : index
    %c0_1 = arith.constant 0 : index
    %0 = vector.load %arg1[%c0, %c0_0, %c0_1] : memref<1x1x288xbf16, #tpu.memory_space<vmem>>, vector<1x1x288xbf16>
    %1 = vector.shape_cast %0 : vector<1x1x288xbf16> to vector<1x288xbf16>
    %c0_2 = arith.constant 0 : index
    %c0_3 = arith.constant 0 : index
    %2 = vector.load %arg2[%c0_2, %c0_3] : memref<288x32xbf16, #tpu.memory_space<vmem>>, vector<288x32xbf16>
    %cst = arith.constant dense<0.000000e+00> : vector<1x32xf32>
    %3 = tpu.matmul %1, %2, %cst {dimension_numbers = #tpu.dot_dimension_numbers<[1], [0], [0], [1], [0, 0, 1, 1], [], []>} : vector<1x288xbf16>, vector<288x32xbf16>, vector<1x32xf32> -> vector<1x32xf32>
    %cst_4 = arith.constant dense<0.000000e+00> : vector<1xf32>
    %4 = vector.multi_reduction <add>, %3, %cst_4 [1] : vector<1x32xf32> to vector<1xf32>
    %5 = vector.shape_cast %4 : vector<1xf32> to vector<1x1xf32>
    %cst_5 = arith.constant dense<0.000000e+00> : vector<1xf32>
    %6 = vector.multi_reduction <add>, %5, %cst_5 [0] : vector<1x1xf32> to vector<1xf32>
    %7 = vector.shape_cast %6 : vector<1xf32> to vector<1x1xf32>
    %8 = arith.mulf %3, %3 : vector<1x32xf32>
    %cst_6 = arith.constant dense<0.000000e+00> : vector<1xf32>
    %9 = vector.multi_reduction <add>, %8, %cst_6 [1] : vector<1x32xf32> to vector<1xf32>
    %10 = vector.shape_cast %9 : vector<1xf32> to vector<1x1xf32>
    %cst_7 = arith.constant dense<0.000000e+00> : vector<1xf32>
    %11 = vector.multi_reduction <add>, %10, %cst_7 [0] : vector<1x1xf32> to vector<1xf32>
    %12 = vector.shape_cast %11 : vector<1xf32> to vector<1x1xf32>
    %cst_8 = arith.constant 3.125000e-02 : f32
    %13 = vector.broadcast %cst_8 : f32 to vector<1x1xf32>
    %14 = arith.mulf %7, %13 : vector<1x1xf32>
    %cst_9 = arith.constant 3.125000e-02 : f32
    %15 = vector.broadcast %cst_9 : f32 to vector<1x1xf32>
    %16 = arith.mulf %12, %15 : vector<1x1xf32>
    %17 = arith.mulf %14, %14 : vector<1x1xf32>
    %18 = arith.subf %16, %17 : vector<1x1xf32>
    %cst_10 = arith.constant 0.000000e+00 : f32
    %19 = vector.broadcast %cst_10 : f32 to vector<1x1xf32>
    %20 = arith.maximumf %18, %19 : vector<1x1xf32>
    %c0_11 = arith.constant 0 : index
    %c0_12 = arith.constant 0 : index
    %21 = vector.load %arg3[%c0_11, %c0_12] : memref<1x32xf32, #tpu.memory_space<vmem>>, vector<1x32xf32>
    %cst_13 = arith.constant 9.99999974E-6 : f32
    %22 = vector.broadcast %cst_13 : f32 to vector<1x1xf32>
    %23 = arith.addf %20, %22 : vector<1x1xf32>
    %24 = math.rsqrt %23 : vector<1x1xf32>
    %25 = vector.broadcast %24 : vector<1x1xf32> to vector<1x32xf32>
    %26 = arith.mulf %21, %25 : vector<1x32xf32>
    %c0_14 = arith.constant 0 : index
    %c0_15 = arith.constant 0 : index
    %27 = vector.load %arg4[%c0_14, %c0_15] : memref<1x32xf32, #tpu.memory_space<vmem>>, vector<1x32xf32>
    %28 = vector.broadcast %14 : vector<1x1xf32> to vector<1x32xf32>
    %29 = arith.mulf %28, %26 : vector<1x32xf32>
    %30 = arith.subf %27, %29 : vector<1x32xf32>
    %31 = arith.mulf %3, %26 : vector<1x32xf32>
    %32 = arith.addf %31, %30 : vector<1x32xf32>
    %c0_16 = arith.constant 0 : index
    %c0_17 = arith.constant 0 : index
    %c0_18 = arith.constant 0 : index
    %33 = vector.load %arg5[%c0_16, %c0_17, %c0_18] : memref<1x1x32xf32, #tpu.memory_space<vmem>>, vector<1x1x32xf32>
    %34 = vector.shape_cast %33 : vector<1x1x32xf32> to vector<1x32xf32>
    %35 = arith.addf %32, %34 : vector<1x32xf32>
    %cst_19 = arith.constant 5.000000e-01 : f32
    %36 = vector.broadcast %cst_19 : f32 to vector<1x32xf32>
    %37 = arith.mulf %36, %35 : vector<1x32xf32>
    %cst_20 = arith.constant 0.707106769 : f32
    %38 = vector.broadcast %cst_20 : f32 to vector<1x32xf32>
    %39 = arith.mulf %35, %38 : vector<1x32xf32>
    %cst_21 = arith.constant 0.000000e+00 : f32
    %40 = vector.broadcast %cst_21 : f32 to vector<1x32xf32>
    %41 = arith.cmpf oge, %39, %40 : vector<1x32xf32>
    %cst_22 = arith.constant 1.000000e+00 : f32
    %cst_23 = arith.constant -1.000000e+00 : f32
    %42 = vector.broadcast %cst_22 : f32 to vector<1x32xf32>
    %43 = vector.broadcast %cst_23 : f32 to vector<1x32xf32>
    %44 = arith.select %41, %42, %43 : vector<1x32xi1>, vector<1x32xf32>
    %45 = math.absf %39 : vector<1x32xf32>
    %cst_24 = arith.constant 0.327591091 : f32
    %46 = vector.broadcast %cst_24 : f32 to vector<1x32xf32>
    %47 = arith.mulf %46, %45 : vector<1x32xf32>
    %cst_25 = arith.constant 1.000000e+00 : f32
    %48 = vector.broadcast %cst_25 : f32 to vector<1x32xf32>
    %49 = arith.addf %48, %47 : vector<1x32xf32>
    %cst_26 = arith.constant 1.000000e+00 : f32
    %50 = vector.broadcast %cst_26 : f32 to vector<1x32xf32>
    %51 = arith.divf %50, %49 : vector<1x32xf32>
    %cst_27 = arith.constant 1.06140542 : f32
    %52 = vector.broadcast %cst_27 : f32 to vector<1x32xf32>
    %53 = arith.mulf %52, %51 : vector<1x32xf32>
    %cst_28 = arith.constant -1.45315206 : f32
    %54 = vector.broadcast %cst_28 : f32 to vector<1x32xf32>
    %55 = arith.addf %53, %54 : vector<1x32xf32>
    %56 = arith.mulf %55, %51 : vector<1x32xf32>
    %cst_29 = arith.constant 1.42141378 : f32
    %57 = vector.broadcast %cst_29 : f32 to vector<1x32xf32>
    %58 = arith.addf %56, %57 : vector<1x32xf32>
    %59 = arith.mulf %58, %51 : vector<1x32xf32>
    %cst_30 = arith.constant -0.284496725 : f32
    %60 = vector.broadcast %cst_30 : f32 to vector<1x32xf32>
    %61 = arith.addf %59, %60 : vector<1x32xf32>
    %62 = arith.mulf %61, %51 : vector<1x32xf32>
    %cst_31 = arith.constant 0.254829586 : f32
    %63 = vector.broadcast %cst_31 : f32 to vector<1x32xf32>
    %64 = arith.addf %62, %63 : vector<1x32xf32>
    %65 = arith.mulf %64, %51 : vector<1x32xf32>
    %cst_32 = arith.constant 0.000000e+00 : f32
    %66 = vector.broadcast %cst_32 : f32 to vector<1x32xf32>
    %67 = arith.subf %66, %45 : vector<1x32xf32>
    %68 = arith.mulf %67, %45 : vector<1x32xf32>
    %69 = math.exp %68 : vector<1x32xf32>
    %70 = arith.mulf %65, %69 : vector<1x32xf32>
    %cst_33 = arith.constant 1.000000e+00 : f32
    %71 = vector.broadcast %cst_33 : f32 to vector<1x32xf32>
    %72 = arith.subf %71, %70 : vector<1x32xf32>
    %73 = arith.mulf %44, %72 : vector<1x32xf32>
    %cst_34 = arith.constant 1.000000e+00 : f32
    %74 = vector.broadcast %cst_34 : f32 to vector<1x32xf32>
    %75 = arith.addf %74, %73 : vector<1x32xf32>
    %76 = arith.mulf %37, %75 : vector<1x32xf32>
    %c0_35 = arith.constant 0 : index
    %c0_36 = arith.constant 0 : index
    %c0_37 = arith.constant 0 : index
    %77 = vector.load %arg6[%c0_35, %c0_36, %c0_37] : memref<1x1x32xf32, #tpu.memory_space<vmem>>, vector<1x1x32xf32>
    %78 = vector.shape_cast %77 : vector<1x1x32xf32> to vector<1x32xf32>
    %79 = vector.shape_cast %76 : vector<1x32xf32> to vector<1x1x32xf32>
    tpu.vector_store %arg6[%c0_35, %c0_36, %c0_37], %79 {strides = array<i32>} : memref<1x1x32xf32, #tpu.memory_space<vmem>>, vector<1x1x32xf32>,
    return
  }
  func.func @transform_0(%arg0: i32) -> (i32, i32, i32) {
    %c0_i32 = arith.constant 0 : i32
    %c0_i32_0 = arith.constant 0 : i32
    %c0_i32_1 = arith.constant 0 : i32
    return %arg0, %c0_i32, %c0_i32_0 : i32, i32, i32
  }
  func.func @transform_1(%arg0: i32) -> (i32, i32) {
    %c0_i32 = arith.constant 0 : i32
    %c0_i32_0 = arith.constant 0 : i32
    %c0_i32_1 = arith.constant 0 : i32
    return %c0_i32, %c0_i32_0 : i32, i32
  }
  func.func @transform_2(%arg0: i32) -> (i32, i32) {
    %c0_i32 = arith.constant 0 : i32
    %c0_i32_0 = arith.constant 0 : i32
    %c0_i32_1 = arith.constant 0 : i32
    return %c0_i32, %c0_i32_0 : i32, i32
  }
  func.func @transform_3(%arg0: i32) -> (i32, i32) {
    %c0_i32 = arith.constant 0 : i32
    %c0_i32_0 = arith.constant 0 : i32
    %c0_i32_1 = arith.constant 0 : i32
    return %c0_i32, %c0_i32_0 : i32, i32
  }
  func.func @transform_4(%arg0: i32) -> (i32, i32, i32) {
    %c0_i32 = arith.constant 0 : i32
    %c0_i32_0 = arith.constant 0 : i32
    %c0_i32_1 = arith.constant 0 : i32
    return %arg0, %c0_i32, %c0_i32_0 : i32, i32, i32
  }
  func.func @transform_5(%arg0: i32) -> (i32, i32, i32) {
    %c0_i32 = arith.constant 0 : i32
    %c0_i32_0 = arith.constant 0 : i32
    %c0_i32_1 = arith.constant 0 : i32
    return %arg0, %c0_i32, %c0_i32_0 : i32, i32, i32
  }
}

module attributes {stable_mosaic.version = 11 : i64} {
  func.func @_conv_gn_kernel(%arg0: i32, %arg1: memref<1x1x288xbf16, #tpu.memory_space<vmem>>, %arg2: memref<288x32xbf16, #tpu.memory_space<vmem>>, %arg3: memref<1x32xf32, #tpu.memory_space<vmem>>, %arg4: memref<1x32xf32, #tpu.memory_space<vmem>>, %arg5: memref<1x1x32xf32, #tpu.memory_space<vmem>>) attributes {dimension_semantics = [#tpu.dimension_semantics<parallel>], iteration_bounds = array<i64: 2>, scalar_prefetch = 0 : i64, scratch_operands = 0 : i64, tpu.core_type = #tpu.core_type<tc>, window_params = [{transform_indices = @transform_0, window_bounds = array<i64: 1, 1, 288>}, {pipeline_mode = #tpu.pipeline_mode<synchronous>, transform_indices = @transform_1, window_bounds = array<i64: 288, 32>}, {pipeline_mode = #tpu.pipeline_mode<synchronous>, transform_indices = @transform_2, window_bounds = array<i64: 1, 32>}, {pipeline_mode = #tpu.pipeline_mode<synchronous>, transform_indices = @transform_3, window_bounds = array<i64: 1, 32>}, {transform_indices = @transform_4, window_bounds = array<i64: 1, 1, 32>}]} {
    %c0 = arith.constant 0 : index
    %c0_0 = arith.constant 0 : index
    %c0_1 = arith.constant 0 : index
    %0 = vector.load %arg1[%c0, %c0_0, %c0_1] : memref<1x1x288xbf16, #tpu.memory_space<vmem>>, vector<1x1x288xbf16>
    %1 = vector.shape_cast %0 : vector<1x1x288xbf16> to vector<1x288xbf16>
    %c0_2 = arith.constant 0 : index
    %c0_3 = arith.constant 0 : index
    %2 = vector.load %arg2[%c0_2, %c0_3] : memref<288x32xbf16, #tpu.memory_space<vmem>>, vector<288x32xbf16>
    %cst = arith.constant dense<0.000000e+00> : vector<1x32xf32>
    %3 = tpu.matmul %1, %2, %cst {dimension_numbers = #tpu.dot_dimension_numbers<[1], [0], [0], [1], [0, 0, 1, 1], [], []>} : vector<1x288xbf16>, vector<288x32xbf16>, vector<1x32xf32> -> vector<1x32xf32>
    %cst_4 = arith.constant dense<0.000000e+00> : vector<1xf32>
    %4 = vector.multi_reduction <add>, %3, %cst_4 [1] : vector<1x32xf32> to vector<1xf32>
    %5 = vector.shape_cast %4 : vector<1xf32> to vector<1x1xf32>
    %cst_5 = arith.constant dense<0.000000e+00> : vector<1xf32>
    %6 = vector.multi_reduction <add>, %5, %cst_5 [0] : vector<1x1xf32> to vector<1xf32>
    %7 = vector.shape_cast %6 : vector<1xf32> to vector<1x1xf32>
    %8 = arith.mulf %3, %3 : vector<1x32xf32>
    %cst_6 = arith.constant dense<0.000000e+00> : vector<1xf32>
    %9 = vector.multi_reduction <add>, %8, %cst_6 [1] : vector<1x32xf32> to vector<1xf32>
    %10 = vector.shape_cast %9 : vector<1xf32> to vector<1x1xf32>
    %cst_7 = arith.constant dense<0.000000e+00> : vector<1xf32>
    %11 = vector.multi_reduction <add>, %10, %cst_7 [0] : vector<1x1xf32> to vector<1xf32>
    %12 = vector.shape_cast %11 : vector<1xf32> to vector<1x1xf32>
    %cst_8 = arith.constant 3.125000e-02 : f32
    %13 = vector.broadcast %cst_8 : f32 to vector<1x1xf32>
    %14 = arith.mulf %7, %13 : vector<1x1xf32>
    %cst_9 = arith.constant 3.125000e-02 : f32
    %15 = vector.broadcast %cst_9 : f32 to vector<1x1xf32>
    %16 = arith.mulf %12, %15 : vector<1x1xf32>
    %17 = arith.mulf %14, %14 : vector<1x1xf32>
    %18 = arith.subf %16, %17 : vector<1x1xf32>
    %cst_10 = arith.constant 0.000000e+00 : f32
    %19 = vector.broadcast %cst_10 : f32 to vector<1x1xf32>
    %20 = arith.maximumf %18, %19 : vector<1x1xf32>
    %c0_11 = arith.constant 0 : index
    %c0_12 = arith.constant 0 : index
    %21 = vector.load %arg3[%c0_11, %c0_12] : memref<1x32xf32, #tpu.memory_space<vmem>>, vector<1x32xf32>
    %cst_13 = arith.constant 9.99999974E-6 : f32
    %22 = vector.broadcast %cst_13 : f32 to vector<1x1xf32>
    %23 = arith.addf %20, %22 : vector<1x1xf32>
    %24 = math.rsqrt %23 : vector<1x1xf32>
    %25 = vector.broadcast %24 : vector<1x1xf32> to vector<1x32xf32>
    %26 = arith.mulf %21, %25 : vector<1x32xf32>
    %c0_14 = arith.constant 0 : index
    %c0_15 = arith.constant 0 : index
    %27 = vector.load %arg4[%c0_14, %c0_15] : memref<1x32xf32, #tpu.memory_space<vmem>>, vector<1x32xf32>
    %28 = vector.broadcast %14 : vector<1x1xf32> to vector<1x32xf32>
    %29 = arith.mulf %28, %26 : vector<1x32xf32>
    %30 = arith.subf %27, %29 : vector<1x32xf32>
    %31 = arith.mulf %3, %26 : vector<1x32xf32>
    %32 = arith.addf %31, %30 : vector<1x32xf32>
    %cst_16 = arith.constant 0.000000e+00 : f32
    %33 = vector.broadcast %cst_16 : f32 to vector<1x32xf32>
    %34 = arith.maximumf %32, %33 : vector<1x32xf32>
    %c0_17 = arith.constant 0 : index
    %c0_18 = arith.constant 0 : index
    %c0_19 = arith.constant 0 : index
    %35 = vector.load %arg5[%c0_17, %c0_18, %c0_19] : memref<1x1x32xf32, #tpu.memory_space<vmem>>, vector<1x1x32xf32>
    %36 = vector.shape_cast %35 : vector<1x1x32xf32> to vector<1x32xf32>
    %37 = vector.shape_cast %34 : vector<1x32xf32> to vector<1x1x32xf32>
    tpu.vector_store %arg5[%c0_17, %c0_18, %c0_19], %37 {strides = array<i32>} : memref<1x1x32xf32, #tpu.memory_space<vmem>>, vector<1x1x32xf32>,
    return
  }
  func.func @transform_0(%arg0: i32) -> (i32, i32, i32) {
    %c0_i32 = arith.constant 0 : i32
    %c0_i32_0 = arith.constant 0 : i32
    %c0_i32_1 = arith.constant 0 : i32
    return %arg0, %c0_i32, %c0_i32_0 : i32, i32, i32
  }
  func.func @transform_1(%arg0: i32) -> (i32, i32) {
    %c0_i32 = arith.constant 0 : i32
    %c0_i32_0 = arith.constant 0 : i32
    %c0_i32_1 = arith.constant 0 : i32
    return %c0_i32, %c0_i32_0 : i32, i32
  }
  func.func @transform_2(%arg0: i32) -> (i32, i32) {
    %c0_i32 = arith.constant 0 : i32
    %c0_i32_0 = arith.constant 0 : i32
    %c0_i32_1 = arith.constant 0 : i32
    return %c0_i32, %c0_i32_0 : i32, i32
  }
  func.func @transform_3(%arg0: i32) -> (i32, i32) {
    %c0_i32 = arith.constant 0 : i32
    %c0_i32_0 = arith.constant 0 : i32
    %c0_i32_1 = arith.constant 0 : i32
    return %c0_i32, %c0_i32_0 : i32, i32
  }
  func.func @transform_4(%arg0: i32) -> (i32, i32, i32) {
    %c0_i32 = arith.constant 0 : i32
    %c0_i32_0 = arith.constant 0 : i32
    %c0_i32_1 = arith.constant 0 : i32
    return %arg0, %c0_i32, %c0_i32_0 : i32, i32, i32
  }
}

module attributes {stable_mosaic.version = 11 : i64} {
  func.func @_tail_kernel(%arg0: memref<2x1x32xf32, #tpu.memory_space<vmem>>, %arg1: memref<8x1xf32, #tpu.memory_space<vmem>>, %arg2: memref<1x16xf32, #tpu.memory_space<vmem>>, %arg3: memref<1x16xf32, #tpu.memory_space<vmem>>, %arg4: memref<16x16xf32, #tpu.memory_space<vmem>>, %arg5: memref<1x16xf32, #tpu.memory_space<vmem>>, %arg6: memref<16x16xf32, #tpu.memory_space<vmem>>, %arg7: memref<1x16xf32, #tpu.memory_space<vmem>>, %arg8: memref<16x32xf32, #tpu.memory_space<vmem>>, %arg9: memref<1x32xf32, #tpu.memory_space<vmem>>, %arg10: memref<1x1xf32, #tpu.memory_space<vmem>>, %arg11: memref<2x8xf32, #tpu.memory_space<vmem>>) attributes {dimension_semantics = [], scalar_prefetch = 0 : i64, scratch_operands = 0 : i64, tpu.core_type = #tpu.core_type<tc>} {
    %c0 = arith.constant 0 : index
    %c0_0 = arith.constant 0 : index
    %c0_1 = arith.constant 0 : index
    %0 = vector.load %arg0[%c0, %c0_0, %c0_1] : memref<2x1x32xf32, #tpu.memory_space<vmem>>, vector<2x1x32xf32>
    %cst = arith.constant dense<0.000000e+00> : vector<2x32xf32>
    %1 = vector.multi_reduction <add>, %0, %cst [1] : vector<2x1x32xf32> to vector<2x32xf32>
    %cst_2 = arith.constant 1.000000e+00 : f32
    %2 = vector.broadcast %cst_2 : f32 to vector<2x32xf32>
    %3 = arith.divf %1, %2 : vector<2x32xf32>
    %c0_3 = arith.constant 0 : index
    %c0_4 = arith.constant 0 : index
    %4 = vector.load %arg1[%c0_3, %c0_4] : memref<8x1xf32, #tpu.memory_space<vmem>>, vector<8x1xf32>
    %c0_5 = arith.constant 0 : index
    %c0_6 = arith.constant 0 : index
    %5 = vector.load %arg2[%c0_5, %c0_6] : memref<1x16xf32, #tpu.memory_space<vmem>>, vector<1x16xf32>
    %c0_7 = arith.constant 0 : index
    %c0_8 = arith.constant 0 : index
    %6 = vector.load %arg3[%c0_7, %c0_8] : memref<1x16xf32, #tpu.memory_space<vmem>>, vector<1x16xf32>
    %cst_9 = arith.constant dense<0.000000e+00> : vector<8x16xf32>
    %7 = tpu.matmul %4, %5, %cst_9 {dimension_numbers = #tpu.dot_dimension_numbers<[1], [0], [0], [1], [0, 0, 1, 1], [], []>} : vector<8x1xf32>, vector<1x16xf32>, vector<8x16xf32> -> vector<8x16xf32>
    %8 = vector.broadcast %6 : vector<1x16xf32> to vector<8x16xf32>
    %9 = arith.addf %7, %8 : vector<8x16xf32>
    %cst_10 = arith.constant 0.000000e+00 : f32
    %10 = vector.broadcast %cst_10 : f32 to vector<8x16xf32>
    %11 = arith.maximumf %9, %10 : vector<8x16xf32>
    %c0_11 = arith.constant 0 : index
    %c0_12 = arith.constant 0 : index
    %12 = vector.load %arg4[%c0_11, %c0_12] : memref<16x16xf32, #tpu.memory_space<vmem>>, vector<16x16xf32>
    %c0_13 = arith.constant 0 : index
    %c0_14 = arith.constant 0 : index
    %13 = vector.load %arg5[%c0_13, %c0_14] : memref<1x16xf32, #tpu.memory_space<vmem>>, vector<1x16xf32>
    %cst_15 = arith.constant dense<0.000000e+00> : vector<8x16xf32>
    %14 = tpu.matmul %11, %12, %cst_15 {dimension_numbers = #tpu.dot_dimension_numbers<[1], [0], [0], [1], [0, 0, 1, 1], [], []>} : vector<8x16xf32>, vector<16x16xf32>, vector<8x16xf32> -> vector<8x16xf32>
    %15 = vector.broadcast %13 : vector<1x16xf32> to vector<8x16xf32>
    %16 = arith.addf %14, %15 : vector<8x16xf32>
    %cst_16 = arith.constant 0.000000e+00 : f32
    %17 = vector.broadcast %cst_16 : f32 to vector<8x16xf32>
    %18 = arith.maximumf %16, %17 : vector<8x16xf32>
    %c0_17 = arith.constant 0 : index
    %c0_18 = arith.constant 0 : index
    %19 = vector.load %arg6[%c0_17, %c0_18] : memref<16x16xf32, #tpu.memory_space<vmem>>, vector<16x16xf32>
    %c0_19 = arith.constant 0 : index
    %c0_20 = arith.constant 0 : index
    %20 = vector.load %arg7[%c0_19, %c0_20] : memref<1x16xf32, #tpu.memory_space<vmem>>, vector<1x16xf32>
    %cst_21 = arith.constant dense<0.000000e+00> : vector<8x16xf32>
    %21 = tpu.matmul %18, %19, %cst_21 {dimension_numbers = #tpu.dot_dimension_numbers<[1], [0], [0], [1], [0, 0, 1, 1], [], []>} : vector<8x16xf32>, vector<16x16xf32>, vector<8x16xf32> -> vector<8x16xf32>
    %22 = vector.broadcast %20 : vector<1x16xf32> to vector<8x16xf32>
    %23 = arith.addf %21, %22 : vector<8x16xf32>
    %cst_22 = arith.constant 0.000000e+00 : f32
    %24 = vector.broadcast %cst_22 : f32 to vector<8x16xf32>
    %25 = arith.maximumf %23, %24 : vector<8x16xf32>
    %c0_23 = arith.constant 0 : index
    %c0_24 = arith.constant 0 : index
    %26 = vector.load %arg8[%c0_23, %c0_24] : memref<16x32xf32, #tpu.memory_space<vmem>>, vector<16x32xf32>
    %c0_25 = arith.constant 0 : index
    %c0_26 = arith.constant 0 : index
    %27 = vector.load %arg9[%c0_25, %c0_26] : memref<1x32xf32, #tpu.memory_space<vmem>>, vector<1x32xf32>
    %cst_27 = arith.constant dense<0.000000e+00> : vector<8x32xf32>
    %28 = tpu.matmul %25, %26, %cst_27 {dimension_numbers = #tpu.dot_dimension_numbers<[1], [0], [0], [1], [0, 0, 1, 1], [], []>} : vector<8x16xf32>, vector<16x32xf32>, vector<8x32xf32> -> vector<8x32xf32>
    %29 = vector.broadcast %27 : vector<1x32xf32> to vector<8x32xf32>
    %30 = arith.addf %28, %29 : vector<8x32xf32>
    %cst_28 = arith.constant 0.000000e+00 : f32
    %31 = vector.broadcast %cst_28 : f32 to vector<8x32xf32>
    %32 = arith.maximumf %30, %31 : vector<8x32xf32>
    %cst_29 = arith.constant dense<0.000000e+00> : vector<2x8xf32>
    %33 = tpu.matmul %3, %32, %cst_29 {dimension_numbers = #tpu.dot_dimension_numbers<[1], [1], [0], [0], [0, 0, 1, 0], [], []>} : vector<2x32xf32>, vector<8x32xf32>, vector<2x8xf32> -> vector<2x8xf32>
    %c0_30 = arith.constant 0 : index
    %c0_31 = arith.constant 0 : index
    %34 = vector.load %arg10[%c0_30, %c0_31] : memref<1x1xf32, #tpu.memory_space<vmem>>, vector<1x1xf32>
    %35 = vector.broadcast %34 : vector<1x1xf32> to vector<2x8xf32>
    %36 = arith.addf %33, %35 : vector<2x8xf32>
    %c0_32 = arith.constant 0 : index
    %c0_33 = arith.constant 0 : index
    %37 = vector.load %arg11[%c0_32, %c0_33] : memref<2x8xf32, #tpu.memory_space<vmem>>, vector<2x8xf32>
    tpu.vector_store %arg11[%c0_32, %c0_33], %36 {strides = array<i32>} : memref<2x8xf32, #tpu.memory_space<vmem>>, vector<2x8xf32>,
    return
  }
}

</mosaic_0001>

<bundles_post_ra>
// kernel: _lambda_.21
= control target key start
LH: loop header
LB: loop body
LE: loop exit
PB: predicated region body
PF: predicated region fallthrough
CT: control target
= control target key end

     0   :  { %s885_s15 = smov 0   ;;  %s1166_s0 = inlined_call_operand.vmem [shape: bf16[2,64,49], index: 0, kind: input, shape index: {}]   ;;  %s1167_s1 = inlined_call_operand.vmem [shape: bf16[49,8], index: 1, kind: input, shape index: {}]   ;;  %s1168_s2 = inlined_call_operand.vmem [shape: f32[1,8], index: 2, kind: input, shape index: {}]   ;;  %s1169_s3 = inlined_call_operand.vmem [shape: f32[1,8], index: 3, kind: input, shape index: {}]   ;;  %s1170_s4 = inlined_call_operand.vmem [shape: f32[2,64,8], index: 4, kind: output, shape index: {}]  }
   0x1 LB: > { %s741_s16 = sadd.s32 4294967295, %s856_s15   ;;  %p745_p0 = scmp.ge.s32.totalorder %s856_s15, 1  ;;  %s856_s15 = sphi %s885_s15, %s14_s15  }
   0x2   : > { %p162_p1 = scmp.lt.s32.totalorder %s856_s15, 3 }
   0x4   : > { %p163_p2 = pnand %p745_p0, %p162_p1 }
   0x5   : > { %v808_v0 = vld [vmem:[%s1167_s1] sm:$0xff] (!%p163_p2)   ;;  %v809_v1 = vld [vmem:[%s1167_s1 + $0x8] sm:$0xff] (!%p163_p2)   ;;  %vm268_vm0 = vcmask (!%p163_p2), 1040384   ;;  %p188_p3 = scmp.lt.s32.totalorder (!%p163_p2), %s741_s16, 1  ;;  %v810_v2 = vld [vmem:[%s1167_s1 + $0x10] sm:$0xff] (!%p163_p2)   ;;  %v858_v4 = vmov (!%p163_p2), 0  }
   0x6   : > { %166 = sbr.rel (%p163_p2) target bundleno = 509 (0x1fd), region = 36  ;;  %774 = vmatprep.subr.bf16.mxu0 (!%p163_p2), %v808_v0  ;;  %790 = vmatprep.subr.bf16.mxu1 (!%p163_p2), %v808_v0  ;;  %v811_v3 = vld [vmem:[%s1167_s1 + $0x18] ss:$0 sps:$4 sm:$0x11] (!%p163_p2)   ;;  %v270_v5 = vsel (!%p163_p2), %vm268_vm0, 65535, %v858_v4  ;;  %vm255_vm1 = vcmask (!%p163_p2), 400384  }
   0x7   : > { %775 = vmatpush3.bf16.msra.mxu0 (!%p163_p2), %v808_v0  ;;  %794 = vmatpush3.bf16.msra.mxu1 (!%p163_p2), %v808_v0  ;;  %v272_v6 = vand.u32 (!%p163_p2), %v811_v3, %v270_v5  ;;  %vm339_vm2 = vcmask (!%p163_p2), 64512  }
   0x8   : > { %776 = vmatprep.subr.bf16.mxu0 (!%p163_p2), %v809_v1  ;;  %791 = vmatprep.subr.bf16.mxu1 (!%p163_p2), %v809_v1 }
   0xb   : > { %777 = vmatpush3.bf16.msra.mxu0 (!%p163_p2), %v809_v1  ;;  %795 = vmatpush3.bf16.msra.mxu1 (!%p163_p2), %v809_v1 }
   0xc   : > { %778 = vmatprep.subr.bf16.mxu0 (!%p163_p2), %v810_v2  ;;  %792 = vmatprep.subr.bf16.mxu1 (!%p163_p2), %v810_v2 }
   0xd   : > { %s1172_s16 = smov (!%p188_p3, %s741_s16), 1 }
   0xe   : > { %s764_s25 = sshll.u32 %s1172_s16, 5  ;;  %s765_s7 = sshll.u32 %s1172_s16, 6 }
   0xf   : > { %s192_s28 = scalar_lea.vmem %s1166_s0, %s764_s25  ;;  %779 = vmatpush3.bf16.msra.mxu0 %v810_v2  ;;  %796 = vmatpush3.bf16.msra.mxu1 %v810_v2  ;;  %s1130_s10 = scalar_lea.vmem %s1170_s4, %s765_s7 }
  0x10   : > { %v812_v7 = vld [vmem:[%s192_s28] sm:$0xff]   ;;  %v814_v8 = vld [vmem:[%s192_s28 + $0x10] sm:$0xff]   ;;  %780 = vmatprep.subr.bf16.mxu0 %v272_v6  ;;  %793 = vmatprep.subr.bf16.mxu1 %v272_v6  ;;  %v813_v9 = vld [vmem:[%s192_s28 + $0x8] sm:$0xff]  }
  0x11   : > { %782 = vmatprep.mubr.msk.bf16.mxu0 %vm255_vm1, %v812_v7  ;;  %786 = vmatprep.mubr.msk.bf16.mxu1 %vm255_vm1, %v814_v8  ;;  %v815_v10 = vld [vmem:[%s192_s28 + $0x18] sm:$0xff]  }
  0x13   : > { %781 = vmatpush3.bf16.msra.mxu0 %v272_v6  ;;  %797 = vmatpush3.bf16.msra.mxu1 %v272_v6 }
  0x16   : > { %783 = vmatmul.mubr.msk.bf16.vlgmr.msra.gmra.mrb[0].mxu0 %vm255_vm1, %v813_v9  ;;  %787 = vmatmul.mubr.msk.bf16.vlgmr.msra.gmra.mrb[0].mxu1 %vm255_vm1, %v815_v10 }
  0xe9   : > { %v911_v11 = vpop.f32.mrb[0].mxu0  ;;  %v913_v12 = vpop.f32.mrb[0].mxu1 }
  0xea   : > { %v915_v13 = vpop.f32.mrb[1].mxu0  ;;  %v346_v14 = vsel %vm339_vm2, %v911_v11, 0.0  ;;  %v919_v15 = vpop.f32.mrb[1].mxu1  ;;  %v379_v19 = vmul.f32 %v911_v11, %v911_v11  ;;  %v358_v34 = vsel %vm339_vm2, %v913_v12, 0.0  ;;  %v383_v40 = vmul.f32 %v913_v12, %v913_v12 }
  0xeb   : > { %347 = vadd.xlane.f32.xlu1 %v346_v14  ;;  %v921_v16 = vpop.f32.mrb[2].mxu0  ;;  %v340_v17 = vsel %vm339_vm2, %v915_v13, 0.0  ;;  %v925_v18 = vpop.f32.mrb[2].mxu1  ;;  %v352_v22 = vsel %vm339_vm2, %v919_v15, 0.0  ;;  %v377_v25 = vmul.f32 %v915_v13, %v915_v13  ;;  %v381_v33 = vmul.f32 %v919_v15, %v919_v15 }
  0xec   : > { %341 = vadd.xlane.f32.xlu0 %v340_v17  ;;  %v929_v20 = vpop.f32.mrb[3].mxu0  ;;  %v931_v21 = vpop.f32.mrb[3].mxu1  ;;  %v391_v23 = vsel %vm339_vm2, %v379_v19, 0.0  ;;  %v349_v24 = vsel %vm339_vm2, %v921_v16, 0.0  ;;  %v380_v27 = vmul.f32 %v921_v16, %v921_v16  ;;  %v361_v37 = vsel %vm339_vm2, %v925_v18, 0.0 }
  0xed   : > { %v343_v26 = vsel %vm339_vm2, %v929_v20, 0.0  ;;  %v385_v28 = vsel %vm339_vm2, %v377_v25, 0.0  ;;  %v378_v29 = vmul.f32 %v929_v20, %v929_v20  ;;  %v355_v31 = vsel %vm339_vm2, %v931_v21, 0.0 }
  0xee   : > { %v394_v30 = vsel %vm339_vm2, %v380_v27, 0.0  ;;  %v382_v35 = vmul.f32 %v931_v21, %v931_v21  ;;  %v397_v36 = vsel %vm339_vm2, %v381_v33, 0.0  ;;  %v384_v38 = vmul.f32 %v925_v18, %v925_v18 }
  0xef   : > { %353 = vadd.xlane.f32.xlu1 %v352_v22  ;;  %v388_v32 = vsel %vm339_vm2, %v378_v29, 0.0  ;;  %v403_v42 = vsel %vm339_vm2, %v383_v40, 0.0 }
  0xf0   : > { %392 = vadd.xlane.f32.xlu0 %v391_v23  ;;  %v400_v39 = vsel %vm339_vm2, %v382_v35, 0.0  ;;  %v406_v41 = vsel %vm339_vm2, %v384_v38, 0.0  ;;  %v435_v35 = vlaneseq }
  0xf3   : > { %350 = vadd.xlane.f32.xlu1 %v349_v24 }
  0xf4   : > { %344 = vadd.xlane.f32.xlu0 %v343_v26 }
  0xf7   : > { %386 = vadd.xlane.f32.xlu1 %v385_v28 }
  0xf8   : > { %395 = vadd.xlane.f32.xlu0 %v394_v30 }
  0xfb   : > { %356 = vadd.xlane.f32.xlu1 %v355_v31 }
  0xfc   : > { %389 = vadd.xlane.f32.xlu0 %v388_v32 }
  0xff   : > { %359 = vadd.xlane.f32.xlu1 %v358_v34 }
 0x100   : > { %398 = vadd.xlane.f32.xlu0 %v397_v36  ;;  %v436_v36 = vshrl.u32 %v435_v35, 7 }
 0x103   : > { %362 = vadd.xlane.f32.xlu1 %v361_v37  ;;  %v427_v37 = vld [vmem:[%s1168_s2] sm:$0x1] }
 0x104   : > { %401 = vadd.xlane.f32.xlu0 %v400_v39  ;;  %v437_v39 = vsub.s32 0, %v436_v36 }
 0x107   : > { %407 = vadd.xlane.f32.xlu1 %v406_v41  ;;  %v431_v41 = vld [vmem:[%s1169_s3] sm:$0x1] }
 0x108   : > { %404 = vadd.xlane.f32.xlu0 %v403_v42 }
 0x178   : > { %v348_v43 = vpop.xlane.xlu1 %347 }
 0x179   : > { %v342_v44 = vpop.xlane.xlu0 %341 }
 0x17c   : > { %v354_v45 = vpop.xlane.xlu1 %353 }
 0x17d   : > { %v393_v46 = vpop.xlane.xlu0 %392 }
 0x180   : > { %v351_v47 = vpop.xlane.xlu1 %350 }
 0x181   : > { %v345_v48 = vpop.xlane.xlu0 %344 }
 0x182   : > { %v364_v49 = vadd.f32 %v345_v48, %v342_v44 }
 0x184   : > { %v365_v50 = vadd.f32 %v364_v49, %v348_v43  ;;  %v387_v51 = vpop.xlane.xlu1 %386 }
 0x185   : > { %v396_v52 = vpop.xlane.xlu0 %395 }
 0x186   : > { %v366_v53 = vadd.f32 %v365_v50, %v351_v47 }
 0x188   : > { %v357_v54 = vpop.xlane.xlu1 %356  ;;  %v367_v55 = vadd.f32 %v366_v53, %v354_v45 }
 0x189   : > { %v390_v56 = vpop.xlane.xlu0 %389 }
 0x18a   : > { %v409_v57 = vadd.f32 %v390_v56, %v387_v51  ;;  %v368_v58 = vadd.f32 %v367_v55, %v357_v54 }
 0x18c   : > { %v410_v59 = vadd.f32 %v409_v57, %v393_v46  ;;  %v360_v60 = vpop.xlane.xlu1 %359 }
 0x18d   : > { %v399_v61 = vpop.xlane.xlu0 %398  ;;  %v369_v63 = vadd.f32 %v368_v58, %v360_v60 }
 0x18e   : > { %v411_v62 = vadd.f32 %v410_v59, %v396_v52 }
 0x190   : > { %v412_v0 = vadd.f32 %v411_v62, %v399_v61  ;;  %v363_v1 = vpop.xlane.xlu1 %362 }
 0x191   : > { %v370_v2 = vadd.f32 %v369_v63, %v363_v1  ;;  %v402_v3 = vpop.xlane.xlu0 %401 }
 0x192   : > { %v413_v5 = vadd.f32 %v412_v0, %v402_v3 }
 0x193   : > { %v371_v4 = vrot.slane %v370_v2, 4 }
 0x194   : > { %v408_v10 = vpop.xlane.xlu1 %407 }
 0x195   : > { %v372_v6 = vadd.f32 %v371_v4, %v370_v2  ;;  %v405_v7 = vpop.xlane.xlu0 %404 }
 0x196   : > { %v414_v8 = vadd.f32 %v413_v5, %v405_v7 }
 0x197   : > { %v373_v9 = vrot.slane %v372_v6, 2 }
 0x198   : > { %v415_v14 = vadd.f32 %v414_v8, %v408_v10 }
 0x199   : > { %v374_v17 = vadd.f32 %v373_v9, %v372_v6 }
 0x19a   : > { %v416_v19 = vrot.slane %v415_v14, 4 }
 0x19b   : > { %v375_v22 = vrot.slane %v374_v17, 1 }
 0x19c   : > { %v417_v23 = vadd.f32 %v416_v19, %v415_v14 }
 0x19d   : > { %v376_v24 = vadd.f32 %v375_v22, %v374_v17 }
 0x19e   : > { %v418_v25 = vrot.slane %v417_v23, 2 }
 0x19f   : > { %v422_v27 = vmul.f32 0.001953125, %v376_v24 }
 0x1a0   : > { %v419_v26 = vadd.f32 %v418_v25, %v417_v23 }
 0x1a1   : > { %v424_v30 = vmul.f32 %v422_v27, %v422_v27 }
 0x1a2   : > { %v420_v28 = vrot.slane %v419_v26, 1 }
 0x1a4   : > { %v421_v29 = vadd.f32 %v420_v28, %v419_v26 }
 0x1a6   : > { %v423_v31 = vmul.f32 0.001953125, %v421_v29 }
 0x1a8   : > { %v425_v32 = vsub.f32 %v423_v31, %v424_v30 }
 0x1aa   : > { %v426_v33 = vmax.f32 %v425_v32, 0.0 }
 0x1ac   : > { %v428_v34 = vadd.f32 1e-05, %v426_v33 }
 0x1ae   : > { %816 = vrsqrt.f32 %v428_v34 }
 0x1b8   : > { %v817_v38 = vpop.eup %816 }
 0x1b9   : > { %v430_v40 = vmul.f32 %v817_v38, %v427_v37 }
 0x1bb   : > { %v432_v42 = vmul.f32 %v430_v40, %v422_v27  ;;  %v438_v44 = vrot.slane %v430_v40, %v437_v39 }
 0x1bd   : > { %v433_v43 = vsub.f32 %v431_v41, %v432_v42  ;;  %v440_v46 = vmul.f32 %v438_v44, %v915_v13  ;;  %v441_v47 = vmul.f32 %v438_v44, %v929_v20  ;;  %v442_v48 = vmul.f32 %v911_v11, %v438_v44 }
 0x1be   : > { %v443_v49 = vmul.f32 %v921_v16, %v438_v44  ;;  %v444_v50 = vmul.f32 %v438_v44, %v919_v15  ;;  %v445_v51 = vmul.f32 %v438_v44, %v931_v21  ;;  %v446_v52 = vmul.f32 %v913_v12, %v438_v44 }
 0x1bf   : > { %v452_v45 = vrot.slane %v433_v43, %v437_v39  ;;  %v447_v53 = vmul.f32 %v925_v18, %v438_v44 }
 0x1c1   : > { %v454_v54 = vadd.f32 %v452_v45, %v440_v46  ;;  %v455_v55 = vadd.f32 %v452_v45, %v441_v47  ;;  %v456_v56 = vadd.f32 %v452_v45, %v442_v48  ;;  %v457_v57 = vadd.f32 %v452_v45, %v443_v49 }
 0x1c2   : > { %v458_v58 = vadd.f32 %v452_v45, %v444_v50  ;;  %v981_v13 = vadd.f32 %v452_v45, %v445_v51  ;;  %v983_v20 = vadd.f32 %v452_v45, %v446_v52  ;;  %v985_v11 = vadd.f32 %v452_v45, %v447_v53 }
 0x1c3   : > { %v987_v16 = vmul.f32 0.70710677, %v454_v54  ;;  %v989_v15 = vmul.f32 0.70710677, %v455_v55  ;;  %v991_v21 = vmul.f32 0.70710677, %v456_v56 }
 0x1c4   : > { %v993_v12 = vmul.f32 0.70710677, %v457_v57  ;;  %v995_v18 = vmul.f32 0.70710677, %v458_v58  ;;  %v998_v59 = vmul.f32 0.70710677, %v981_v13 }
 0x1c5   : > { %v1001_v60 = vmul.f32 0.70710677, %v983_v20  ;;  %v1004_v61 = vmul.f32 0.70710677, %v985_v11  ;;  %v1006_v62 = vmul.f32 0.5, %v454_v54  ;;  %v1008_v63 = vmul.f32 0.5, %v455_v55 }
 0x1c6   : > { %v1010_v0 = vmul.f32 0.5, %v456_v56  ;;  %v1012_v1 = vmul.f32 0.5, %v457_v57  ;;  %v1014_v2 = vmul.f32 0.5, %v458_v58  ;;  %v494_v3 = vand.u32 2147483647, %v987_v16 }
 0x1c7   : > { %v495_v4 = vand.u32 2147483647, %v989_v15  ;;  %v496_v5 = vand.u32 2147483647, %v991_v21  ;;  %v497_v6 = vand.u32 2147483647, %v993_v12 }
 0x1c8   : > { %v498_v7 = vand.u32 2147483647, %v995_v18  ;;  %v499_v8 = vand.u32 2147483647, %v998_v59  ;;  %v500_v9 = vand.u32 2147483647, %v1001_v60 }
 0x1c9   : > { %v501_v10 = vand.u32 2147483647, %v1004_v61  ;;  %v502_v14 = vmul.f32 0.3275911, %v494_v3  ;;  %v503_v17 = vmul.f32 0.3275911, %v495_v4 }
 0x1ca   : > { %v504_v19 = vmul.f32 0.3275911, %v496_v5  ;;  %v505_v22 = vmul.f32 0.3275911, %v497_v6  ;;  %v506_v23 = vmul.f32 0.3275911, %v498_v7 }
 0x1cb   : > { %v507_v24 = vmul.f32 0.3275911, %v499_v8  ;;  %v508_v25 = vmul.f32 0.3275911, %v500_v9  ;;  %v509_v26 = vmul.f32 0.3275911, %v501_v10 }
 0x1cc   : > { %v510_v27 = vadd.f32 1.0, %v502_v14  ;;  %v511_v28 = vadd.f32 1.0, %v503_v17  ;;  %vm478_vm3 = vcmp.ge.f32.partialorder %v987_v16, 0.0  ;;  %v512_v29 = vadd.f32 1.0, %v504_v19 }
 0x1cd   : > { %v513_v30 = vadd.f32 1.0, %v505_v22  ;;  %v514_v31 = vadd.f32 1.0, %v506_v23  ;;  %v515_v32 = vadd.f32 1.0, %v507_v24  ;;  %v516_v33 = vadd.f32 1.0, %v508_v25 }
 0x1ce   : > { %818 = vrcp.f32 %v510_v27  ;;  %v606_v34 = vsub.f32 0.0, %v494_v3  ;;  %v607_v35 = vsub.f32 0.0, %v495_v4  ;;  %v608_v36 = vsub.f32 0.0, %v496_v5 }
 0x1cf   : > { %820 = vrcp.f32 %v511_v28  ;;  %v609_v37 = vsub.f32 0.0, %v497_v6  ;;  %v517_v38 = vadd.f32 1.0, %v509_v26  ;;  %v610_v39 = vsub.f32 0.0, %v498_v7 }
 0x1d0   : > { %822 = vrcp.f32 %v512_v29  ;;  %v611_v40 = vsub.f32 0.0, %v499_v8  ;;  %v612_v41 = vsub.f32 0.0, %v500_v9  ;;  %v614_v42 = vmul.f32 %v606_v34, %v494_v3 }
 0x1d1   : > { %824 = vrcp.f32 %v513_v30  ;;  %v615_v43 = vmul.f32 %v607_v35, %v495_v4  ;;  %v613_v44 = vsub.f32 0.0, %v501_v10  ;;  %v616_v45 = vmul.f32 %v608_v36, %v496_v5 }
 0x1d2   : > { %826 = vrcp.f32 %v514_v31  ;;  %v617_v46 = vmul.f32 %v609_v37, %v497_v6  ;;  %vm479_vm4 = vcmp.ge.f32.partialorder %v989_v15, 0.0  ;;  %vm480_vm5 = vcmp.ge.f32.partialorder %v991_v21, 0.0 }
 0x1d3   : > { %828 = vrcp.f32 %v515_v32  ;;  %v618_v47 = vmul.f32 %v610_v39, %v498_v7  ;;  %v619_v48 = vmul.f32 %v611_v40, %v499_v8  ;;  %v622_v49 = vmul.f32 1.442695, %v614_v42 }
 0x1d4   : > { %830 = vrcp.f32 %v516_v33  ;;  %v624_v50 = vmul.f32 1.442695, %v615_v43  ;;  %vm481_vm6 = vcmp.ge.f32.partialorder %v993_v12, 0.0  ;;  %v620_v51 = vmul.f32 %v612_v41, %v500_v9 }
 0x1d5   : > { %832 = vrcp.f32 %v517_v38  ;;  %v626_v52 = vmul.f32 1.442695, %v616_v45  ;;  %vm482_vm7 = vcmp.ge.f32.partialorder %v995_v18, 0.0  ;;  %vm483_vm8 = vcmp.ge.f32.partialorder %v998_v59, 0.0 }
 0x1d6   : > { %v621_v53 = vmul.f32 %v613_v44, %v501_v10  ;;  %v628_v54 = vmul.f32 1.442695, %v617_v46  ;;  %vm484_vm9 = vcmp.ge.f32.partialorder %v1001_v60, 0.0  ;;  %v859_v55 = vmov -1.0  }
 0x1d7   : > { %v1034_v56 = vsel %vm478_vm3, 1.0, %v859_v55  ;;  %834 = vpow2.f32 %v622_v49  ;;  %v630_v57 = vmul.f32 1.442695, %v618_v47  ;;  %v1041_v3 = vsel %vm479_vm4, 1.0, %v859_v55 }
 0x1d8   : > { %v1036_v58 = vpop.eup %818  ;;  %v1046_v4 = vsel %vm480_vm5, 1.0, %v859_v55  ;;  %836 = vpow2.f32 %v624_v50  ;;  %v632_v5 = vmul.f32 1.442695, %v619_v48  ;;  %v1053_v16 = vsel %vm481_vm6, 1.0, %v859_v55 }
 0x1d9   : > { %v1048_v6 = vpop.eup %820  ;;  %v534_v7 = vmul.f32 1.0614054, %v1036_v58  ;;  %838 = vpow2.f32 %v626_v52  ;;  %v634_v15 = vmul.f32 1.442695, %v620_v51  ;;  %v1061_v21 = vsel %vm482_vm7, 1.0, %v859_v55 }
 0x1da   : > { %v1056_v8 = vpop.eup %822  ;;  %v535_v9 = vmul.f32 1.0614054, %v1048_v6  ;;  %840 = vpow2.f32 %v628_v54  ;;  %v636_v10 = vmul.f32 1.442695, %v621_v53  ;;  %v1069_v12 = vsel %vm483_vm8, 1.0, %v859_v55 }
 0x1db   : > { %v1064_v14 = vpop.eup %824  ;;  %v536_v17 = vmul.f32 1.0614054, %v1056_v8  ;;  %v542_v19 = vadd.f32 -1.4531521, %v534_v7  ;;  %842 = vpow2.f32 %v630_v57  ;;  %v1077_v18 = vsel %vm484_vm9, 1.0, %v859_v55 }
 0x1dc   : > { %v1072_v22 = vpop.eup %826  ;;  %v537_v23 = vmul.f32 1.0614054, %v1064_v14  ;;  %v543_v24 = vadd.f32 -1.4531521, %v535_v9  ;;  %844 = vpow2.f32 %v632_v5  ;;  %vm485_vm10 = vcmp.ge.f32.partialorder %v1004_v61, 0.0 }
 0x1dd   : > { %v1080_v25 = vpop.eup %828  ;;  %v538_v59 = vmul.f32 1.0614054, %v1072_v22  ;;  %v544_v26 = vadd.f32 -1.4531521, %v536_v17  ;;  %v550_v27 = vmul.f32 %v1036_v58, %v542_v19  ;;  %846 = vpow2.f32 %v634_v15 }
 0x1de   : > { %v1084_v28 = vpop.eup %830  ;;  %v539_v29 = vmul.f32 1.0614054, %v1080_v25  ;;  %v545_v30 = vadd.f32 -1.4531521, %v537_v23  ;;  %v551_v60 = vmul.f32 %v1048_v6, %v543_v24  ;;  %848 = vpow2.f32 %v636_v10 }
 0x1df   : > { %v1088_v31 = vpop.eup %832  ;;  %v540_v32 = vmul.f32 1.0614054, %v1084_v28  ;;  %v546_v33 = vadd.f32 -1.4531521, %v538_v59  ;;  %v552_v34 = vmul.f32 %v1056_v8, %v544_v26  ;;  %v558_v35 = vadd.f32 1.4214138, %v550_v27 }
 0x1e0   : > { %v541_v36 = vmul.f32 1.0614054, %v1088_v31  ;;  %v547_v37 = vadd.f32 -1.4531521, %v539_v29  ;;  %v553_v38 = vmul.f32 %v1064_v14, %v545_v30  ;;  %v559_v39 = vadd.f32 1.4214138, %v551_v60 }
 0x1e1   : > { %v835_v40 = vpop.eup %834  ;;  %v548_v41 = vadd.f32 -1.4531521, %v540_v32  ;;  %v554_v42 = vmul.f32 %v1072_v22, %v546_v33  ;;  %v560_v43 = vadd.f32 1.4214138, %v552_v34  ;;  %v566_v44 = vmul.f32 %v1036_v58, %v558_v35 }
 0x1e2   : > { %v837_v45 = vpop.eup %836  ;;  %v549_v46 = vadd.f32 -1.4531521, %v541_v36  ;;  %v555_v47 = vmul.f32 %v1080_v25, %v547_v37  ;;  %v561_v48 = vadd.f32 1.4214138, %v553_v38  ;;  %v567_v49 = vmul.f32 %v1048_v6, %v559_v39 }
 0x1e3   : > { %v839_v50 = vpop.eup %838  ;;  %v556_v51 = vmul.f32 %v1084_v28, %v548_v41  ;;  %v562_v52 = vadd.f32 1.4214138, %v554_v42  ;;  %v568_v53 = vmul.f32 %v1056_v8, %v560_v43  ;;  %v574_v54 = vadd.f32 -0.28449672, %v566_v44 }
 0x1e4   : > { %v841_v57 = vpop.eup %840  ;;  %v557_v5 = vmul.f32 %v1088_v31, %v549_v46  ;;  %v563_v7 = vadd.f32 1.4214138, %v555_v47  ;;  %v569_v15 = vmul.f32 %v1064_v14, %v561_v48  ;;  %v575_v9 = vadd.f32 -0.28449672, %v567_v49 }
 0x1e5   : > { %v843_v10 = vpop.eup %842  ;;  %v564_v17 = vadd.f32 1.4214138, %v556_v51  ;;  %v570_v19 = vmul.f32 %v1072_v22, %v562_v52  ;;  %v576_v23 = vadd.f32 -0.28449672, %v568_v53  ;;  %v582_v24 = vmul.f32 %v1036_v58, %v574_v54 }
 0x1e6   : > { %v845_v59 = vpop.eup %844  ;;  %v565_v26 = vadd.f32 1.4214138, %v557_v5  ;;  %v571_v27 = vmul.f32 %v1080_v25, %v563_v7  ;;  %v577_v29 = vadd.f32 -0.28449672, %v569_v15  ;;  %v583_v30 = vmul.f32 %v1048_v6, %v575_v9 }
 0x1e7   : > { %v847_v60 = vpop.eup %846  ;;  %v572_v32 = vmul.f32 %v1084_v28, %v564_v17  ;;  %v578_v33 = vadd.f32 -0.28449672, %v570_v19  ;;  %v584_v34 = vmul.f32 %v1056_v8, %v576_v23  ;;  %v590_v35 = vadd.f32 0.2548296, %v582_v24 }
 0x1e8   : > { %v849_v36 = vpop.eup %848  ;;  %v573_v37 = vmul.f32 %v1088_v31, %v565_v26  ;;  %v579_v38 = vadd.f32 -0.28449672, %v571_v27  ;;  %v585_v39 = vmul.f32 %v1064_v14, %v577_v29  ;;  %v591_v41 = vadd.f32 0.2548296, %v583_v30 }
 0x1e9   : > { %v580_v42 = vadd.f32 -0.28449672, %v572_v32  ;;  %v586_v43 = vmul.f32 %v1072_v22, %v578_v33  ;;  %v592_v44 = vadd.f32 0.2548296, %v584_v34  ;;  %v598_v46 = vmul.f32 %v1036_v58, %v590_v35 }
 0x1ea   : > { %v581_v47 = vadd.f32 -0.28449672, %v573_v37  ;;  %v587_v48 = vmul.f32 %v1080_v25, %v579_v38  ;;  %v593_v49 = vadd.f32 0.2548296, %v585_v39  ;;  %v599_v51 = vmul.f32 %v1048_v6, %v591_v41 }
 0x1eb   : > { %v588_v52 = vmul.f32 %v1084_v28, %v580_v42  ;;  %v594_v53 = vadd.f32 0.2548296, %v586_v43  ;;  %v600_v54 = vmul.f32 %v1056_v8, %v592_v44  ;;  %v638_v5 = vmul.f32 %v835_v40, %v598_v46 }
 0x1ec   : > { %v589_v7 = vmul.f32 %v1088_v31, %v581_v47  ;;  %v595_v15 = vadd.f32 0.2548296, %v587_v48  ;;  %v601_v58 = vmul.f32 %v1064_v14, %v593_v49  ;;  %v639_v9 = vmul.f32 %v837_v45, %v599_v51 }
 0x1ed   : > { %v596_v17 = vadd.f32 0.2548296, %v588_v52  ;;  %v602_v19 = vmul.f32 %v1072_v22, %v594_v53  ;;  %v640_v23 = vmul.f32 %v839_v50, %v600_v54  ;;  %v646_v24 = vsub.f32 1.0, %v638_v5 }
 0x1ee   : > { %v597_v26 = vadd.f32 0.2548296, %v589_v7  ;;  %v603_v6 = vmul.f32 %v1080_v25, %v595_v15  ;;  %v641_v27 = vmul.f32 %v841_v57, %v601_v58  ;;  %v647_v29 = vsub.f32 1.0, %v639_v9 }
 0x1ef   : > { %v604_v8 = vmul.f32 %v1084_v28, %v596_v17  ;;  %v642_v40 = vmul.f32 %v843_v10, %v602_v19  ;;  %v648_v30 = vsub.f32 1.0, %v640_v23  ;;  %v654_v32 = vmul.f32 %v646_v24, %v1034_v56 }
 0x1f0   : > { %v605_v14 = vmul.f32 %v1088_v31, %v597_v26  ;;  %v643_v45 = vmul.f32 %v845_v59, %v603_v6  ;;  %v649_v33 = vsub.f32 1.0, %v641_v27  ;;  %v655_v22 = vmul.f32 %v647_v29, %v1041_v3 }
 0x1f1   : > { %v644_v50 = vmul.f32 %v847_v60, %v604_v8  ;;  %v650_v34 = vsub.f32 1.0, %v642_v40  ;;  %v656_v35 = vmul.f32 %v648_v30, %v1046_v4  ;;  %v662_v25 = vadd.f32 1.0, %v654_v32 }
 0x1f2   : > { %v645_v28 = vmul.f32 %v849_v36, %v605_v14  ;;  %v651_v57 = vsub.f32 1.0, %v643_v45  ;;  %v657_v56 = vmul.f32 %v649_v33, %v1053_v16  ;;  %v663_v31 = vadd.f32 1.0, %v655_v22 }
 0x1f3   : > { %v652_v10 = vsub.f32 1.0, %v644_v50  ;;  %v658_v59 = vmul.f32 %v650_v34, %v1061_v21  ;;  %v664_v3 = vadd.f32 1.0, %v656_v35  ;;  %v670_v60 = vmul.f32 %v662_v25, %v1006_v62 }
 0x1f4   : > { %v653_v4 = vsub.f32 1.0, %v645_v28  ;;  %v659_v37 = vmul.f32 %v651_v57, %v1069_v12  ;;  %v665_v38 = vadd.f32 1.0, %v657_v56  ;;  %v671_v39 = vmul.f32 %v663_v31, %v1008_v63 }
 0x1f5   : > { %v493_v36 = vsel %vm485_vm10, 1.0, %v859_v55  ;;  %v660_v16 = vmul.f32 %v652_v10, %v1077_v18  ;;  %v666_v41 = vadd.f32 1.0, %v658_v59  ;;  %v672_v21 = vmul.f32 %v664_v3, %v1010_v0  ;;  %678 = vst.msk [vmem:[%s1130_s10] sm:$0xff] %vm339_vm2, %v670_v60 }
 0x1f6   : > { %v467_v62 = vmul.f32 0.5, %v981_v13  ;;  %v661_v12 = vmul.f32 %v653_v4, %v493_v36  ;;  %v667_v42 = vadd.f32 1.0, %v659_v37  ;;  %v673_v63 = vmul.f32 %v665_v38, %v1012_v1  ;;  %679 = vst.msk [vmem:[%s1130_s10 + $0x8] sm:$0xff] %vm339_vm2, %v671_v39 }
 0x1f7   : > { %v468_v61 = vmul.f32 0.5, %v983_v20  ;;  %v668_v55 = vadd.f32 1.0, %v660_v16  ;;  %v674_v18 = vmul.f32 %v666_v41, %v1014_v2  ;;  %680 = vst.msk [vmem:[%s1130_s10 + $0x10] sm:$0xff] %vm339_vm2, %v672_v21  ;;  %v469_v0 = vmul.f32 0.5, %v985_v11 }
 0x1f8   : > { %v669_v43 = vadd.f32 1.0, %v661_v12  ;;  %v675_v13 = vmul.f32 %v667_v42, %v467_v62  ;;  %681 = vst.msk [vmem:[%s1130_s10 + $0x18] sm:$0xff] %vm339_vm2, %v673_v63 }
 0x1f9   : > { %v676_v44 = vmul.f32 %v668_v55, %v468_v61  ;;  %682 = vst.msk [vmem:[%s1130_s10 + $0x20] sm:$0xff] %vm339_vm2, %v674_v18 }
 0x1fa   : > { %v677_v46 = vmul.f32 %v669_v43, %v469_v0  ;;  %683 = vst.msk [vmem:[%s1130_s10 + $0x28] sm:$0xff] %vm339_vm2, %v675_v13 }
 0x1fb   : > { %684 = vst.msk [vmem:[%s1130_s10 + $0x30] sm:$0xff] %vm339_vm2, %v676_v44 }
 0x1fc   : > { %685 = vst.msk [vmem:[%s1130_s10 + $0x38] sm:$0xff] %vm339_vm2, %v677_v46 }
 0x1fd PF: > { %s14_s15 = sadd.s32 1, %s856_s15  }
 0x1fe   : > { %p11_p4 = scmp.ge.s32.totalorder %s14_s15, 4  }
 0x200   :  { %13 = sbr.rel (!%p11_p4) target bundleno = 1 (0x1), region = 66 }

// kernel: _lambda_.22
= control target key start
LH: loop header
LB: loop body
LE: loop exit
PB: predicated region body
PF: predicated region fallthrough
CT: control target
= control target key end

     0   :  { %s656_s15 = smov 0   ;;  %s774_s0 = inlined_call_operand.vmem [shape: bf16[2,64,72], index: 0, kind: input, shape index: {}]   ;;  %s775_s1 = inlined_call_operand.vmem [shape: bf16[72,8], index: 1, kind: input, shape index: {}]   ;;  %s776_s2 = inlined_call_operand.vmem [shape: f32[1,8], index: 2, kind: input, shape index: {}]   ;;  %s777_s3 = inlined_call_operand.vmem [shape: f32[1,8], index: 3, kind: input, shape index: {}]   ;;  %s778_s4 = inlined_call_operand.vmem [shape: f32[2,64,8], index: 4, kind: output, shape index: {}]  }
   0x1 LB: > { %s539_s16 = sadd.s32 4294967295, %s629_s15   ;;  %p543_p0 = scmp.ge.s32.totalorder %s629_s15, 1  ;;  %s629_s15 = sphi %s656_s15, %s14_s15  }
   0x2   : > { %p162_p1 = scmp.lt.s32.totalorder %s629_s15, 3 }
   0x4   : > { %p163_p2 = pnand %p543_p0, %p162_p1 }
   0x5   : > { %v612_v0 = vld [vmem:[%s775_s1] sm:$0xff] (!%p163_p2)   ;;  %v613_v1 = vld [vmem:[%s775_s1 + $0x8] sm:$0xff] (!%p163_p2)   ;;  %p188_p3 = scmp.lt.s32.totalorder (!%p163_p2), %s539_s16, 1  ;;  %v614_v2 = vld [vmem:[%s775_s1 + $0x10] sm:$0xff] (!%p163_p2)   ;;  %vm263_vm0 = vcmask (!%p163_p2), 588800   ;;  %vm276_vm1 = vcmask (!%p163_p2), 1043456  }
   0x6   : > { %166 = sbr.rel (%p163_p2) target bundleno = 461 (0x1cd), region = 36  ;;  %574 = vmatprep.subr.bf16.mxu0 (!%p163_p2), %v612_v0  ;;  %592 = vmatprep.subr.bf16.mxu1 (!%p163_p2), %v612_v0  ;;  %v615_v4 = vld [vmem:[%s775_s1 + $0x18] sm:$0xff] (!%p163_p2)   ;;  %v616_v6 = vld [vmem:[%s775_s1 + $0x20] ss:$0 sps:$4 sm:$0xff] (!%p163_p2)   ;;  %vm345_vm2 = vcmask (!%p163_p2), 64512  }
   0x7   : > { %575 = vmatpush3.bf16.msra.mxu0 (!%p163_p2), %v612_v0  ;;  %597 = vmatpush3.bf16.msra.mxu1 (!%p163_p2), %v612_v0  ;;  %v278_v7 = vsel (!%p163_p2), %vm276_vm1, %v616_v6, 0 }
   0x8   : > { %576 = vmatprep.subr.bf16.mxu0 (!%p163_p2), %v613_v1  ;;  %593 = vmatprep.subr.bf16.mxu1 (!%p163_p2), %v613_v1 }
   0xb   : > { %577 = vmatpush3.bf16.msra.mxu0 (!%p163_p2), %v613_v1  ;;  %598 = vmatpush3.bf16.msra.mxu1 (!%p163_p2), %v613_v1 }
   0xc   : > { %578 = vmatprep.subr.bf16.mxu0 (!%p163_p2), %v614_v2  ;;  %594 = vmatprep.subr.bf16.mxu1 (!%p163_p2), %v614_v2 }
   0xd   : > { %s780_s16 = smov (!%p188_p3, %s539_s16), 1 }
   0xe   : > { %s563_s23 = sshll.u32 %s780_s16, 5  ;;  %s564_s9 = sshll.u32 %s780_s16, 6 }
   0xf   : > { %s192_s26 = scalar_lea.vmem %s774_s0, %s563_s23  ;;  %579 = vmatpush3.bf16.msra.mxu0 %v614_v2  ;;  %599 = vmatpush3.bf16.msra.mxu1 %v614_v2  ;;  %s197_s12 = scalar_lea.vmem %s778_s4, %s564_s9 }
  0x10   : > { %v617_v3 = vld [vmem:[%s192_s26] sm:$0xff]   ;;  %v619_v5 = vld [vmem:[%s192_s26 + $0x10] sm:$0xff]   ;;  %580 = vmatprep.subr.bf16.mxu0 %v615_v4  ;;  %595 = vmatprep.subr.bf16.mxu1 %v615_v4  ;;  %v618_v8 = vld [vmem:[%s192_s26 + $0x8] sm:$0xff]  }
  0x11   : > { %584 = vmatprep.mubr.msk.bf16.mxu0 %vm263_vm0, %v617_v3  ;;  %588 = vmatprep.mubr.msk.bf16.mxu1 %vm263_vm0, %v619_v5  ;;  %v620_v9 = vld [vmem:[%s192_s26 + $0x18] sm:$0xff]  }
  0x13   : > { %581 = vmatpush3.bf16.msra.mxu0 %v615_v4  ;;  %600 = vmatpush3.bf16.msra.mxu1 %v615_v4 }
  0x14   : > { %602 = vmatprep.subr.msk.bf16.mxu0 %vm276_vm1, %v616_v6  ;;  %603 = vmatprep.subr.msk.bf16.mxu1 %vm276_vm1, %v616_v6 }
  0x17   : > { %583 = vmatpush3.bf16.msra.mxu0 %v278_v7  ;;  %601 = vmatpush3.bf16.msra.mxu1 %v278_v7 }
  0x1a   : > { %585 = vmatmul.mubr.msk.bf16.vlgmr.msra.gmra.mrb[0].mxu0 %vm263_vm0, %v618_v8  ;;  %589 = vmatmul.mubr.msk.bf16.vlgmr.msra.gmra.mrb[0].mxu1 %vm263_vm0, %v620_v9 }
  0xed   : > { %v689_v10 = vpop.f32.mrb[0].mxu0  ;;  %v691_v11 = vpop.f32.mrb[0].mxu1 }
  0xee   : > { %v693_v12 = vpop.f32.mrb[1].mxu0  ;;  %v352_v13 = vsel %vm345_vm2, %v689_v10, 0.0  ;;  %v697_v14 = vpop.f32.mrb[1].mxu1  ;;  %v385_v18 = vmul.f32 %v689_v10, %v689_v10  ;;  %v364_v33 = vsel %vm345_vm2, %v691_v11, 0.0  ;;  %v389_v39 = vmul.f32 %v691_v11, %v691_v11 }
  0xef   : > { %353 = vadd.xlane.f32.xlu1 %v352_v13  ;;  %v699_v15 = vpop.f32.mrb[2].mxu0  ;;  %v346_v16 = vsel %vm345_vm2, %v693_v12, 0.0  ;;  %v703_v17 = vpop.f32.mrb[2].mxu1  ;;  %v358_v21 = vsel %vm345_vm2, %v697_v14, 0.0  ;;  %v383_v24 = vmul.f32 %v693_v12, %v693_v12  ;;  %v387_v32 = vmul.f32 %v697_v14, %v697_v14 }
  0xf0   : > { %347 = vadd.xlane.f32.xlu0 %v346_v16  ;;  %v707_v19 = vpop.f32.mrb[3].mxu0  ;;  %v709_v20 = vpop.f32.mrb[3].mxu1  ;;  %v397_v22 = vsel %vm345_vm2, %v385_v18, 0.0  ;;  %v355_v23 = vsel %vm345_vm2, %v699_v15, 0.0  ;;  %v386_v26 = vmul.f32 %v699_v15, %v699_v15  ;;  %v367_v36 = vsel %vm345_vm2, %v703_v17, 0.0 }
  0xf1   : > { %v349_v25 = vsel %vm345_vm2, %v707_v19, 0.0  ;;  %v391_v27 = vsel %vm345_vm2, %v383_v24, 0.0  ;;  %v384_v28 = vmul.f32 %v707_v19, %v707_v19  ;;  %v361_v30 = vsel %vm345_vm2, %v709_v20, 0.0 }
  0xf2   : > { %v400_v29 = vsel %vm345_vm2, %v386_v26, 0.0  ;;  %v388_v34 = vmul.f32 %v709_v20, %v709_v20  ;;  %v403_v35 = vsel %vm345_vm2, %v387_v32, 0.0  ;;  %v390_v37 = vmul.f32 %v703_v17, %v703_v17 }
  0xf3   : > { %359 = vadd.xlane.f32.xlu1 %v358_v21  ;;  %v394_v31 = vsel %vm345_vm2, %v384_v28, 0.0  ;;  %v409_v41 = vsel %vm345_vm2, %v389_v39, 0.0 }
  0xf4   : > { %398 = vadd.xlane.f32.xlu0 %v397_v22  ;;  %v406_v38 = vsel %vm345_vm2, %v388_v34, 0.0  ;;  %v412_v40 = vsel %vm345_vm2, %v390_v37, 0.0  ;;  %v441_v34 = vlaneseq }
  0xf7   : > { %356 = vadd.xlane.f32.xlu1 %v355_v23 }
  0xf8   : > { %350 = vadd.xlane.f32.xlu0 %v349_v25 }
  0xfb   : > { %392 = vadd.xlane.f32.xlu1 %v391_v27 }
  0xfc   : > { %401 = vadd.xlane.f32.xlu0 %v400_v29 }
  0xff   : > { %362 = vadd.xlane.f32.xlu1 %v361_v30 }
 0x100   : > { %395 = vadd.xlane.f32.xlu0 %v394_v31 }
 0x103   : > { %365 = vadd.xlane.f32.xlu1 %v364_v33 }
 0x104   : > { %404 = vadd.xlane.f32.xlu0 %v403_v35  ;;  %v442_v35 = vshrl.u32 %v441_v34, 7 }
 0x106   : > { %v443_v37 = vsub.s32 0, %v442_v35 }
 0x107   : > { %368 = vadd.xlane.f32.xlu1 %v367_v36  ;;  %v433_v36 = vld [vmem:[%s776_s2] sm:$0x1] }
 0x108   : > { %407 = vadd.xlane.f32.xlu0 %v406_v38 }
 0x10b   : > { %413 = vadd.xlane.f32.xlu1 %v412_v40  ;;  %v437_v40 = vld [vmem:[%s777_s3] sm:$0x1] }
 0x10c   : > { %410 = vadd.xlane.f32.xlu0 %v409_v41 }
 0x17c   : > { %v354_v42 = vpop.xlane.xlu1 %353 }
 0x17d   : > { %v348_v43 = vpop.xlane.xlu0 %347 }
 0x180   : > { %v360_v44 = vpop.xlane.xlu1 %359 }
 0x181   : > { %v399_v45 = vpop.xlane.xlu0 %398 }
 0x184   : > { %v357_v46 = vpop.xlane.xlu1 %356 }
 0x185   : > { %v351_v47 = vpop.xlane.xlu0 %350 }
 0x186   : > { %v370_v48 = vadd.f32 %v351_v47, %v348_v43 }
 0x188   : > { %v371_v49 = vadd.f32 %v370_v48, %v354_v42  ;;  %v393_v50 = vpop.xlane.xlu1 %392 }
 0x189   : > { %v402_v51 = vpop.xlane.xlu0 %401 }
 0x18a   : > { %v372_v52 = vadd.f32 %v371_v49, %v357_v46 }
 0x18c   : > { %v363_v53 = vpop.xlane.xlu1 %362  ;;  %v373_v54 = vadd.f32 %v372_v52, %v360_v44 }
 0x18d   : > { %v396_v55 = vpop.xlane.xlu0 %395 }
 0x18e   : > { %v415_v56 = vadd.f32 %v396_v55, %v393_v50  ;;  %v374_v57 = vadd.f32 %v373_v54, %v363_v53 }
 0x190   : > { %v416_v58 = vadd.f32 %v415_v56, %v399_v45  ;;  %v366_v59 = vpop.xlane.xlu1 %365 }
 0x191   : > { %v405_v60 = vpop.xlane.xlu0 %404  ;;  %v375_v62 = vadd.f32 %v374_v57, %v366_v59 }
 0x192   : > { %v417_v61 = vadd.f32 %v416_v58, %v402_v51 }
 0x194   : > { %v418_v63 = vadd.f32 %v417_v61, %v405_v60  ;;  %v369_v0 = vpop.xlane.xlu1 %368 }
 0x195   : > { %v376_v1 = vadd.f32 %v375_v62, %v369_v0  ;;  %v408_v2 = vpop.xlane.xlu0 %407 }
 0x196   : > { %v419_v4 = vadd.f32 %v418_v63, %v408_v2 }
 0x197   : > { %v377_v3 = vrot.slane %v376_v1, 4 }
 0x198   : > { %v414_v9 = vpop.xlane.xlu1 %413 }
 0x199   : > { %v378_v5 = vadd.f32 %v377_v3, %v376_v1  ;;  %v411_v6 = vpop.xlane.xlu0 %410 }
 0x19a   : > { %v420_v7 = vadd.f32 %v419_v4, %v411_v6 }
 0x19b   : > { %v379_v8 = vrot.slane %v378_v5, 2 }
 0x19c   : > { %v421_v13 = vadd.f32 %v420_v7, %v414_v9 }
 0x19d   : > { %v380_v16 = vadd.f32 %v379_v8, %v378_v5 }
 0x19e   : > { %v422_v18 = vrot.slane %v421_v13, 4 }
 0x19f   : > { %v381_v21 = vrot.slane %v380_v16, 1 }
 0x1a0   : > { %v423_v22 = vadd.f32 %v422_v18, %v421_v13 }
 0x1a1   : > { %v382_v23 = vadd.f32 %v381_v21, %v380_v16 }
 0x1a2   : > { %v424_v24 = vrot.slane %v423_v22, 2 }
 0x1a3   : > { %v428_v26 = vmul.f32 0.001953125, %v382_v23 }
 0x1a4   : > { %v425_v25 = vadd.f32 %v424_v24, %v423_v22 }
 0x1a5   : > { %v430_v29 = vmul.f32 %v428_v26, %v428_v26 }
 0x1a6   : > { %v426_v27 = vrot.slane %v425_v25, 1 }
 0x1a8   : > { %v427_v28 = vadd.f32 %v426_v27, %v425_v25 }
 0x1aa   : > { %v429_v30 = vmul.f32 0.001953125, %v427_v28 }
 0x1ac   : > { %v431_v31 = vsub.f32 %v429_v30, %v430_v29 }
 0x1ae   : > { %v432_v32 = vmax.f32 %v431_v31, 0.0 }
 0x1b0   : > { %v434_v33 = vadd.f32 1e-05, %v432_v32 }
 0x1b2   : > { %621 = vrsqrt.f32 %v434_v33 }
 0x1bc   : > { %v622_v38 = vpop.eup %621 }
 0x1bd   : > { %v436_v39 = vmul.f32 %v622_v38, %v433_v36 }
 0x1bf   : > { %v438_v41 = vmul.f32 %v436_v39, %v428_v26  ;;  %v444_v42 = vrot.slane %v436_v39, %v443_v37 }
 0x1c1   : > { %v439_v43 = vsub.f32 %v437_v40, %v438_v41  ;;  %v446_v44 = vmul.f32 %v444_v42, %v693_v12  ;;  %v447_v45 = vmul.f32 %v444_v42, %v707_v19  ;;  %v448_v46 = vmul.f32 %v689_v10, %v444_v42 }
 0x1c2   : > { %v449_v47 = vmul.f32 %v699_v15, %v444_v42  ;;  %v450_v49 = vmul.f32 %v444_v42, %v697_v14  ;;  %v451_v50 = vmul.f32 %v444_v42, %v709_v20  ;;  %v452_v51 = vmul.f32 %v691_v11, %v444_v42 }
 0x1c3   : > { %v458_v48 = vrot.slane %v439_v43, %v443_v37  ;;  %v453_v52 = vmul.f32 %v703_v17, %v444_v42 }
 0x1c5   : > { %v460_v53 = vadd.f32 %v458_v48, %v446_v44  ;;  %v461_v54 = vadd.f32 %v458_v48, %v447_v45  ;;  %v462_v55 = vadd.f32 %v458_v48, %v448_v46  ;;  %v463_v12 = vadd.f32 %v458_v48, %v449_v47 }
 0x1c6   : > { %v464_v10 = vadd.f32 %v458_v48, %v450_v49  ;;  %v465_v19 = vadd.f32 %v458_v48, %v451_v50  ;;  %v466_v15 = vadd.f32 %v458_v48, %v452_v51  ;;  %v467_v56 = vadd.f32 %v458_v48, %v453_v52 }
 0x1c7   : > { %v468_v57 = vmax.f32 %v460_v53, 0.0  ;;  %v469_v14 = vmax.f32 %v461_v54, 0.0  ;;  %v470_v58 = vmax.f32 %v462_v55, 0.0  ;;  %v471_v20 = vmax.f32 %v463_v12, 0.0 }
 0x1c8   : > { %v472_v59 = vmax.f32 %v464_v10, 0.0  ;;  %v473_v11 = vmax.f32 %v465_v19, 0.0  ;;  %v474_v60 = vmax.f32 %v466_v15, 0.0  ;;  %v475_v17 = vmax.f32 %v467_v56, 0.0 }
 0x1c9   : > { %476 = vst.msk [vmem:[%s197_s12] sm:$0xff] %vm345_vm2, %v468_v57  ;;  %477 = vst.msk [vmem:[%s197_s12 + $0x8] sm:$0xff] %vm345_vm2, %v469_v14 }
 0x1ca   : > { %478 = vst.msk [vmem:[%s197_s12 + $0x10] sm:$0xff] %vm345_vm2, %v470_v58  ;;  %479 = vst.msk [vmem:[%s197_s12 + $0x18] sm:$0xff] %vm345_vm2, %v471_v20 }
 0x1cb   : > { %480 = vst.msk [vmem:[%s197_s12 + $0x20] sm:$0xff] %vm345_vm2, %v472_v59  ;;  %481 = vst.msk [vmem:[%s197_s12 + $0x28] sm:$0xff] %vm345_vm2, %v473_v11 }
 0x1cc   : > { %482 = vst.msk [vmem:[%s197_s12 + $0x30] sm:$0xff] %vm345_vm2, %v474_v60  ;;  %483 = vst.msk [vmem:[%s197_s12 + $0x38] sm:$0xff] %vm345_vm2, %v475_v17 }
 0x1cd PF: > { %s14_s15 = sadd.s32 1, %s629_s15  }
 0x1ce   : > { %p11_p4 = scmp.ge.s32.totalorder %s14_s15, 4  }
 0x1d0   :  { %13 = sbr.rel (!%p11_p4) target bundleno = 1 (0x1), region = 66 }

// kernel: _lambda_.23
= control target key start
LH: loop header
LB: loop body
LE: loop exit
PB: predicated region body
PF: predicated region fallthrough
CT: control target
= control target key end

     0   :  { %s981_s18 = smov 0   ;;  %s1276_s0 = inlined_call_operand.vmem [shape: bf16[2,64,72], index: 0, kind: input, shape index: {}]   ;;  %s1277_s1 = inlined_call_operand.vmem [shape: bf16[72,8], index: 1, kind: input, shape index: {}]   ;;  %s1278_s2 = inlined_call_operand.vmem [shape: f32[1,8], index: 2, kind: input, shape index: {}]   ;;  %s1279_s3 = inlined_call_operand.vmem [shape: f32[1,8], index: 3, kind: input, shape index: {}]   ;;  %s1280_s4 = inlined_call_operand.vmem [shape: f32[2,64,8], index: 4, kind: input, shape index: {}]   ;;  %s1281_s5 = inlined_call_operand.vmem [shape: f32[2,64,8], index: 5, kind: output, shape index: {}]  }
   0x1 LB: > { %s822_s19 = sadd.s32 4294967295, %s948_s18   ;;  %p826_p0 = scmp.ge.s32.totalorder %s948_s18, 1  ;;  %s948_s18 = sphi %s981_s18, %s15_s18  }
   0x2   : > { %p197_p1 = scmp.lt.s32.totalorder %s948_s18, 3 }
   0x4   : > { %p198_p2 = pnand %p826_p0, %p197_p1 }
   0x5   : > { %v899_v0 = vld [vmem:[%s1277_s1] sm:$0xff] (!%p198_p2)   ;;  %v900_v1 = vld [vmem:[%s1277_s1 + $0x8] sm:$0xff] (!%p198_p2)   ;;  %p230_p3 = scmp.lt.s32.totalorder (!%p198_p2), %s822_s19, 1  ;;  %v901_v2 = vld [vmem:[%s1277_s1 + $0x10] sm:$0xff] (!%p198_p2)   ;;  %vm310_vm0 = vcmask (!%p198_p2), 588800   ;;  %vm323_vm1 = vcmask (!%p198_p2), 1043456  }
   0x6   : > { %201 = sbr.rel (%p198_p2) target bundleno = 515 (0x203), region = 40  ;;  %860 = vmatprep.subr.bf16.mxu0 (!%p198_p2), %v899_v0  ;;  %878 = vmatprep.subr.bf16.mxu1 (!%p198_p2), %v899_v0  ;;  %v902_v4 = vld [vmem:[%s1277_s1 + $0x18] sm:$0xff] (!%p198_p2)   ;;  %v903_v5 = vld [vmem:[%s1277_s1 + $0x20] ss:$0 sps:$4 sm:$0xff] (!%p198_p2)   ;;  %vm392_vm2 = vcmask (!%p198_p2), 64512  }
   0x7   : > { %861 = vmatpush3.bf16.msra.mxu0 (!%p198_p2), %v899_v0  ;;  %883 = vmatpush3.bf16.msra.mxu1 (!%p198_p2), %v899_v0  ;;  %v325_v7 = vsel (!%p198_p2), %vm323_vm1, %v903_v5, 0 }
   0x8   : > { %862 = vmatprep.subr.bf16.mxu0 (!%p198_p2), %v900_v1  ;;  %879 = vmatprep.subr.bf16.mxu1 (!%p198_p2), %v900_v1 }
   0xb   : > { %863 = vmatpush3.bf16.msra.mxu0 (!%p198_p2), %v900_v1  ;;  %884 = vmatpush3.bf16.msra.mxu1 (!%p198_p2), %v900_v1 }
   0xc   : > { %864 = vmatprep.subr.bf16.mxu0 (!%p198_p2), %v901_v2  ;;  %880 = vmatprep.subr.bf16.mxu1 (!%p198_p2), %v901_v2 }
   0xd   : > { %s1283_s19 = smov (!%p230_p3, %s822_s19), 1 }
   0xe   : > { %s848_s26 = sshll.u32 %s1283_s19, 5  ;;  %s849_s11 = sshll.u32 %s1283_s19, 6 }
   0xf   : > { %s234_s29 = scalar_lea.vmem %s1276_s0, %s848_s26  ;;  %865 = vmatpush3.bf16.msra.mxu0 %v901_v2  ;;  %885 = vmatpush3.bf16.msra.mxu1 %v901_v2  ;;  %s239_s16 = scalar_lea.vmem %s1280_s4, %s849_s11 }
  0x10   : > { %v904_v3 = vld [vmem:[%s234_s29] sm:$0xff]   ;;  %866 = vmatprep.subr.bf16.mxu0 %v902_v4  ;;  %881 = vmatprep.subr.bf16.mxu1 %v902_v4  ;;  %v906_v6 = vld [vmem:[%s234_s29 + $0x10] sm:$0xff]   ;;  %v905_v8 = vld [vmem:[%s234_s29 + $0x8] sm:$0xff]   ;;  %s1240_s21 = scalar_lea.vmem %s1281_s5, %s849_s11 }
  0x11   : > { %870 = vmatprep.mubr.msk.bf16.mxu0 %vm310_vm0, %v904_v3  ;;  %874 = vmatprep.mubr.msk.bf16.mxu1 %vm310_vm0, %v906_v6  ;;  %v907_v9 = vld [vmem:[%s234_s29 + $0x18] sm:$0xff]  }
  0x13   : > { %867 = vmatpush3.bf16.msra.mxu0 %v902_v4  ;;  %886 = vmatpush3.bf16.msra.mxu1 %v902_v4 }
  0x14   : > { %888 = vmatprep.subr.msk.bf16.mxu0 %vm323_vm1, %v903_v5  ;;  %889 = vmatprep.subr.msk.bf16.mxu1 %vm323_vm1, %v903_v5 }
  0x17   : > { %869 = vmatpush3.bf16.msra.mxu0 %v325_v7  ;;  %887 = vmatpush3.bf16.msra.mxu1 %v325_v7 }
  0x1a   : > { %871 = vmatmul.mubr.msk.bf16.vlgmr.msra.gmra.mrb[0].mxu0 %vm310_vm0, %v905_v8  ;;  %875 = vmatmul.mubr.msk.bf16.vlgmr.msra.gmra.mrb[0].mxu1 %vm310_vm0, %v907_v9 }
  0xed   : > { %v1014_v10 = vpop.f32.mrb[0].mxu0  ;;  %v1016_v11 = vpop.f32.mrb[0].mxu1 }
  0xee   : > { %v1018_v12 = vpop.f32.mrb[1].mxu0  ;;  %v399_v13 = vsel %vm392_vm2, %v1014_v10, 0.0  ;;  %v1022_v14 = vpop.f32.mrb[1].mxu1  ;;  %v432_v18 = vmul.f32 %v1014_v10, %v1014_v10  ;;  %v411_v33 = vsel %vm392_vm2, %v1016_v11, 0.0  ;;  %v436_v39 = vmul.f32 %v1016_v11, %v1016_v11 }
  0xef   : > { %400 = vadd.xlane.f32.xlu1 %v399_v13  ;;  %v1024_v15 = vpop.f32.mrb[2].mxu0  ;;  %v393_v16 = vsel %vm392_vm2, %v1018_v12, 0.0  ;;  %v1028_v17 = vpop.f32.mrb[2].mxu1  ;;  %v405_v21 = vsel %vm392_vm2, %v1022_v14, 0.0  ;;  %v430_v24 = vmul.f32 %v1018_v12, %v1018_v12  ;;  %v434_v32 = vmul.f32 %v1022_v14, %v1022_v14 }
  0xf0   : > { %394 = vadd.xlane.f32.xlu0 %v393_v16  ;;  %v1032_v19 = vpop.f32.mrb[3].mxu0  ;;  %v1034_v20 = vpop.f32.mrb[3].mxu1  ;;  %v444_v22 = vsel %vm392_vm2, %v432_v18, 0.0  ;;  %v402_v23 = vsel %vm392_vm2, %v1024_v15, 0.0  ;;  %v433_v26 = vmul.f32 %v1024_v15, %v1024_v15  ;;  %v414_v36 = vsel %vm392_vm2, %v1028_v17, 0.0 }
  0xf1   : > { %v396_v25 = vsel %vm392_vm2, %v1032_v19, 0.0  ;;  %v438_v27 = vsel %vm392_vm2, %v430_v24, 0.0  ;;  %v431_v28 = vmul.f32 %v1032_v19, %v1032_v19  ;;  %v408_v30 = vsel %vm392_vm2, %v1034_v20, 0.0 }
  0xf2   : > { %v447_v29 = vsel %vm392_vm2, %v433_v26, 0.0  ;;  %v435_v34 = vmul.f32 %v1034_v20, %v1034_v20  ;;  %v450_v35 = vsel %vm392_vm2, %v434_v32, 0.0  ;;  %v437_v37 = vmul.f32 %v1028_v17, %v1028_v17 }
  0xf3   : > { %406 = vadd.xlane.f32.xlu1 %v405_v21  ;;  %v441_v31 = vsel %vm392_vm2, %v431_v28, 0.0  ;;  %v456_v41 = vsel %vm392_vm2, %v436_v39, 0.0 }
  0xf4   : > { %445 = vadd.xlane.f32.xlu0 %v444_v22  ;;  %v453_v38 = vsel %vm392_vm2, %v435_v34, 0.0  ;;  %v459_v40 = vsel %vm392_vm2, %v437_v37, 0.0  ;;  %v488_v34 = vlaneseq }
  0xf7   : > { %403 = vadd.xlane.f32.xlu1 %v402_v23 }
  0xf8   : > { %397 = vadd.xlane.f32.xlu0 %v396_v25 }
  0xfb   : > { %439 = vadd.xlane.f32.xlu1 %v438_v27 }
  0xfc   : > { %448 = vadd.xlane.f32.xlu0 %v447_v29 }
  0xff   : > { %409 = vadd.xlane.f32.xlu1 %v408_v30 }
 0x100   : > { %442 = vadd.xlane.f32.xlu0 %v441_v31 }
 0x103   : > { %412 = vadd.xlane.f32.xlu1 %v411_v33 }
 0x104   : > { %451 = vadd.xlane.f32.xlu0 %v450_v35  ;;  %v489_v35 = vshrl.u32 %v488_v34, 7 }
 0x106   : > { %v490_v37 = vsub.s32 0, %v489_v35 }
 0x107   : > { %415 = vadd.xlane.f32.xlu1 %v414_v36  ;;  %v480_v36 = vld [vmem:[%s1278_s2] sm:$0x1] }
 0x108   : > { %454 = vadd.xlane.f32.xlu0 %v453_v38 }
 0x10b   : > { %460 = vadd.xlane.f32.xlu1 %v459_v40  ;;  %v484_v40 = vld [vmem:[%s1279_s3] sm:$0x1] }
 0x10c   : > { %457 = vadd.xlane.f32.xlu0 %v456_v41 }
 0x17c   : > { %v401_v42 = vpop.xlane.xlu1 %400 }
 0x17d   : > { %v395_v43 = vpop.xlane.xlu0 %394 }
 0x180   : > { %v407_v44 = vpop.xlane.xlu1 %406 }
 0x181   : > { %v446_v45 = vpop.xlane.xlu0 %445 }
 0x184   : > { %v404_v46 = vpop.xlane.xlu1 %403 }
 0x185   : > { %v398_v47 = vpop.xlane.xlu0 %397 }
 0x186   : > { %v417_v48 = vadd.f32 %v398_v47, %v395_v43 }
 0x188   : > { %v418_v49 = vadd.f32 %v417_v48, %v401_v42  ;;  %v440_v50 = vpop.xlane.xlu1 %439 }
 0x189   : > { %v449_v51 = vpop.xlane.xlu0 %448 }
 0x18a   : > { %v419_v52 = vadd.f32 %v418_v49, %v404_v46  ;;  %v516_v46 = vld [vmem:[%s239_s16 + $0x8] sm:$0xff] }
 0x18c   : > { %v410_v53 = vpop.xlane.xlu1 %409  ;;  %v420_v54 = vadd.f32 %v419_v52, %v407_v44  ;;  %v518_v52 = vld [vmem:[%s239_s16 + $0x18] sm:$0xff] }
 0x18d   : > { %v443_v55 = vpop.xlane.xlu0 %442 }
 0x18e   : > { %v462_v56 = vadd.f32 %v443_v55, %v440_v50  ;;  %v421_v57 = vadd.f32 %v420_v54, %v410_v53  ;;  %v519_v53 = vld [vmem:[%s239_s16 + $0x20] sm:$0xff] }
 0x190   : > { %v463_v58 = vadd.f32 %v462_v56, %v446_v45  ;;  %v413_v59 = vpop.xlane.xlu1 %412  ;;  %v515_v45 = vld [vmem:[%s239_s16] sm:$0xff] }
 0x191   : > { %v452_v60 = vpop.xlane.xlu0 %451  ;;  %v422_v62 = vadd.f32 %v421_v57, %v413_v59  ;;  %v520_v57 = vld [vmem:[%s239_s16 + $0x28] sm:$0xff]  ;;  %v522_v59 = vld [vmem:[%s239_s16 + $0x38] sm:$0xff] }
 0x192   : > { %v464_v61 = vadd.f32 %v463_v58, %v449_v51  ;;  %v517_v51 = vld [vmem:[%s239_s16 + $0x10] sm:$0xff] }
 0x193   : > { %v521_v58 = vld [vmem:[%s239_s16 + $0x30] sm:$0xff] }
 0x194   : > { %v465_v63 = vadd.f32 %v464_v61, %v452_v60  ;;  %v416_v0 = vpop.xlane.xlu1 %415 }
 0x195   : > { %v423_v1 = vadd.f32 %v422_v62, %v416_v0  ;;  %v455_v2 = vpop.xlane.xlu0 %454 }
 0x196   : > { %v466_v4 = vadd.f32 %v465_v63, %v455_v2 }
 0x197   : > { %v424_v3 = vrot.slane %v423_v1, 4 }
 0x198   : > { %v461_v9 = vpop.xlane.xlu1 %460 }
 0x199   : > { %v425_v5 = vadd.f32 %v424_v3, %v423_v1  ;;  %v458_v6 = vpop.xlane.xlu0 %457 }
 0x19a   : > { %v467_v7 = vadd.f32 %v466_v4, %v458_v6 }
 0x19b   : > { %v426_v8 = vrot.slane %v425_v5, 2 }
 0x19c   : > { %v468_v13 = vadd.f32 %v467_v7, %v461_v9 }
 0x19d   : > { %v427_v16 = vadd.f32 %v426_v8, %v425_v5 }
 0x19e   : > { %v469_v18 = vrot.slane %v468_v13, 4 }
 0x19f   : > { %v428_v21 = vrot.slane %v427_v16, 1 }
 0x1a0   : > { %v470_v22 = vadd.f32 %v469_v18, %v468_v13 }
 0x1a1   : > { %v429_v23 = vadd.f32 %v428_v21, %v427_v16 }
 0x1a2   : > { %v471_v24 = vrot.slane %v470_v22, 2 }
 0x1a3   : > { %v475_v26 = vmul.f32 0.001953125, %v429_v23 }
 0x1a4   : > { %v472_v25 = vadd.f32 %v471_v24, %v470_v22 }
 0x1a5   : > { %v477_v29 = vmul.f32 %v475_v26, %v475_v26 }
 0x1a6   : > { %v473_v27 = vrot.slane %v472_v25, 1 }
 0x1a8   : > { %v474_v28 = vadd.f32 %v473_v27, %v472_v25 }
 0x1aa   : > { %v476_v30 = vmul.f32 0.001953125, %v474_v28 }
 0x1ac   : > { %v478_v31 = vsub.f32 %v476_v30, %v477_v29 }
 0x1ae   : > { %v479_v32 = vmax.f32 %v478_v31, 0.0 }
 0x1b0   : > { %v481_v33 = vadd.f32 1e-05, %v479_v32 }
 0x1b2   : > { %908 = vrsqrt.f32 %v481_v33 }
 0x1bc   : > { %v909_v38 = vpop.eup %908 }
 0x1bd   : > { %v483_v39 = vmul.f32 %v909_v38, %v480_v36 }
 0x1bf   : > { %v485_v41 = vmul.f32 %v483_v39, %v475_v26  ;;  %v491_v42 = vrot.slane %v483_v39, %v490_v37 }
 0x1c1   : > { %v486_v43 = vsub.f32 %v484_v40, %v485_v41  ;;  %v493_v44 = vmul.f32 %v491_v42, %v1018_v12  ;;  %v494_v47 = vmul.f32 %v491_v42, %v1032_v19  ;;  %v495_v48 = vmul.f32 %v1014_v10, %v491_v42 }
 0x1c2   : > { %v496_v49 = vmul.f32 %v1024_v15, %v491_v42  ;;  %v497_v54 = vmul.f32 %v491_v42, %v1022_v14  ;;  %v498_v55 = vmul.f32 %v491_v42, %v1034_v20  ;;  %v499_v56 = vmul.f32 %v1016_v11, %v491_v42 }
 0x1c3   : > { %v505_v50 = vrot.slane %v486_v43, %v490_v37  ;;  %v500_v12 = vmul.f32 %v1028_v17, %v491_v42 }
 0x1c5   : > { %v507_v19 = vadd.f32 %v505_v50, %v493_v44  ;;  %v508_v60 = vadd.f32 %v505_v50, %v494_v47  ;;  %v509_v10 = vadd.f32 %v505_v50, %v495_v48  ;;  %v510_v61 = vadd.f32 %v505_v50, %v496_v49 }
 0x1c6   : > { %v511_v15 = vadd.f32 %v505_v50, %v497_v54  ;;  %v512_v62 = vadd.f32 %v505_v50, %v498_v55  ;;  %v513_v63 = vadd.f32 %v505_v50, %v499_v56  ;;  %v514_v0 = vadd.f32 %v505_v50, %v500_v12 }
 0x1c7   : > { %v523_v1 = vadd.f32 %v515_v45, %v507_v19  ;;  %v524_v2 = vadd.f32 %v516_v46, %v508_v60  ;;  %v525_v14 = vadd.f32 %v517_v51, %v509_v10  ;;  %v526_v3 = vadd.f32 %v518_v52, %v510_v61 }
 0x1c8   : > { %v527_v20 = vadd.f32 %v519_v53, %v511_v15  ;;  %v1090_v4 = vadd.f32 %v520_v57, %v512_v62  ;;  %v1092_v11 = vadd.f32 %v521_v58, %v513_v63  ;;  %v1094_v17 = vadd.f32 %v522_v59, %v514_v0 }
 0x1c9   : > { %v1096_v5 = vmul.f32 0.70710677, %v523_v1  ;;  %v1098_v6 = vmul.f32 0.70710677, %v524_v2  ;;  %v1100_v7 = vmul.f32 0.70710677, %v525_v14 }
 0x1ca   : > { %v1102_v8 = vmul.f32 0.70710677, %v526_v3  ;;  %v1104_v9 = vmul.f32 0.70710677, %v527_v20  ;;  %v1107_v13 = vmul.f32 0.70710677, %v1090_v4 }
 0x1cb   : > { %v1110_v16 = vmul.f32 0.70710677, %v1092_v11  ;;  %v1113_v18 = vmul.f32 0.70710677, %v1094_v17  ;;  %v1115_v21 = vmul.f32 0.5, %v523_v1  ;;  %v1117_v22 = vmul.f32 0.5, %v524_v2 }
 0x1cc   : > { %v1119_v23 = vmul.f32 0.5, %v525_v14  ;;  %v1121_v24 = vmul.f32 0.5, %v526_v3  ;;  %v1123_v25 = vmul.f32 0.5, %v527_v20  ;;  %v563_v26 = vand.u32 2147483647, %v1096_v5 }
 0x1cd   : > { %v564_v27 = vand.u32 2147483647, %v1098_v6  ;;  %v565_v28 = vand.u32 2147483647, %v1100_v7  ;;  %v566_v29 = vand.u32 2147483647, %v1102_v8 }
 0x1ce   : > { %v567_v30 = vand.u32 2147483647, %v1104_v9  ;;  %v568_v31 = vand.u32 2147483647, %v1107_v13  ;;  %v569_v32 = vand.u32 2147483647, %v1110_v16 }
 0x1cf   : > { %v570_v33 = vand.u32 2147483647, %v1113_v18  ;;  %v571_v34 = vmul.f32 0.3275911, %v563_v26  ;;  %v572_v35 = vmul.f32 0.3275911, %v564_v27 }
 0x1d0   : > { %v573_v36 = vmul.f32 0.3275911, %v565_v28  ;;  %v574_v37 = vmul.f32 0.3275911, %v566_v29  ;;  %v575_v38 = vmul.f32 0.3275911, %v567_v30 }
 0x1d1   : > { %v576_v39 = vmul.f32 0.3275911, %v568_v31  ;;  %v577_v40 = vmul.f32 0.3275911, %v569_v32  ;;  %v578_v41 = vmul.f32 0.3275911, %v570_v33 }
 0x1d2   : > { %v579_v42 = vadd.f32 1.0, %v571_v34  ;;  %v580_v43 = vadd.f32 1.0, %v572_v35  ;;  %vm547_vm3 = vcmp.ge.f32.partialorder %v1096_v5, 0.0  ;;  %v581_v44 = vadd.f32 1.0, %v573_v36 }
 0x1d3   : > { %v582_v45 = vadd.f32 1.0, %v574_v37  ;;  %v583_v46 = vadd.f32 1.0, %v575_v38  ;;  %v584_v47 = vadd.f32 1.0, %v576_v39  ;;  %v585_v48 = vadd.f32 1.0, %v577_v40 }
 0x1d4   : > { %910 = vrcp.f32 %v579_v42  ;;  %v675_v49 = vsub.f32 0.0, %v563_v26  ;;  %v676_v50 = vsub.f32 0.0, %v564_v27  ;;  %v677_v51 = vsub.f32 0.0, %v565_v28 }
 0x1d5   : > { %912 = vrcp.f32 %v580_v43  ;;  %v678_v52 = vsub.f32 0.0, %v566_v29  ;;  %v586_v53 = vadd.f32 1.0, %v578_v41  ;;  %v679_v54 = vsub.f32 0.0, %v567_v30 }
 0x1d6   : > { %914 = vrcp.f32 %v581_v44  ;;  %v680_v55 = vsub.f32 0.0, %v568_v31  ;;  %v681_v56 = vsub.f32 0.0, %v569_v32  ;;  %v683_v12 = vmul.f32 %v675_v49, %v563_v26 }
 0x1d7   : > { %916 = vrcp.f32 %v582_v45  ;;  %v684_v57 = vmul.f32 %v676_v50, %v564_v27  ;;  %v682_v58 = vsub.f32 0.0, %v570_v33  ;;  %v685_v59 = vmul.f32 %v677_v51, %v565_v28 }
 0x1d8   : > { %918 = vrcp.f32 %v583_v46  ;;  %v686_v19 = vmul.f32 %v678_v52, %v566_v29  ;;  %vm548_vm4 = vcmp.ge.f32.partialorder %v1098_v6, 0.0  ;;  %vm549_vm5 = vcmp.ge.f32.partialorder %v1100_v7, 0.0 }
 0x1d9   : > { %920 = vrcp.f32 %v584_v47  ;;  %v687_v60 = vmul.f32 %v679_v54, %v567_v30  ;;  %v688_v10 = vmul.f32 %v680_v55, %v568_v31  ;;  %v691_v61 = vmul.f32 1.442695, %v683_v12 }
 0x1da   : > { %922 = vrcp.f32 %v585_v48  ;;  %v693_v15 = vmul.f32 1.442695, %v684_v57  ;;  %vm550_vm6 = vcmp.ge.f32.partialorder %v1102_v8, 0.0  ;;  %v689_v62 = vmul.f32 %v681_v56, %v569_v32 }
 0x1db   : > { %924 = vrcp.f32 %v586_v53  ;;  %v695_v63 = vmul.f32 1.442695, %v685_v59  ;;  %vm551_vm7 = vcmp.ge.f32.partialorder %v1104_v9, 0.0  ;;  %vm552_vm8 = vcmp.ge.f32.partialorder %v1107_v13, 0.0 }
 0x1dc   : > { %v690_v0 = vmul.f32 %v682_v58, %v570_v33  ;;  %v697_v1 = vmul.f32 1.442695, %v686_v19  ;;  %vm553_vm9 = vcmp.ge.f32.partialorder %v1110_v16, 0.0  ;;  %v950_v2 = vmov -1.0  }
 0x1dd   : > { %v1143_v14 = vsel %vm547_vm3, 1.0, %v950_v2  ;;  %926 = vpow2.f32 %v691_v61  ;;  %v699_v3 = vmul.f32 1.442695, %v687_v60  ;;  %v1150_v26 = vsel %vm548_vm4, 1.0, %v950_v2 }
 0x1de   : > { %v1145_v20 = vpop.eup %910  ;;  %v1155_v27 = vsel %vm549_vm5, 1.0, %v950_v2  ;;  %928 = vpow2.f32 %v693_v15  ;;  %v701_v28 = vmul.f32 1.442695, %v688_v10  ;;  %v1162_v5 = vsel %vm550_vm6, 1.0, %v950_v2 }
 0x1df   : > { %v1157_v29 = vpop.eup %912  ;;  %v603_v30 = vmul.f32 1.0614054, %v1145_v20  ;;  %930 = vpow2.f32 %v695_v63  ;;  %v703_v6 = vmul.f32 1.442695, %v689_v62  ;;  %v1170_v7 = vsel %vm551_vm7, 1.0, %v950_v2 }
 0x1e0   : > { %v1165_v31 = vpop.eup %914  ;;  %v604_v32 = vmul.f32 1.0614054, %v1157_v29  ;;  %932 = vpow2.f32 %v697_v1  ;;  %v705_v33 = vmul.f32 1.442695, %v690_v0  ;;  %v1178_v8 = vsel %vm552_vm8, 1.0, %v950_v2 }
 0x1e1   : > { %v1173_v34 = vpop.eup %916  ;;  %v605_v35 = vmul.f32 1.0614054, %v1165_v31  ;;  %v611_v36 = vadd.f32 -1.4531521, %v603_v30  ;;  %934 = vpow2.f32 %v699_v3  ;;  %v1186_v9 = vsel %vm553_vm9, 1.0, %v950_v2 }
 0x1e2   : > { %v1181_v37 = vpop.eup %918  ;;  %v606_v38 = vmul.f32 1.0614054, %v1173_v34  ;;  %v612_v39 = vadd.f32 -1.4531521, %v604_v32  ;;  %936 = vpow2.f32 %v701_v28  ;;  %vm554_vm10 = vcmp.ge.f32.partialorder %v1113_v18, 0.0 }
 0x1e3   : > { %v1189_v40 = vpop.eup %920  ;;  %v607_v13 = vmul.f32 1.0614054, %v1181_v37  ;;  %v613_v41 = vadd.f32 -1.4531521, %v605_v35  ;;  %v619_v42 = vmul.f32 %v1145_v20, %v611_v36  ;;  %938 = vpow2.f32 %v703_v6 }
 0x1e4   : > { %v1193_v43 = vpop.eup %922  ;;  %v608_v44 = vmul.f32 1.0614054, %v1189_v40  ;;  %v614_v45 = vadd.f32 -1.4531521, %v606_v38  ;;  %v620_v16 = vmul.f32 %v1157_v29, %v612_v39  ;;  %940 = vpow2.f32 %v705_v33 }
 0x1e5   : > { %v1197_v46 = vpop.eup %924  ;;  %v609_v47 = vmul.f32 1.0614054, %v1193_v43  ;;  %v615_v48 = vadd.f32 -1.4531521, %v607_v13  ;;  %v621_v49 = vmul.f32 %v1165_v31, %v613_v41  ;;  %v627_v50 = vadd.f32 1.4214138, %v619_v42 }
 0x1e6   : > { %v610_v51 = vmul.f32 1.0614054, %v1197_v46  ;;  %v616_v52 = vadd.f32 -1.4531521, %v608_v44  ;;  %v622_v53 = vmul.f32 %v1173_v34, %v614_v45  ;;  %v628_v54 = vadd.f32 1.4214138, %v620_v16 }
 0x1e7   : > { %v927_v55 = vpop.eup %926  ;;  %v617_v56 = vadd.f32 -1.4531521, %v609_v47  ;;  %v623_v12 = vmul.f32 %v1181_v37, %v615_v48  ;;  %v629_v57 = vadd.f32 1.4214138, %v621_v49  ;;  %v635_v58 = vmul.f32 %v1145_v20, %v627_v50 }
 0x1e8   : > { %v929_v59 = vpop.eup %928  ;;  %v618_v19 = vadd.f32 -1.4531521, %v610_v51  ;;  %v624_v60 = vmul.f32 %v1189_v40, %v616_v52  ;;  %v630_v10 = vadd.f32 1.4214138, %v622_v53  ;;  %v636_v61 = vmul.f32 %v1157_v29, %v628_v54 }
 0x1e9   : > { %v931_v15 = vpop.eup %930  ;;  %v625_v62 = vmul.f32 %v1193_v43, %v617_v56  ;;  %v631_v63 = vadd.f32 1.4214138, %v623_v12  ;;  %v637_v0 = vmul.f32 %v1165_v31, %v629_v57  ;;  %v643_v1 = vadd.f32 -0.28449672, %v635_v58 }
 0x1ea   : > { %v933_v3 = vpop.eup %932  ;;  %v626_v28 = vmul.f32 %v1197_v46, %v618_v19  ;;  %v632_v30 = vadd.f32 1.4214138, %v624_v60  ;;  %v638_v6 = vmul.f32 %v1173_v34, %v630_v10  ;;  %v644_v32 = vadd.f32 -0.28449672, %v636_v61 }
 0x1eb   : > { %v935_v33 = vpop.eup %934  ;;  %v633_v35 = vadd.f32 1.4214138, %v625_v62  ;;  %v639_v36 = vmul.f32 %v1181_v37, %v631_v63  ;;  %v645_v38 = vadd.f32 -0.28449672, %v637_v0  ;;  %v651_v39 = vmul.f32 %v1145_v20, %v643_v1 }
 0x1ec   : > { %v937_v13 = vpop.eup %936  ;;  %v634_v41 = vadd.f32 1.4214138, %v626_v28  ;;  %v640_v42 = vmul.f32 %v1189_v40, %v632_v30  ;;  %v646_v44 = vadd.f32 -0.28449672, %v638_v6  ;;  %v652_v45 = vmul.f32 %v1157_v29, %v644_v32 }
 0x1ed   : > { %v939_v16 = vpop.eup %938  ;;  %v641_v47 = vmul.f32 %v1193_v43, %v633_v35  ;;  %v647_v48 = vadd.f32 -0.28449672, %v639_v36  ;;  %v653_v49 = vmul.f32 %v1165_v31, %v645_v38  ;;  %v659_v50 = vadd.f32 0.2548296, %v651_v39 }
 0x1ee   : > { %v941_v51 = vpop.eup %940  ;;  %v642_v52 = vmul.f32 %v1197_v46, %v634_v41  ;;  %v648_v53 = vadd.f32 -0.28449672, %v640_v42  ;;  %v654_v54 = vmul.f32 %v1173_v34, %v646_v44  ;;  %v660_v56 = vadd.f32 0.2548296, %v652_v45 }
 0x1ef   : > { %v649_v12 = vadd.f32 -0.28449672, %v641_v47  ;;  %v655_v57 = vmul.f32 %v1181_v37, %v647_v48  ;;  %v661_v58 = vadd.f32 0.2548296, %v653_v49  ;;  %v667_v19 = vmul.f32 %v1145_v20, %v659_v50 }
 0x1f0   : > { %v650_v60 = vadd.f32 -0.28449672, %v642_v52  ;;  %v656_v10 = vmul.f32 %v1189_v40, %v648_v53  ;;  %v662_v61 = vadd.f32 0.2548296, %v654_v54  ;;  %v668_v62 = vmul.f32 %v1157_v29, %v660_v56 }
 0x1f1   : > { %v657_v63 = vmul.f32 %v1193_v43, %v649_v12  ;;  %v663_v0 = vadd.f32 0.2548296, %v655_v57  ;;  %v669_v1 = vmul.f32 %v1165_v31, %v661_v58  ;;  %v707_v28 = vmul.f32 %v927_v55, %v667_v19 }
 0x1f2   : > { %v658_v30 = vmul.f32 %v1197_v46, %v650_v60  ;;  %v664_v6 = vadd.f32 0.2548296, %v656_v10  ;;  %v670_v32 = vmul.f32 %v1173_v34, %v662_v61  ;;  %v708_v20 = vmul.f32 %v929_v59, %v668_v62 }
 0x1f3   : > { %v665_v35 = vadd.f32 0.2548296, %v657_v63  ;;  %v671_v36 = vmul.f32 %v1181_v37, %v663_v0  ;;  %v709_v38 = vmul.f32 %v931_v15, %v669_v1  ;;  %v715_v39 = vsub.f32 1.0, %v707_v28 }
 0x1f4   : > { %v666_v41 = vadd.f32 0.2548296, %v658_v30  ;;  %v672_v29 = vmul.f32 %v1189_v40, %v664_v6  ;;  %v710_v42 = vmul.f32 %v933_v3, %v670_v32  ;;  %v716_v44 = vsub.f32 1.0, %v708_v20 }
 0x1f5   : > { %v673_v31 = vmul.f32 %v1193_v43, %v665_v35  ;;  %v711_v55 = vmul.f32 %v935_v33, %v671_v36  ;;  %v717_v45 = vsub.f32 1.0, %v709_v38  ;;  %v723_v47 = vmul.f32 %v715_v39, %v1143_v14 }
 0x1f6   : > { %v674_v34 = vmul.f32 %v1197_v46, %v666_v41  ;;  %v712_v59 = vmul.f32 %v937_v13, %v672_v29  ;;  %v718_v48 = vsub.f32 1.0, %v710_v42  ;;  %v724_v37 = vmul.f32 %v716_v44, %v1150_v26 }
 0x1f7   : > { %v713_v15 = vmul.f32 %v939_v16, %v673_v31  ;;  %v719_v49 = vsub.f32 1.0, %v711_v55  ;;  %v725_v50 = vmul.f32 %v717_v45, %v1155_v27  ;;  %v731_v52 = vadd.f32 1.0, %v723_v47 }
 0x1f8   : > { %v714_v40 = vmul.f32 %v941_v51, %v674_v34  ;;  %v720_v14 = vsub.f32 1.0, %v712_v59  ;;  %v726_v43 = vmul.f32 %v718_v48, %v1162_v5  ;;  %v732_v46 = vadd.f32 1.0, %v724_v37 }
 0x1f9   : > { %v721_v3 = vsub.f32 1.0, %v713_v15  ;;  %v727_v26 = vmul.f32 %v719_v49, %v1170_v7  ;;  %v733_v33 = vadd.f32 1.0, %v725_v50  ;;  %v739_v27 = vmul.f32 %v731_v52, %v1115_v21 }
 0x1fa   : > { %v722_v13 = vsub.f32 1.0, %v714_v40  ;;  %v728_v16 = vmul.f32 %v720_v14, %v1178_v8  ;;  %v734_v53 = vadd.f32 1.0, %v726_v43  ;;  %v740_v54 = vmul.f32 %v732_v46, %v1117_v22 }
 0x1fb   : > { %v562_v51 = vsel %vm554_vm10, 1.0, %v950_v2  ;;  %v729_v5 = vmul.f32 %v721_v3, %v1186_v9  ;;  %v735_v56 = vadd.f32 1.0, %v727_v26  ;;  %v741_v7 = vmul.f32 %v733_v33, %v1119_v23  ;;  %747 = vst.msk [vmem:[%s1240_s21] sm:$0xff] %vm392_vm2, %v739_v27 }
 0x1fc   : > { %v536_v21 = vmul.f32 0.5, %v1090_v4  ;;  %v730_v8 = vmul.f32 %v722_v13, %v562_v51  ;;  %v736_v12 = vadd.f32 1.0, %v728_v16  ;;  %v742_v22 = vmul.f32 %v734_v53, %v1121_v24  ;;  %748 = vst.msk [vmem:[%s1240_s21 + $0x8] sm:$0xff] %vm392_vm2, %v740_v54 }
 0x1fd   : > { %v537_v18 = vmul.f32 0.5, %v1092_v11  ;;  %v737_v2 = vadd.f32 1.0, %v729_v5  ;;  %v743_v9 = vmul.f32 %v735_v56, %v1123_v25  ;;  %749 = vst.msk [vmem:[%s1240_s21 + $0x10] sm:$0xff] %vm392_vm2, %v741_v7  ;;  %v538_v23 = vmul.f32 0.5, %v1094_v17 }
 0x1fe   : > { %v738_v57 = vadd.f32 1.0, %v730_v8  ;;  %v744_v4 = vmul.f32 %v736_v12, %v536_v21  ;;  %750 = vst.msk [vmem:[%s1240_s21 + $0x18] sm:$0xff] %vm392_vm2, %v742_v22 }
 0x1ff   : > { %v745_v58 = vmul.f32 %v737_v2, %v537_v18  ;;  %751 = vst.msk [vmem:[%s1240_s21 + $0x20] sm:$0xff] %vm392_vm2, %v743_v9 }
 0x200   : > { %v746_v19 = vmul.f32 %v738_v57, %v538_v23  ;;  %752 = vst.msk [vmem:[%s1240_s21 + $0x28] sm:$0xff] %vm392_vm2, %v744_v4 }
 0x201   : > { %753 = vst.msk [vmem:[%s1240_s21 + $0x30] sm:$0xff] %vm392_vm2, %v745_v58 }
 0x202   : > { %754 = vst.msk [vmem:[%s1240_s21 + $0x38] sm:$0xff] %vm392_vm2, %v746_v19 }
 0x203 PF: > { %s15_s18 = sadd.s32 1, %s948_s18  }
 0x204   : > { %p12_p4 = scmp.ge.s32.totalorder %s15_s18, 4  }
 0x206   :  { %14 = sbr.rel (!%p12_p4) target bundleno = 1 (0x1), region = 73 }

// kernel: _lambda_.26
= control target key start
LH: loop header
LB: loop body
LE: loop exit
PB: predicated region body
PF: predicated region fallthrough
CT: control target
= control target key end

     0   :  { %s500_s15 = smov 0   ;;  %s548_s0 = inlined_call_operand.vmem [shape: bf16[2,16,72], index: 0, kind: input, shape index: {}]   ;;  %s549_s1 = inlined_call_operand.vmem [shape: bf16[72,16], index: 1, kind: input, shape index: {}]   ;;  %s550_s2 = inlined_call_operand.vmem [shape: f32[1,16], index: 2, kind: input, shape index: {}]   ;;  %s551_s3 = inlined_call_operand.vmem [shape: f32[1,16], index: 3, kind: input, shape index: {}]   ;;  %s552_s4 = inlined_call_operand.vmem [shape: f32[2,16,16], index: 4, kind: output, shape index: {}]  }
   0x1 LB: > { %s407_s16 = sadd.s32 4294967295, %s471_s15   ;;  %p411_p0 = scmp.ge.s32.totalorder %s471_s15, 1  ;;  %s471_s15 = sphi %s500_s15, %s14_s15  }
   0x2   : > { %p162_p1 = scmp.lt.s32.totalorder %s471_s15, 3 }
   0x4   : > { %p163_p2 = pnand %p411_p0, %p162_p1 }
   0x5   : > { %v457_v0 = vld [vmem:[%s549_s1] sm:$0xff] (!%p163_p2)   ;;  %v473_v1 = vmov (!%p163_p2), 0.0   ;;  %v458_v2 = vld [vmem:[%s549_s1 + $0x8] sm:$0xff] (!%p163_p2)   ;;  %vm474_vm0 = vmmov (!%p163_p2), 0   ;;  %p188_p3 = scmp.lt.s32.totalorder (!%p163_p2), %s407_s16, 1  ;;  %v459_v3 = vld [vmem:[%s549_s1 + $0x10] sm:$0xff] (!%p163_p2)   ;;  %v333_v42 = vlaneseq (!%p163_p2) }
   0x6   : > { %166 = sbr.rel (%p163_p2) target bundleno = 433 (0x1b1), region = 36  ;;  %433 = vmatprep.subr.bf16.mxu0 (!%p163_p2), %v473_v1  ;;  %443 = vmatprep.mubr.msk.bf16.mxu0 (!%p163_p2), %vm474_vm0, %v473_v1  ;;  %v460_v4 = vld [vmem:[%s549_s1 + $0x18] sm:$0xff] (!%p163_p2)   ;;  %v461_v5 = vld [vmem:[%s549_s1 + $0x20] ss:$0 sps:$4 sm:$0xff] (!%p163_p2)   ;;  %vm246_vm1 = vcmask (!%p163_p2), 1043456   ;;  %vm242_vm2 = vcmask (!%p163_p2), 588800  }
   0x7   : > { %434 = vmatpush3.bf16.msra.mxu0 (!%p163_p2), %v457_v0  ;;  %v248_v6 = vsel (!%p163_p2), %vm246_vm1, %v461_v5, 0  ;;  %vm291_vm3 = vcmask (!%p163_p2), 130048   ;;  %v334_v43 = vshrl.u32 (!%p163_p2), %v333_v42, 7  ;;  %v325_v44 = vld [vmem:[%s550_s2] sm:$0x1] (!%p163_p2) }
   0x8   : > { %435 = vmatprep.subr.bf16.mxu0 (!%p163_p2), %v473_v1  ;;  %v329_v48 = vld [vmem:[%s551_s3] sm:$0x1] (!%p163_p2) }
   0x9   : > { %v335_v45 = vsub.s32 (!%p163_p2), 0, %v334_v43 }
   0xb   : > { %436 = vmatpush3.bf16.msra.mxu0 (!%p163_p2), %v458_v2 }
   0xc   : > { %437 = vmatprep.subr.bf16.mxu0 (!%p163_p2), %v473_v1 }
   0xd   : > { %s554_s16 = smov (!%p188_p3, %s407_s16), 1 }
   0xe   : > { %s425_s23 = sshll.u32 %s554_s16, 3  ;;  %s426_s9 = sshll.u32 %s554_s16, 4 }
   0xf   : > { %s192_s26 = scalar_lea.vmem %s548_s0, %s425_s23  ;;  %438 = vmatpush3.bf16.msra.mxu0 %v459_v3  ;;  %s197_s12 = scalar_lea.vmem %s552_s4, %s426_s9 }
  0x10   : > { %439 = vmatprep.subr.bf16.mxu0 %v473_v1  ;;  %v462_v7 = vld [vmem:[%s192_s26] sm:$0xff]  }
  0x13   : > { %440 = vmatpush3.bf16.msra.mxu0 %v460_v4 }
  0x14   : > { %441 = vmatprep.subr.bf16.mxu0 %v473_v1 }
  0x17   : > { %442 = vmatpush3.bf16.msra.mxu0 %v248_v6 }
  0x1a   : > { %444 = vmatmul.mubr.msk.bf16.vlgmr.msra.gmra.mrb[0].mxu0 %vm242_vm2, %v462_v7 }
  0xed   : > { %v284_v8 = vpop.f32.mrb[0].mxu0 }
  0xee   : > { %v445_v9 = vpop.f32.mrb[1].mxu0  ;;  %v292_v10 = vsel %vm291_vm3, %v284_v8, 0.0  ;;  %v305_v11 = vmul.f32 %v284_v8, %v284_v8 }
  0xef   : > { %293 = vadd.xlane.f32.xlu0 %v292_v10  ;;  %v287_v12 = vpop.f32.mrb[2].mxu0 }
  0xf0   : > { %v446_v13 = vpop.f32.mrb[3].mxu0  ;;  %v307_v14 = vsel %vm291_vm3, %v305_v11, 0.0  ;;  %v306_v15 = vmul.f32 %v287_v12, %v287_v12  ;;  %v295_v16 = vsel %vm291_vm3, %v287_v12, 0.0 }
  0xf1   : > { %308 = vadd.xlane.f32.xlu1 %v307_v14 }
  0xf2   : > { %v310_v17 = vsel %vm291_vm3, %v306_v15, 0.0 }
  0xf3   : > { %296 = vadd.xlane.f32.xlu0 %v295_v16 }
  0xf5   : > { %311 = vadd.xlane.f32.xlu1 %v310_v17 }
 0x17c   : > { %v294_v18 = vpop.xlane.xlu0 %293 }
 0x17e   : > { %v309_v19 = vpop.xlane.xlu1 %308 }
 0x180   : > { %v297_v20 = vpop.xlane.xlu0 %296 }
 0x181   : > { %v298_v21 = vadd.f32 %v297_v20, %v294_v18 }
 0x182   : > { %v312_v22 = vpop.xlane.xlu1 %311 }
 0x183   : > { %v299_v23 = vrot.slane %v298_v21, 4  ;;  %v313_v24 = vadd.f32 %v312_v22, %v309_v19 }
 0x185   : > { %v300_v25 = vadd.f32 %v299_v23, %v298_v21  ;;  %v314_v26 = vrot.slane %v313_v24, 4 }
 0x187   : > { %v301_v27 = vrot.slane %v300_v25, 2  ;;  %v315_v28 = vadd.f32 %v314_v26, %v313_v24 }
 0x189   : > { %v302_v29 = vadd.f32 %v301_v27, %v300_v25  ;;  %v316_v30 = vrot.slane %v315_v28, 2 }
 0x18b   : > { %v303_v31 = vrot.slane %v302_v29, 1  ;;  %v317_v32 = vadd.f32 %v316_v30, %v315_v28 }
 0x18d   : > { %v304_v33 = vadd.f32 %v303_v31, %v302_v29  ;;  %v318_v34 = vrot.slane %v317_v32, 1 }
 0x18f   : > { %v320_v35 = vmul.f32 0.00390625, %v304_v33  ;;  %v319_v36 = vadd.f32 %v318_v34, %v317_v32 }
 0x191   : > { %v322_v37 = vmul.f32 %v320_v35, %v320_v35  ;;  %v321_v38 = vmul.f32 0.00390625, %v319_v36 }
 0x193   : > { %v323_v39 = vsub.f32 %v321_v38, %v322_v37 }
 0x195   : > { %v324_v40 = vmax.f32 %v323_v39, 0.0 }
 0x197   : > { %v326_v41 = vadd.f32 1e-05, %v324_v40 }
 0x199   : > { %463 = vrsqrt.f32 %v326_v41 }
 0x1a3   : > { %v464_v46 = vpop.eup %463 }
 0x1a4   : > { %v328_v47 = vmul.f32 %v464_v46, %v325_v44 }
 0x1a6   : > { %v330_v49 = vmul.f32 %v328_v47, %v320_v35  ;;  %v336_v50 = vrot.slane %v328_v47, %v335_v45 }
 0x1a8   : > { %v331_v51 = vsub.f32 %v329_v48, %v330_v49  ;;  %v338_v52 = vmul.f32 %v336_v50, %v284_v8  ;;  %v339_v53 = vmul.f32 %v336_v50, %v287_v12 }
 0x1aa   : > { %v344_v54 = vrot.slane %v331_v51, %v335_v45 }
 0x1ac   : > { %v346_v55 = vadd.f32 %v344_v54, %v338_v52  ;;  %v347_v56 = vadd.f32 %v344_v54, %v339_v53 }
 0x1ae   : > { %v348_v57 = vmax.f32 %v346_v55, 0.0  ;;  %v349_v58 = vmax.f32 %v347_v56, 0.0 }
 0x1b0   : > { %350 = vst.msk [vmem:[%s197_s12] sm:$0xff] %vm291_vm3, %v348_v57  ;;  %351 = vst.msk [vmem:[%s197_s12 + $0x8] sm:$0xff] %vm291_vm3, %v349_v58 }
 0x1b1 PF: > { %s14_s15 = sadd.s32 1, %s471_s15  }
 0x1b2   : > { %p11_p4 = scmp.ge.s32.totalorder %s14_s15, 4  }
 0x1b4   :  { %13 = sbr.rel (!%p11_p4) target bundleno = 1 (0x1), region = 66 }

// kernel: _lambda_.27
= control target key start
LH: loop header
LB: loop body
LE: loop exit
PB: predicated region body
PF: predicated region fallthrough
CT: control target
= control target key end

     0   :  { %s441_s15 = smov 0   ;;  %s477_s0 = inlined_call_operand.vmem [shape: bf16[2,16,8], index: 0, kind: input, shape index: {}]   ;;  %s478_s1 = inlined_call_operand.vmem [shape: bf16[8,16], index: 1, kind: input, shape index: {}]   ;;  %s479_s2 = inlined_call_operand.vmem [shape: f32[1,16], index: 2, kind: input, shape index: {}]   ;;  %s480_s3 = inlined_call_operand.vmem [shape: f32[1,16], index: 3, kind: input, shape index: {}]   ;;  %s481_s4 = inlined_call_operand.vmem [shape: f32[2,16,16], index: 4, kind: output, shape index: {}]  }
   0x1 LB: > { %s370_s16 = sadd.s32 4294967295, %s412_s15   ;;  %p374_p0 = scmp.ge.s32.totalorder %s412_s15, 1  ;;  %s412_s15 = sphi %s441_s15, %s14_s15  }
   0x2   : > { %p162_p1 = scmp.lt.s32.totalorder %s412_s15, 3 }
   0x4   : > { %p163_p2 = pnand %p374_p0, %p162_p1 }
   0x5   : > { %v201_v0 = vld [vmem:[%s478_s1] sm:$0xf] (!%p163_p2)  ;;  %vm211_vm0 = vcmask (!%p163_p2), 1043456   ;;  %p188_p3 = scmp.lt.s32.totalorder (!%p163_p2), %s370_s16, 1  ;;  %v414_v1 = vmov (!%p163_p2), 0.0   ;;  %vm415_vm1 = vmmov (!%p163_p2), 0   ;;  %v298_v38 = vlaneseq (!%p163_p2) }
   0x6   : > { %166 = sbr.rel (%p163_p2) target bundleno = 422 (0x1a6), region = 36  ;;  %387 = vmatprep.subr.bf16.mxu0 (!%p163_p2), %v414_v1  ;;  %v213_v2 = vsel (!%p163_p2), %vm211_vm0, %v201_v0, 0  ;;  %389 = vmatprep.mubr.msk.bf16.mxu0 (!%p163_p2), %vm415_vm1, %v414_v1  ;;  %vm207_vm2 = vcmask (!%p163_p2), 64512   ;;  %vm256_vm3 = vcmask (!%p163_p2), 130048   ;;  %v290_v40 = vld [vmem:[%s479_s2] sm:$0x1] (!%p163_p2) }
   0x7   : > { %388 = vmatpush3.bf16.msra.mxu0 (!%p163_p2), %v213_v2  ;;  %v299_v39 = vshrl.u32 (!%p163_p2), %v298_v38, 7  ;;  %v294_v44 = vld [vmem:[%s480_s3] sm:$0x1] (!%p163_p2) }
   0x9   : > { %v300_v41 = vsub.s32 (!%p163_p2), 0, %v299_v39 }
   0xd   : > { %s483_s16 = smov (!%p188_p3, %s370_s16), 1 }
   0xe   : > { %s383_s19 = sshll.u32 %s483_s16, 3  ;;  %s384_s27 = sshll.u32 %s483_s16, 4 }
   0xf   : > { %s192_s22 = scalar_lea.vmem %s477_s0, %s383_s19  ;;  %s197_s30 = scalar_lea.vmem %s481_s4, %s384_s27 }
  0x10   : > { %v403_v3 = vld [vmem:[%s192_s22] sm:$0xff]  }
  0x11   : > { %390 = vmatmul.mubr.msk.bf16.vlgmr.msra.gmra.mrb[0].mxu0 %vm207_vm2, %v403_v3 }
  0xe4   : > { %v249_v4 = vpop.f32.mrb[0].mxu0 }
  0xe5   : > { %v391_v5 = vpop.f32.mrb[1].mxu0  ;;  %v257_v6 = vsel %vm256_vm3, %v249_v4, 0.0  ;;  %v270_v7 = vmul.f32 %v249_v4, %v249_v4 }
  0xe6   : > { %258 = vadd.xlane.f32.xlu0 %v257_v6  ;;  %v252_v8 = vpop.f32.mrb[2].mxu0 }
  0xe7   : > { %v392_v9 = vpop.f32.mrb[3].mxu0  ;;  %v272_v10 = vsel %vm256_vm3, %v270_v7, 0.0  ;;  %v271_v11 = vmul.f32 %v252_v8, %v252_v8  ;;  %v260_v12 = vsel %vm256_vm3, %v252_v8, 0.0 }
  0xe8   : > { %273 = vadd.xlane.f32.xlu1 %v272_v10 }
  0xe9   : > { %v275_v13 = vsel %vm256_vm3, %v271_v11, 0.0 }
  0xea   : > { %261 = vadd.xlane.f32.xlu0 %v260_v12 }
  0xec   : > { %276 = vadd.xlane.f32.xlu1 %v275_v13 }
 0x173   : > { %v259_v14 = vpop.xlane.xlu0 %258 }
 0x175   : > { %v274_v15 = vpop.xlane.xlu1 %273 }
 0x177   : > { %v262_v16 = vpop.xlane.xlu0 %261 }
 0x178   : > { %v263_v17 = vadd.f32 %v262_v16, %v259_v14 }
 0x179   : > { %v277_v18 = vpop.xlane.xlu1 %276 }
 0x17a   : > { %v264_v19 = vrot.slane %v263_v17, 4  ;;  %v278_v20 = vadd.f32 %v277_v18, %v274_v15 }
 0x17c   : > { %v265_v21 = vadd.f32 %v264_v19, %v263_v17  ;;  %v279_v22 = vrot.slane %v278_v20, 4 }
 0x17e   : > { %v266_v23 = vrot.slane %v265_v21, 2  ;;  %v280_v24 = vadd.f32 %v279_v22, %v278_v20 }
 0x180   : > { %v267_v25 = vadd.f32 %v266_v23, %v265_v21  ;;  %v281_v26 = vrot.slane %v280_v24, 2 }
 0x182   : > { %v268_v27 = vrot.slane %v267_v25, 1  ;;  %v282_v28 = vadd.f32 %v281_v26, %v280_v24 }
 0x184   : > { %v269_v29 = vadd.f32 %v268_v27, %v267_v25  ;;  %v283_v30 = vrot.slane %v282_v28, 1 }
 0x186   : > { %v285_v31 = vmul.f32 0.00390625, %v269_v29  ;;  %v284_v32 = vadd.f32 %v283_v30, %v282_v28 }
 0x188   : > { %v287_v33 = vmul.f32 %v285_v31, %v285_v31  ;;  %v286_v34 = vmul.f32 0.00390625, %v284_v32 }
 0x18a   : > { %v288_v35 = vsub.f32 %v286_v34, %v287_v33 }
 0x18c   : > { %v289_v36 = vmax.f32 %v288_v35, 0.0 }
 0x18e   : > { %v291_v37 = vadd.f32 1e-05, %v289_v36 }
 0x190   : > { %404 = vrsqrt.f32 %v291_v37 }
 0x19a   : > { %v405_v42 = vpop.eup %404 }
 0x19b   : > { %v293_v43 = vmul.f32 %v405_v42, %v290_v40 }
 0x19d   : > { %v295_v45 = vmul.f32 %v293_v43, %v285_v31  ;;  %v301_v46 = vrot.slane %v293_v43, %v300_v41 }
 0x19f   : > { %v296_v47 = vsub.f32 %v294_v44, %v295_v45  ;;  %v303_v48 = vmul.f32 %v301_v46, %v249_v4  ;;  %v304_v49 = vmul.f32 %v301_v46, %v252_v8 }
 0x1a1   : > { %v309_v50 = vrot.slane %v296_v47, %v300_v41 }
 0x1a3   : > { %v311_v51 = vadd.f32 %v309_v50, %v303_v48  ;;  %v312_v52 = vadd.f32 %v309_v50, %v304_v49 }
 0x1a5   : > { %313 = vst.msk [vmem:[%s197_s30] sm:$0xff] %vm256_vm3, %v311_v51  ;;  %314 = vst.msk [vmem:[%s197_s30 + $0x8] sm:$0xff] %vm256_vm3, %v312_v52 }
 0x1a6 PF: > { %s14_s15 = sadd.s32 1, %s412_s15  }
 0x1a7   : > { %p11_p4 = scmp.ge.s32.totalorder %s14_s15, 4  }
 0x1a9   :  { %13 = sbr.rel (!%p11_p4) target bundleno = 1 (0x1), region = 66 }

// kernel: _lambda_.29
= control target key start
LH: loop header
LB: loop body
LE: loop exit
PB: predicated region body
PF: predicated region fallthrough
CT: control target
= control target key end

     0   :  { %s524_s15 = smov 0   ;;  %s588_s0 = inlined_call_operand.vmem [shape: bf16[2,16,144], index: 0, kind: input, shape index: {}]   ;;  %s589_s1 = inlined_call_operand.vmem [shape: bf16[144,16], index: 1, kind: input, shape index: {}]   ;;  %s590_s2 = inlined_call_operand.vmem [shape: f32[1,16], index: 2, kind: input, shape index: {}]   ;;  %s591_s3 = inlined_call_operand.vmem [shape: f32[1,16], index: 3, kind: input, shape index: {}]   ;;  %s592_s4 = inlined_call_operand.vmem [shape: f32[2,16,16], index: 4, kind: output, shape index: {}]  }
   0x1 LB: > { %s442_s16 = sadd.s32 4294967295, %s496_s15   ;;  %p446_p0 = scmp.ge.s32.totalorder %s496_s15, 1  ;;  %s496_s15 = sphi %s524_s15, %s14_s15  }
   0x2   : > { %p162_p1 = scmp.lt.s32.totalorder %s496_s15, 3 }
   0x4   : > { %p163_p2 = pnand %p446_p0, %p162_p1 }
   0x5   : > { %v476_v0 = vld [vmem:[%s589_s1] sm:$0xff] (!%p163_p2)   ;;  %v498_v1 = vmov (!%p163_p2), 0   ;;  %p188_p3 = scmp.lt.s32.totalorder (!%p163_p2), %s442_s16, 1  ;;  %v477_v2 = vld [vmem:[%s589_s1 + $0x8] sm:$0xff] (!%p163_p2)   ;;  %v478_v3 = vld [vmem:[%s589_s1 + $0x10] sm:$0xff] (!%p163_p2)   ;;  %vm282_vm0 = vcmask (!%p163_p2), 130048   ;;  %v368_v46 = vlaneseq (!%p163_p2) }
   0x6   : > { %166 = sbr.rel (%p163_p2) target bundleno = 449 (0x1c1), region = 36  ;;  %286 = vmatprep.subr.bf16.mxu0 (!%p163_p2), %v498_v1  ;;  %v479_v4 = vld [vmem:[%s589_s1 + $0x18] sm:$0xff] (!%p163_p2)   ;;  %v480_v6 = vld [vmem:[%s589_s1 + $0x20] sm:$0xff] (!%p163_p2)   ;;  %v481_v7 = vld [vmem:[%s589_s1 + $0x28] sm:$0xff] (!%p163_p2)  }
   0x7   : > { %287 = vmatpush1.bf16.msra.mxu0 (!%p163_p2), %v476_v0  ;;  %v482_v8 = vld [vmem:[%s589_s1 + $0x30] sm:$0xff] (!%p163_p2)   ;;  %v483_v9 = vld [vmem:[%s589_s1 + $0x38] sm:$0xff] (!%p163_p2)   ;;  %v484_v10 = vld [vmem:[%s589_s1 + $0x40] sm:$0xff] (!%p163_p2)   ;;  %v369_v47 = vshrl.u32 (!%p163_p2), %v368_v46, 7 }
   0x8   : > { %288 = vmatprep.subr.bf16.mxu0 (!%p163_p2), %v498_v1  ;;  %v360_v48 = vld [vmem:[%s590_s2] sm:$0x1] (!%p163_p2) }
   0x9   : > { %v370_v49 = vsub.s32 (!%p163_p2), 0, %v369_v47  ;;  %v364_v52 = vld [vmem:[%s591_s3] sm:$0x1] (!%p163_p2) }
   0xb   : > { %289 = vmatpush1.bf16.msra.mxu0 (!%p163_p2), %v477_v2 }
   0xc   : > { %290 = vmatprep.subr.bf16.mxu0 (!%p163_p2), %v498_v1 }
   0xd   : > { %s594_s16 = smov (!%p188_p3, %s442_s16), 1 }
   0xe   : > { %s465_s21 = sshll.u32 %s594_s16, 4 }
   0xf   : > { %s192_s26 = scalar_lea.vmem %s588_s0, %s465_s21  ;;  %291 = vmatpush1.bf16.msra.mxu0 %v478_v3  ;;  %s197_s22 = scalar_lea.vmem %s592_s4, %s465_s21 }
  0x10   : > { %v487_v5 = vld [vmem:[%s192_s26 + $0x4] ss:$8 sps:$4 sm:$0xff]   ;;  %292 = vmatprep.subr.bf16.mxu0 %v498_v1  ;;  %v485_v11 = vld [vmem:[%s192_s26] ss:$8 sps:$4 sm:$0xff]  }
  0x11   : > { %462 = vmatprep.mubr.msk.bf16.mxu0 %vm282_vm0, %v487_v5 }
  0x13   : > { %293 = vmatpush1.bf16.msra.mxu0 %v479_v4 }
  0x14   : > { %294 = vmatprep.subr.bf16.mxu0 %v498_v1 }
  0x17   : > { %295 = vmatpush1.bf16.msra.mxu0 %v480_v6 }
  0x18   : > { %296 = vmatprep.subr.bf16.mxu0 %v498_v1 }
  0x1b   : > { %297 = vmatpush1.bf16.msra.mxu0 %v481_v7 }
  0x1c   : > { %298 = vmatprep.subr.bf16.mxu0 %v498_v1 }
  0x1f   : > { %299 = vmatpush1.bf16.msra.mxu0 %v482_v8 }
  0x20   : > { %300 = vmatprep.subr.bf16.mxu0 %v498_v1 }
  0x23   : > { %301 = vmatpush1.bf16.msra.mxu0 %v483_v9 }
  0x24   : > { %302 = vmatprep.subr.bf16.mxu0 %v498_v1 }
  0x27   : > { %303 = vmatpush1.bf16.msra.mxu0 %v484_v10 }
  0x2a   : > { %319 = vmatmul.mubr.bf16.vlgmr.msra.gmra.mrb[0].mxu0 %v485_v11 }
  0xfd   : > { %v320_v12 = vpop.f32.mrb[0].mxu0 }
  0xfe   : > { %v322_v13 = vpop.f32.mrb[1].mxu0  ;;  %v327_v14 = vsel %vm282_vm0, %v320_v12, 0.0  ;;  %v340_v15 = vmul.f32 %v320_v12, %v320_v12 }
  0xff   : > { %328 = vadd.xlane.f32.xlu0 %v327_v14  ;;  %v323_v16 = vpop.f32.mrb[2].mxu0 }
 0x100   : > { %v325_v17 = vpop.f32.mrb[3].mxu0  ;;  %v342_v18 = vsel %vm282_vm0, %v340_v15, 0.0  ;;  %v341_v19 = vmul.f32 %v323_v16, %v323_v16  ;;  %v330_v20 = vsel %vm282_vm0, %v323_v16, 0.0 }
 0x101   : > { %343 = vadd.xlane.f32.xlu1 %v342_v18 }
 0x102   : > { %v345_v21 = vsel %vm282_vm0, %v341_v19, 0.0 }
 0x103   : > { %331 = vadd.xlane.f32.xlu0 %v330_v20 }
 0x105   : > { %346 = vadd.xlane.f32.xlu1 %v345_v21 }
 0x18c   : > { %v329_v22 = vpop.xlane.xlu0 %328 }
 0x18e   : > { %v344_v23 = vpop.xlane.xlu1 %343 }
 0x190   : > { %v332_v24 = vpop.xlane.xlu0 %331 }
 0x191   : > { %v333_v25 = vadd.f32 %v332_v24, %v329_v22 }
 0x192   : > { %v347_v26 = vpop.xlane.xlu1 %346 }
 0x193   : > { %v334_v27 = vrot.slane %v333_v25, 4  ;;  %v348_v28 = vadd.f32 %v347_v26, %v344_v23 }
 0x195   : > { %v335_v29 = vadd.f32 %v334_v27, %v333_v25  ;;  %v349_v30 = vrot.slane %v348_v28, 4 }
 0x197   : > { %v336_v31 = vrot.slane %v335_v29, 2  ;;  %v350_v32 = vadd.f32 %v349_v30, %v348_v28 }
 0x199   : > { %v337_v33 = vadd.f32 %v336_v31, %v335_v29  ;;  %v351_v34 = vrot.slane %v350_v32, 2 }
 0x19b   : > { %v338_v35 = vrot.slane %v337_v33, 1  ;;  %v352_v36 = vadd.f32 %v351_v34, %v350_v32 }
 0x19d   : > { %v339_v37 = vadd.f32 %v338_v35, %v337_v33  ;;  %v353_v38 = vrot.slane %v352_v36, 1 }
 0x19f   : > { %v355_v39 = vmul.f32 0.00390625, %v339_v37  ;;  %v354_v40 = vadd.f32 %v353_v38, %v352_v36 }
 0x1a1   : > { %v357_v41 = vmul.f32 %v355_v39, %v355_v39  ;;  %v356_v42 = vmul.f32 0.00390625, %v354_v40 }
 0x1a3   : > { %v358_v43 = vsub.f32 %v356_v42, %v357_v41 }
 0x1a5   : > { %v359_v44 = vmax.f32 %v358_v43, 0.0 }
 0x1a7   : > { %v361_v45 = vadd.f32 1e-05, %v359_v44 }
 0x1a9   : > { %488 = vrsqrt.f32 %v361_v45 }
 0x1b3   : > { %v489_v50 = vpop.eup %488 }
 0x1b4   : > { %v363_v51 = vmul.f32 %v489_v50, %v360_v48 }
 0x1b6   : > { %v365_v53 = vmul.f32 %v363_v51, %v355_v39  ;;  %v371_v54 = vrot.slane %v363_v51, %v370_v49 }
 0x1b8   : > { %v366_v55 = vsub.f32 %v364_v52, %v365_v53  ;;  %v373_v56 = vmul.f32 %v371_v54, %v320_v12  ;;  %v374_v57 = vmul.f32 %v371_v54, %v323_v16 }
 0x1ba   : > { %v379_v58 = vrot.slane %v366_v55, %v370_v49 }
 0x1bc   : > { %v381_v59 = vadd.f32 %v379_v58, %v373_v56  ;;  %v382_v60 = vadd.f32 %v379_v58, %v374_v57 }
 0x1be   : > { %v383_v61 = vmax.f32 %v381_v59, 0.0  ;;  %v384_v62 = vmax.f32 %v382_v60, 0.0 }
 0x1c0   : > { %385 = vst.msk [vmem:[%s197_s22] sm:$0xff] %vm282_vm0, %v383_v61  ;;  %386 = vst.msk [vmem:[%s197_s22 + $0x8] sm:$0xff] %vm282_vm0, %v384_v62 }
 0x1c1 PF: > { %s14_s15 = sadd.s32 1, %s496_s15  }
 0x1c2   : > { %p11_p4 = scmp.ge.s32.totalorder %s14_s15, 4  }
 0x1c4   :  { %13 = sbr.rel (!%p11_p4) target bundleno = 1 (0x1), region = 66 }

// kernel: _lambda_.28
= control target key start
LH: loop header
LB: loop body
LE: loop exit
PB: predicated region body
PF: predicated region fallthrough
CT: control target
= control target key end

     0   :  { %s657_s18 = smov 0   ;;  %s722_s0 = inlined_call_operand.vmem [shape: bf16[2,16,144], index: 0, kind: input, shape index: {}]   ;;  %s723_s1 = inlined_call_operand.vmem [shape: bf16[144,16], index: 1, kind: input, shape index: {}]   ;;  %s724_s2 = inlined_call_operand.vmem [shape: f32[1,16], index: 2, kind: input, shape index: {}]   ;;  %s725_s3 = inlined_call_operand.vmem [shape: f32[1,16], index: 3, kind: input, shape index: {}]   ;;  %s726_s4 = inlined_call_operand.vmem [shape: f32[2,16,16], index: 4, kind: input, shape index: {}]   ;;  %s727_s5 = inlined_call_operand.vmem [shape: f32[2,16,16], index: 5, kind: output, shape index: {}]  }
   0x1 LB: > { %s557_s19 = sadd.s32 4294967295, %s623_s18   ;;  %p561_p0 = scmp.ge.s32.totalorder %s623_s18, 1  ;;  %s623_s18 = sphi %s657_s18, %s15_s18  }
   0x2   : > { %p197_p1 = scmp.lt.s32.totalorder %s623_s18, 3 }
   0x4   : > { %p198_p2 = pnand %p561_p0, %p197_p1 }
   0x5   : > { %v595_v0 = vld [vmem:[%s723_s1] sm:$0xff] (!%p198_p2)   ;;  %v625_v1 = vmov (!%p198_p2), 0   ;;  %p230_p3 = scmp.lt.s32.totalorder (!%p198_p2), %s557_s19, 1  ;;  %v596_v2 = vld [vmem:[%s723_s1 + $0x8] sm:$0xff] (!%p198_p2)   ;;  %v597_v3 = vld [vmem:[%s723_s1 + $0x10] sm:$0xff] (!%p198_p2)   ;;  %vm329_vm0 = vcmask (!%p198_p2), 130048   ;;  %v415_v46 = vlaneseq (!%p198_p2) }
   0x6   : > { %201 = sbr.rel (%p198_p2) target bundleno = 497 (0x1f1), region = 40  ;;  %333 = vmatprep.subr.bf16.mxu0 (!%p198_p2), %v625_v1  ;;  %v598_v4 = vld [vmem:[%s723_s1 + $0x18] sm:$0xff] (!%p198_p2)   ;;  %v599_v6 = vld [vmem:[%s723_s1 + $0x20] sm:$0xff] (!%p198_p2)   ;;  %v600_v7 = vld [vmem:[%s723_s1 + $0x28] sm:$0xff] (!%p198_p2)  }
   0x7   : > { %334 = vmatpush1.bf16.msra.mxu0 (!%p198_p2), %v595_v0  ;;  %v601_v8 = vld [vmem:[%s723_s1 + $0x30] sm:$0xff] (!%p198_p2)   ;;  %v602_v9 = vld [vmem:[%s723_s1 + $0x38] sm:$0xff] (!%p198_p2)   ;;  %v603_v10 = vld [vmem:[%s723_s1 + $0x40] sm:$0xff] (!%p198_p2)   ;;  %v416_v47 = vshrl.u32 (!%p198_p2), %v415_v46, 7 }
   0x8   : > { %335 = vmatprep.subr.bf16.mxu0 (!%p198_p2), %v625_v1  ;;  %v407_v48 = vld [vmem:[%s724_s2] sm:$0x1] (!%p198_p2) }
   0x9   : > { %v417_v49 = vsub.s32 (!%p198_p2), 0, %v416_v47  ;;  %v411_v52 = vld [vmem:[%s725_s3] sm:$0x1] (!%p198_p2) }
   0xb   : > { %336 = vmatpush1.bf16.msra.mxu0 (!%p198_p2), %v596_v2 }
   0xc   : > { %337 = vmatprep.subr.bf16.mxu0 (!%p198_p2), %v625_v1 }
   0xd   : > { %s729_s19 = smov (!%p230_p3, %s557_s19), 1 }
   0xe   : > { %s671_s24 = sshll.u32 %s729_s19, 4 }
   0xf   : > { %s234_s29 = scalar_lea.vmem %s722_s0, %s671_s24  ;;  %338 = vmatpush1.bf16.msra.mxu0 %v597_v3  ;;  %s239_s25 = scalar_lea.vmem %s726_s4, %s671_s24 }
  0x10   : > { %v606_v5 = vld [vmem:[%s234_s29 + $0x4] ss:$8 sps:$4 sm:$0xff]   ;;  %339 = vmatprep.subr.bf16.mxu0 %v625_v1  ;;  %v604_v11 = vld [vmem:[%s234_s29] ss:$8 sps:$4 sm:$0xff]   ;;  %s244_s28 = scalar_lea.vmem %s727_s5, %s671_s24 }
  0x11   : > { %579 = vmatprep.mubr.msk.bf16.mxu0 %vm329_vm0, %v606_v5  ;;  %v430_v59 = vld [vmem:[%s239_s25] sm:$0xff]  ;;  %v431_v60 = vld [vmem:[%s239_s25 + $0x8] sm:$0xff] }
  0x13   : > { %340 = vmatpush1.bf16.msra.mxu0 %v598_v4 }
  0x14   : > { %341 = vmatprep.subr.bf16.mxu0 %v625_v1 }
  0x17   : > { %342 = vmatpush1.bf16.msra.mxu0 %v599_v6 }
  0x18   : > { %343 = vmatprep.subr.bf16.mxu0 %v625_v1 }
  0x1b   : > { %344 = vmatpush1.bf16.msra.mxu0 %v600_v7 }
  0x1c   : > { %345 = vmatprep.subr.bf16.mxu0 %v625_v1 }
  0x1f   : > { %346 = vmatpush1.bf16.msra.mxu0 %v601_v8 }
  0x20   : > { %347 = vmatprep.subr.bf16.mxu0 %v625_v1 }
  0x23   : > { %348 = vmatpush1.bf16.msra.mxu0 %v602_v9 }
  0x24   : > { %349 = vmatprep.subr.bf16.mxu0 %v625_v1 }
  0x27   : > { %350 = vmatpush1.bf16.msra.mxu0 %v603_v10 }
  0x2a   : > { %366 = vmatmul.mubr.bf16.vlgmr.msra.gmra.mrb[0].mxu0 %v604_v11 }
  0xfd   : > { %v367_v12 = vpop.f32.mrb[0].mxu0 }
  0xfe   : > { %v369_v13 = vpop.f32.mrb[1].mxu0  ;;  %v374_v14 = vsel %vm329_vm0, %v367_v12, 0.0  ;;  %v387_v15 = vmul.f32 %v367_v12, %v367_v12 }
  0xff   : > { %375 = vadd.xlane.f32.xlu0 %v374_v14  ;;  %v370_v16 = vpop.f32.mrb[2].mxu0 }
 0x100   : > { %v372_v17 = vpop.f32.mrb[3].mxu0  ;;  %v389_v18 = vsel %vm329_vm0, %v387_v15, 0.0  ;;  %v388_v19 = vmul.f32 %v370_v16, %v370_v16  ;;  %v377_v20 = vsel %vm329_vm0, %v370_v16, 0.0 }
 0x101   : > { %390 = vadd.xlane.f32.xlu1 %v389_v18 }
 0x102   : > { %v392_v21 = vsel %vm329_vm0, %v388_v19, 0.0 }
 0x103   : > { %378 = vadd.xlane.f32.xlu0 %v377_v20 }
 0x105   : > { %393 = vadd.xlane.f32.xlu1 %v392_v21 }
 0x18c   : > { %v376_v22 = vpop.xlane.xlu0 %375 }
 0x18e   : > { %v391_v23 = vpop.xlane.xlu1 %390 }
 0x190   : > { %v379_v24 = vpop.xlane.xlu0 %378 }
 0x191   : > { %v380_v25 = vadd.f32 %v379_v24, %v376_v22 }
 0x192   : > { %v394_v26 = vpop.xlane.xlu1 %393 }
 0x193   : > { %v381_v27 = vrot.slane %v380_v25, 4  ;;  %v395_v28 = vadd.f32 %v394_v26, %v391_v23 }
 0x195   : > { %v382_v29 = vadd.f32 %v381_v27, %v380_v25  ;;  %v396_v30 = vrot.slane %v395_v28, 4 }
 0x197   : > { %v383_v31 = vrot.slane %v382_v29, 2  ;;  %v397_v32 = vadd.f32 %v396_v30, %v395_v28 }
 0x199   : > { %v384_v33 = vadd.f32 %v383_v31, %v382_v29  ;;  %v398_v34 = vrot.slane %v397_v32, 2 }
 0x19b   : > { %v385_v35 = vrot.slane %v384_v33, 1  ;;  %v399_v36 = vadd.f32 %v398_v34, %v397_v32 }
 0x19d   : > { %v386_v37 = vadd.f32 %v385_v35, %v384_v33  ;;  %v400_v38 = vrot.slane %v399_v36, 1 }
 0x19f   : > { %v402_v39 = vmul.f32 0.00390625, %v386_v37  ;;  %v401_v40 = vadd.f32 %v400_v38, %v399_v36 }
 0x1a1   : > { %v404_v41 = vmul.f32 %v402_v39, %v402_v39  ;;  %v403_v42 = vmul.f32 0.00390625, %v401_v40  ;;  %v626_v40 = vmov -1.0  }
 0x1a3   : > { %v405_v43 = vsub.f32 %v403_v42, %v404_v41 }
 0x1a5   : > { %v406_v44 = vmax.f32 %v405_v43, 0.0 }
 0x1a7   : > { %v408_v45 = vadd.f32 1e-05, %v406_v44 }
 0x1a9   : > { %607 = vrsqrt.f32 %v408_v45 }
 0x1b3   : > { %v608_v50 = vpop.eup %607 }
 0x1b4   : > { %v410_v51 = vmul.f32 %v608_v50, %v407_v48 }
 0x1b6   : > { %v412_v53 = vmul.f32 %v410_v51, %v402_v39  ;;  %v418_v54 = vrot.slane %v410_v51, %v417_v49 }
 0x1b8   : > { %v413_v55 = vsub.f32 %v411_v52, %v412_v53  ;;  %v420_v56 = vmul.f32 %v418_v54, %v367_v12  ;;  %v421_v57 = vmul.f32 %v418_v54, %v370_v16 }
 0x1ba   : > { %v426_v58 = vrot.slane %v413_v55, %v417_v49 }
 0x1bc   : > { %v428_v61 = vadd.f32 %v426_v58, %v420_v56  ;;  %v429_v62 = vadd.f32 %v426_v58, %v421_v57 }
 0x1be   : > { %v432_v63 = vadd.f32 %v430_v59, %v428_v61  ;;  %v433_v0 = vadd.f32 %v431_v60, %v429_v62 }
 0x1c0   : > { %v436_v1 = vmul.f32 0.70710677, %v432_v63  ;;  %v437_v2 = vmul.f32 0.70710677, %v433_v0  ;;  %v434_v46 = vmul.f32 0.5, %v432_v63  ;;  %v435_v48 = vmul.f32 0.5, %v433_v0 }
 0x1c2   : > { %v442_v3 = vand.u32 2147483647, %v436_v1  ;;  %v443_v4 = vand.u32 2147483647, %v437_v2  ;;  %vm438_vm1 = vcmp.ge.f32.partialorder %v436_v1, 0.0  ;;  %vm439_vm2 = vcmp.ge.f32.partialorder %v437_v2, 0.0 }
 0x1c3   : > { %v440_v41 = vsel %vm438_vm1, 1.0, %v626_v40  ;;  %v441_v43 = vsel %vm439_vm2, 1.0, %v626_v40 }
 0x1c4   : > { %v444_v5 = vmul.f32 0.3275911, %v442_v3  ;;  %v445_v6 = vmul.f32 0.3275911, %v443_v4  ;;  %v470_v9 = vsub.f32 0.0, %v442_v3  ;;  %v471_v10 = vsub.f32 0.0, %v443_v4 }
 0x1c6   : > { %v446_v7 = vadd.f32 1.0, %v444_v5  ;;  %v447_v8 = vadd.f32 1.0, %v445_v6  ;;  %v472_v12 = vmul.f32 %v470_v9, %v442_v3  ;;  %v473_v15 = vmul.f32 %v471_v10, %v443_v4 }
 0x1c8   : > { %609 = vrcp.f32 %v446_v7  ;;  %v474_v19 = vmul.f32 1.442695, %v472_v12  ;;  %v476_v21 = vmul.f32 1.442695, %v473_v15 }
 0x1c9   : > { %611 = vrcp.f32 %v447_v8 }
 0x1ca   : > { %613 = vpow2.f32 %v474_v19 }
 0x1cb   : > { %615 = vpow2.f32 %v476_v21 }
 0x1d2   : > { %v610_v11 = vpop.eup %609 }
 0x1d3   : > { %v612_v13 = vpop.eup %611  ;;  %v452_v14 = vmul.f32 1.0614054, %v610_v11 }
 0x1d4   : > { %v453_v16 = vmul.f32 1.0614054, %v612_v13  ;;  %v614_v34 = vpop.eup %613 }
 0x1d5   : > { %v454_v17 = vadd.f32 -1.4531521, %v452_v14  ;;  %v616_v36 = vpop.eup %615 }
 0x1d6   : > { %v455_v18 = vadd.f32 -1.4531521, %v453_v16 }
 0x1d7   : > { %v456_v20 = vmul.f32 %v610_v11, %v454_v17 }
 0x1d8   : > { %v457_v22 = vmul.f32 %v612_v13, %v455_v18 }
 0x1d9   : > { %v458_v23 = vadd.f32 1.4214138, %v456_v20 }
 0x1da   : > { %v459_v24 = vadd.f32 1.4214138, %v457_v22 }
 0x1db   : > { %v460_v25 = vmul.f32 %v610_v11, %v458_v23 }
 0x1dc   : > { %v461_v26 = vmul.f32 %v612_v13, %v459_v24 }
 0x1dd   : > { %v462_v27 = vadd.f32 -0.28449672, %v460_v25 }
 0x1de   : > { %v463_v28 = vadd.f32 -0.28449672, %v461_v26 }
 0x1df   : > { %v464_v29 = vmul.f32 %v610_v11, %v462_v27 }
 0x1e0   : > { %v465_v30 = vmul.f32 %v612_v13, %v463_v28 }
 0x1e1   : > { %v466_v31 = vadd.f32 0.2548296, %v464_v29 }
 0x1e2   : > { %v467_v32 = vadd.f32 0.2548296, %v465_v30 }
 0x1e3   : > { %v468_v33 = vmul.f32 %v610_v11, %v466_v31 }
 0x1e4   : > { %v469_v35 = vmul.f32 %v612_v13, %v467_v32 }
 0x1e5   : > { %v478_v37 = vmul.f32 %v614_v34, %v468_v33 }
 0x1e6   : > { %v479_v38 = vmul.f32 %v616_v36, %v469_v35 }
 0x1e7   : > { %v480_v39 = vsub.f32 1.0, %v478_v37 }
 0x1e8   : > { %v481_v42 = vsub.f32 1.0, %v479_v38 }
 0x1e9   : > { %v482_v44 = vmul.f32 %v480_v39, %v440_v41 }
 0x1ea   : > { %v483_v45 = vmul.f32 %v481_v42, %v441_v43 }
 0x1eb   : > { %v484_v47 = vadd.f32 1.0, %v482_v44 }
 0x1ec   : > { %v485_v49 = vadd.f32 1.0, %v483_v45 }
 0x1ed   : > { %v486_v50 = vmul.f32 %v484_v47, %v434_v46 }
 0x1ee   : > { %v487_v51 = vmul.f32 %v485_v49, %v435_v48 }
 0x1ef   : > { %488 = vst.msk [vmem:[%s244_s28] sm:$0xff] %vm329_vm0, %v486_v50 }
 0x1f0   : > { %489 = vst.msk [vmem:[%s244_s28 + $0x8] sm:$0xff] %vm329_vm0, %v487_v51 }
 0x1f1 PF: > { %s15_s18 = sadd.s32 1, %s623_s18  }
 0x1f2   : > { %p12_p4 = scmp.ge.s32.totalorder %s15_s18, 4  }
 0x1f4   :  { %14 = sbr.rel (!%p12_p4) target bundleno = 1 (0x1), region = 73 }

// kernel: _lambda_.31
= control target key start
LH: loop header
LB: loop body
LE: loop exit
PB: predicated region body
PF: predicated region fallthrough
CT: control target
= control target key end

     0   :  { %s504_s15 = smov 0   ;;  %s564_s0 = inlined_call_operand.vmem [shape: bf16[2,4,144], index: 0, kind: input, shape index: {}]   ;;  %s565_s1 = inlined_call_operand.vmem [shape: bf16[144,16], index: 1, kind: input, shape index: {}]   ;;  %s566_s2 = inlined_call_operand.vmem [shape: f32[1,16], index: 2, kind: input, shape index: {}]   ;;  %s567_s3 = inlined_call_operand.vmem [shape: f32[1,16], index: 3, kind: input, shape index: {}]   ;;  %s568_s4 = inlined_call_operand.vmem [shape: f32[2,4,16], index: 4, kind: output, shape index: {}]  }
   0x1 LB: > { %s428_s16 = sadd.s32 4294967295, %s476_s15   ;;  %p432_p0 = scmp.ge.s32.totalorder %s476_s15, 1  ;;  %s476_s15 = sphi %s504_s15, %s14_s15  }
   0x2   : > { %p162_p1 = scmp.lt.s32.totalorder %s476_s15, 3 }
   0x4   : > { %p163_p2 = pnand %p432_p0, %p162_p1 }
   0x5   : > { %v459_v0 = vld [vmem:[%s565_s1] sm:$0xff] (!%p163_p2)   ;;  %v478_v1 = vmov (!%p163_p2), 0   ;;  %p187_p3 = scmp.lt.s32.totalorder (!%p163_p2), %s428_s16, 1  ;;  %v460_v2 = vld [vmem:[%s565_s1 + $0x8] sm:$0xff] (!%p163_p2)   ;;  %v461_v3 = vld [vmem:[%s565_s1 + $0x10] sm:$0xff] (!%p163_p2)   ;;  %vm280_vm0 = vcmask (!%p163_p2), 130048   ;;  %v360_v41 = vlaneseq (!%p163_p2) }
   0x6   : > { %166 = sbr.rel (%p163_p2) target bundleno = 446 (0x1be), region = 36  ;;  %284 = vmatprep.subr.bf16.mxu0 (!%p163_p2), %v478_v1  ;;  %v462_v5 = vld [vmem:[%s565_s1 + $0x18] sm:$0xff] (!%p163_p2)   ;;  %v463_v7 = vld [vmem:[%s565_s1 + $0x20] sm:$0xff] (!%p163_p2)   ;;  %v464_v8 = vld [vmem:[%s565_s1 + $0x28] sm:$0xff] (!%p163_p2)   ;;  %vm324_vm1 = vcmask (!%p163_p2), 125952   ;;  %vm328_vm2 = vcmask (!%p163_p2), 1043456  }
   0x7   : > { %285 = vmatpush1.bf16.msra.mxu0 (!%p163_p2), %v459_v0  ;;  %v465_v9 = vld [vmem:[%s565_s1 + $0x30] sm:$0xff] (!%p163_p2)   ;;  %v466_v10 = vld [vmem:[%s565_s1 + $0x38] sm:$0xff] (!%p163_p2)   ;;  %v467_v11 = vld [vmem:[%s565_s1 + $0x40] sm:$0xff] (!%p163_p2)   ;;  %v361_v42 = vshrl.u32 (!%p163_p2), %v360_v41, 7 }
   0x8   : > { %286 = vmatprep.subr.bf16.mxu0 (!%p163_p2), %v478_v1  ;;  %v352_v43 = vld [vmem:[%s566_s2] sm:$0x1] (!%p163_p2) }
   0x9   : > { %v362_v44 = vsub.s32 (!%p163_p2), 0, %v361_v42  ;;  %v356_v47 = vld [vmem:[%s567_s3] sm:$0x1] (!%p163_p2) }
   0xb   : > { %287 = vmatpush1.bf16.msra.mxu0 (!%p163_p2), %v460_v2 }
   0xc   : > { %288 = vmatprep.subr.bf16.mxu0 (!%p163_p2), %v478_v1 }
   0xd   : > { %s570_s16 = smov (!%p187_p3, %s428_s16), 1 }
   0xe   : > { %s449_s21 = sshll.u32 %s570_s16, 2 }
   0xf   : > { %s191_s26 = scalar_lea.vmem %s564_s0, %s449_s21  ;;  %289 = vmatpush1.bf16.msra.mxu0 %v461_v3  ;;  %s195_s22 = scalar_lea.vmem %s568_s4, %s449_s21 }
  0x10   : > { %v436_v4 = vld.sshfl [vmem:[%s191_s26] sm:$0x33 pattern:$0x76325410]  ;;  %290 = vmatprep.subr.bf16.mxu0 %v478_v1 }
  0x11   : > { %v224_v6 = vcombine.high %v436_v4, %v436_v4 }
  0x13   : > { %446 = vmatprep.mubr.msk.bf16.mxu0 %vm280_vm0, %v224_v6  ;;  %291 = vmatpush1.bf16.msra.mxu0 %v462_v5 }
  0x14   : > { %292 = vmatprep.subr.bf16.mxu0 %v478_v1 }
  0x17   : > { %293 = vmatpush1.bf16.msra.mxu0 %v463_v7 }
  0x18   : > { %294 = vmatprep.subr.bf16.mxu0 %v478_v1 }
  0x1b   : > { %295 = vmatpush1.bf16.msra.mxu0 %v464_v8 }
  0x1c   : > { %296 = vmatprep.subr.bf16.mxu0 %v478_v1 }
  0x1f   : > { %297 = vmatpush1.bf16.msra.mxu0 %v465_v9 }
  0x20   : > { %298 = vmatprep.subr.bf16.mxu0 %v478_v1 }
  0x23   : > { %299 = vmatpush1.bf16.msra.mxu0 %v466_v10 }
  0x24   : > { %300 = vmatprep.subr.bf16.mxu0 %v478_v1 }
  0x27   : > { %301 = vmatpush1.bf16.msra.mxu0 %v467_v11 }
  0x2a   : > { %317 = vmatmul.mubr.bf16.vlgmr.msra.gmra.mrb[0].mxu0 %v436_v4 }
  0xfd   : > { %v318_v12 = vpop.f32.mrb[0].mxu0 }
  0xfe   : > { %v320_v13 = vpop.f32.mrb[1].mxu0  ;;  %v325_v14 = vsel %vm324_vm1, %v318_v12, 0.0  ;;  %v336_v15 = vmul.f32 %v318_v12, %v318_v12 }
  0xff   : > { %326 = vadd.xlane.f32.xlu0 %v325_v14  ;;  %v321_v16 = vpop.f32.mrb[2].mxu0 }
 0x100   : > { %v322_v17 = vpop.f32.mrb[3].mxu0  ;;  %v337_v18 = vsel %vm324_vm1, %v336_v15, 0.0 }
 0x103   : > { %338 = vadd.xlane.f32.xlu0 %v337_v18 }
 0x18c   : > { %v327_v19 = vpop.xlane.xlu0 %326 }
 0x18d   : > { %v329_v20 = vsel %vm328_vm2, %v327_v19, 0.0 }
 0x18e   : > { %v330_v21 = vrot.slane %v329_v20, 4 }
 0x190   : > { %v331_v22 = vadd.f32 %v330_v21, %v329_v20  ;;  %v339_v23 = vpop.xlane.xlu0 %338 }
 0x191   : > { %v340_v24 = vsel %vm328_vm2, %v339_v23, 0.0 }
 0x192   : > { %v332_v25 = vrot.slane %v331_v22, 2  ;;  %v341_v26 = vrot.slane %v340_v24, 4 }
 0x194   : > { %v333_v27 = vadd.f32 %v332_v25, %v331_v22  ;;  %v342_v28 = vadd.f32 %v341_v26, %v340_v24 }
 0x196   : > { %v334_v29 = vrot.slane %v333_v27, 1  ;;  %v343_v30 = vrot.slane %v342_v28, 2 }
 0x198   : > { %v335_v31 = vadd.f32 %v334_v29, %v333_v27  ;;  %v344_v32 = vadd.f32 %v343_v30, %v342_v28 }
 0x19a   : > { %v347_v33 = vmul.f32 0.015625, %v335_v31  ;;  %v345_v34 = vrot.slane %v344_v32, 1 }
 0x19c   : > { %v346_v35 = vadd.f32 %v345_v34, %v344_v32  ;;  %v349_v36 = vmul.f32 %v347_v33, %v347_v33 }
 0x19e   : > { %v348_v37 = vmul.f32 0.015625, %v346_v35 }
 0x1a0   : > { %v350_v38 = vsub.f32 %v348_v37, %v349_v36 }
 0x1a2   : > { %v351_v39 = vmax.f32 %v350_v38, 0.0 }
 0x1a4   : > { %v353_v40 = vadd.f32 1e-05, %v351_v39 }
 0x1a6   : > { %468 = vrsqrt.f32 %v353_v40 }
 0x1b0   : > { %v469_v45 = vpop.eup %468 }
 0x1b1   : > { %v355_v46 = vmul.f32 %v469_v45, %v352_v43 }
 0x1b3   : > { %v357_v48 = vmul.f32 %v355_v46, %v347_v33  ;;  %v363_v49 = vrot.slane %v355_v46, %v362_v44 }
 0x1b5   : > { %v358_v50 = vsub.f32 %v356_v47, %v357_v48  ;;  %v365_v51 = vmul.f32 %v363_v49, %v318_v12 }
 0x1b7   : > { %v370_v52 = vrot.slane %v358_v50, %v362_v44 }
 0x1b9   : > { %v372_v53 = vadd.f32 %v370_v52, %v365_v51 }
 0x1bb   : > { %v373_v54 = vmax.f32 %v372_v53, 0.0 }
 0x1bd   : > { %374 = vst.msk [vmem:[%s195_s22] sm:$0xf] %vm324_vm1, %v373_v54 }
 0x1be PF: > { %s14_s15 = sadd.s32 1, %s476_s15  }
 0x1bf   : > { %p11_p4 = scmp.ge.s32.totalorder %s14_s15, 4  }
 0x1c1   :  { %13 = sbr.rel (!%p11_p4) target bundleno = 1 (0x1), region = 66 }

// kernel: _lambda_.32
= control target key start
LH: loop header
LB: loop body
LE: loop exit
PB: predicated region body
PF: predicated region fallthrough
CT: control target
= control target key end

     0   :  { %s417_s15 = smov 0   ;;  %s450_s0 = inlined_call_operand.vmem [shape: bf16[2,4,16], index: 0, kind: input, shape index: {}]   ;;  %s451_s1 = inlined_call_operand.vmem [shape: bf16[16,16], index: 1, kind: input, shape index: {}]   ;;  %s452_s2 = inlined_call_operand.vmem [shape: f32[1,16], index: 2, kind: input, shape index: {}]   ;;  %s453_s3 = inlined_call_operand.vmem [shape: f32[1,16], index: 3, kind: input, shape index: {}]   ;;  %s454_s4 = inlined_call_operand.vmem [shape: f32[2,4,16], index: 4, kind: output, shape index: {}]  }
   0x1 LB: > { %s350_s16 = sadd.s32 4294967295, %s388_s15   ;;  %p354_p0 = scmp.ge.s32.totalorder %s388_s15, 1  ;;  %s388_s15 = sphi %s417_s15, %s14_s15  }
   0x2   : > { %p161_p1 = scmp.lt.s32.totalorder %s388_s15, 3 }
   0x4   : > { %p162_p2 = pnand %p354_p0, %p161_p1 }
   0x5   : > { %v379_v0 = vld [vmem:[%s451_s1] sm:$0xff] (!%p162_p2)   ;;  %v390_v1 = vmov (!%p162_p2), 0.0   ;;  %p185_p3 = scmp.lt.s32.totalorder (!%p162_p2), %s350_s16, 1  ;;  %vm391_vm0 = vmmov (!%p162_p2), 0   ;;  %vm203_vm1 = vcmask (!%p162_p2), 130048   ;;  %vm247_vm2 = vcmask (!%p162_p2), 125952  }
   0x6   : > { %165 = sbr.rel (%p162_p2) target bundleno = 419 (0x1a3), region = 36  ;;  %363 = vmatprep.subr.bf16.mxu0 (!%p162_p2), %v390_v1  ;;  %365 = vmatprep.mubr.msk.bf16.mxu0 (!%p162_p2), %vm391_vm0, %v390_v1  ;;  %vm251_vm3 = vcmask (!%p162_p2), 1043456   ;;  %v283_v32 = vlaneseq (!%p162_p2)  ;;  %v275_v34 = vld [vmem:[%s452_s2] sm:$0x1] (!%p162_p2) }
   0x7   : > { %364 = vmatpush3.bf16.msra.mxu0 (!%p162_p2), %v379_v0  ;;  %v279_v38 = vld [vmem:[%s453_s3] sm:$0x1] (!%p162_p2) }
   0x8   : > { %v284_v33 = vshrl.u32 (!%p162_p2), %v283_v32, 7 }
   0xa   : > { %v285_v35 = vsub.s32 (!%p162_p2), 0, %v284_v33 }
   0xd   : > { %s456_s16 = smov (!%p185_p3, %s350_s16), 1 }
   0xe   : > { %s355_s19 = sshll.u32 %s456_s16, 1  ;;  %s356_s27 = sshll.u32 %s456_s16, 2 }
   0xf   : > { %s188_s22 = scalar_lea.vmem %s450_s0, %s355_s19  ;;  %s192_s30 = scalar_lea.vmem %s454_s4, %s356_s27 }
  0x10   : > { %v194_v2 = vld [vmem:[%s188_s22] sm:$0x3] }
  0x11   : > { %366 = vmatmul.mubr.msk.bf16.vlgmr.msra.gmra.mrb[0].mxu0 %vm203_vm1, %v194_v2 }
  0xe4   : > { %v241_v3 = vpop.f32.mrb[0].mxu0 }
  0xe5   : > { %v367_v4 = vpop.f32.mrb[1].mxu0  ;;  %v248_v5 = vsel %vm247_vm2, %v241_v3, 0.0  ;;  %v259_v6 = vmul.f32 %v241_v3, %v241_v3 }
  0xe6   : > { %249 = vadd.xlane.f32.xlu0 %v248_v5  ;;  %v244_v7 = vpop.f32.mrb[2].mxu0 }
  0xe7   : > { %v368_v8 = vpop.f32.mrb[3].mxu0  ;;  %v260_v9 = vsel %vm247_vm2, %v259_v6, 0.0 }
  0xea   : > { %261 = vadd.xlane.f32.xlu0 %v260_v9 }
 0x173   : > { %v250_v10 = vpop.xlane.xlu0 %249 }
 0x174   : > { %v252_v11 = vsel %vm251_vm3, %v250_v10, 0.0 }
 0x175   : > { %v253_v12 = vrot.slane %v252_v11, 4 }
 0x177   : > { %v254_v13 = vadd.f32 %v253_v12, %v252_v11  ;;  %v262_v14 = vpop.xlane.xlu0 %261 }
 0x178   : > { %v263_v15 = vsel %vm251_vm3, %v262_v14, 0.0 }
 0x179   : > { %v255_v16 = vrot.slane %v254_v13, 2  ;;  %v264_v17 = vrot.slane %v263_v15, 4 }
 0x17b   : > { %v256_v18 = vadd.f32 %v255_v16, %v254_v13  ;;  %v265_v19 = vadd.f32 %v264_v17, %v263_v15 }
 0x17d   : > { %v257_v20 = vrot.slane %v256_v18, 1  ;;  %v266_v21 = vrot.slane %v265_v19, 2 }
 0x17f   : > { %v258_v22 = vadd.f32 %v257_v20, %v256_v18  ;;  %v267_v23 = vadd.f32 %v266_v21, %v265_v19 }
 0x181   : > { %v270_v24 = vmul.f32 0.015625, %v258_v22  ;;  %v268_v25 = vrot.slane %v267_v23, 1 }
 0x183   : > { %v269_v26 = vadd.f32 %v268_v25, %v267_v23  ;;  %v272_v27 = vmul.f32 %v270_v24, %v270_v24 }
 0x185   : > { %v271_v28 = vmul.f32 0.015625, %v269_v26 }
 0x187   : > { %v273_v29 = vsub.f32 %v271_v28, %v272_v27 }
 0x189   : > { %v274_v30 = vmax.f32 %v273_v29, 0.0 }
 0x18b   : > { %v276_v31 = vadd.f32 1e-05, %v274_v30 }
 0x18d   : > { %380 = vrsqrt.f32 %v276_v31 }
 0x197   : > { %v381_v36 = vpop.eup %380 }
 0x198   : > { %v278_v37 = vmul.f32 %v381_v36, %v275_v34 }
 0x19a   : > { %v280_v39 = vmul.f32 %v278_v37, %v270_v24  ;;  %v286_v40 = vrot.slane %v278_v37, %v285_v35 }
 0x19c   : > { %v281_v41 = vsub.f32 %v279_v38, %v280_v39  ;;  %v288_v42 = vmul.f32 %v286_v40, %v241_v3 }
 0x19e   : > { %v293_v43 = vrot.slane %v281_v41, %v285_v35 }
 0x1a0   : > { %v295_v44 = vadd.f32 %v293_v43, %v288_v42 }
 0x1a2   : > { %296 = vst.msk [vmem:[%s192_s30] sm:$0xf] %vm247_vm2, %v295_v44 }
 0x1a3 PF: > { %s14_s15 = sadd.s32 1, %s388_s15  }
 0x1a4   : > { %p11_p4 = scmp.ge.s32.totalorder %s14_s15, 4  }
 0x1a6   :  { %13 = sbr.rel (!%p11_p4) target bundleno = 1 (0x1), region = 66 }

// kernel: _lambda_.33
= control target key start
LH: loop header
LB: loop body
LE: loop exit
PB: predicated region body
PF: predicated region fallthrough
CT: control target
= control target key end

     0   :  { %s600_s18 = smov 0   ;;  %s661_s0 = inlined_call_operand.vmem [shape: bf16[2,4,144], index: 0, kind: input, shape index: {}]   ;;  %s662_s1 = inlined_call_operand.vmem [shape: bf16[144,16], index: 1, kind: input, shape index: {}]   ;;  %s663_s2 = inlined_call_operand.vmem [shape: f32[1,16], index: 2, kind: input, shape index: {}]   ;;  %s664_s3 = inlined_call_operand.vmem [shape: f32[1,16], index: 3, kind: input, shape index: {}]   ;;  %s665_s4 = inlined_call_operand.vmem [shape: f32[2,4,16], index: 4, kind: input, shape index: {}]   ;;  %s666_s5 = inlined_call_operand.vmem [shape: f32[2,4,16], index: 5, kind: output, shape index: {}]  }
   0x1 LB: > { %s512_s19 = sadd.s32 4294967295, %s566_s18   ;;  %p516_p0 = scmp.ge.s32.totalorder %s566_s18, 1  ;;  %s566_s18 = sphi %s600_s18, %s15_s18  }
   0x2   : > { %p196_p1 = scmp.lt.s32.totalorder %s566_s18, 3 }
   0x4   : > { %p197_p2 = pnand %p516_p0, %p196_p1 }
   0x5   : > { %v545_v0 = vld [vmem:[%s662_s1] sm:$0xff] (!%p197_p2)   ;;  %v568_v1 = vmov (!%p197_p2), 0   ;;  %p227_p3 = scmp.lt.s32.totalorder (!%p197_p2), %s512_s19, 1  ;;  %v546_v2 = vld [vmem:[%s662_s1 + $0x8] sm:$0xff] (!%p197_p2)   ;;  %v547_v3 = vld [vmem:[%s662_s1 + $0x10] sm:$0xff] (!%p197_p2)   ;;  %vm324_vm0 = vcmask (!%p197_p2), 130048   ;;  %v404_v41 = vlaneseq (!%p197_p2) }
   0x6   : > { %200 = sbr.rel (%p197_p2) target bundleno = 493 (0x1ed), region = 40  ;;  %328 = vmatprep.subr.bf16.mxu0 (!%p197_p2), %v568_v1  ;;  %v548_v5 = vld [vmem:[%s662_s1 + $0x18] sm:$0xff] (!%p197_p2)   ;;  %v549_v7 = vld [vmem:[%s662_s1 + $0x20] sm:$0xff] (!%p197_p2)   ;;  %v550_v8 = vld [vmem:[%s662_s1 + $0x28] sm:$0xff] (!%p197_p2)   ;;  %vm368_vm1 = vcmask (!%p197_p2), 125952   ;;  %vm372_vm2 = vcmask (!%p197_p2), 1043456  }
   0x7   : > { %329 = vmatpush1.bf16.msra.mxu0 (!%p197_p2), %v545_v0  ;;  %v551_v9 = vld [vmem:[%s662_s1 + $0x30] sm:$0xff] (!%p197_p2)   ;;  %v552_v10 = vld [vmem:[%s662_s1 + $0x38] sm:$0xff] (!%p197_p2)   ;;  %v553_v11 = vld [vmem:[%s662_s1 + $0x40] sm:$0xff] (!%p197_p2)   ;;  %v405_v42 = vshrl.u32 (!%p197_p2), %v404_v41, 7 }
   0x8   : > { %330 = vmatprep.subr.bf16.mxu0 (!%p197_p2), %v568_v1  ;;  %v396_v43 = vld [vmem:[%s663_s2] sm:$0x1] (!%p197_p2) }
   0x9   : > { %v406_v44 = vsub.s32 (!%p197_p2), 0, %v405_v42  ;;  %v400_v47 = vld [vmem:[%s664_s3] sm:$0x1] (!%p197_p2) }
   0xb   : > { %331 = vmatpush1.bf16.msra.mxu0 (!%p197_p2), %v546_v2 }
   0xc   : > { %332 = vmatprep.subr.bf16.mxu0 (!%p197_p2), %v568_v1 }
   0xd   : > { %s668_s19 = smov (!%p227_p3, %s512_s19), 1 }
   0xe   : > { %s614_s24 = sshll.u32 %s668_s19, 2 }
   0xf   : > { %s231_s29 = scalar_lea.vmem %s661_s0, %s614_s24  ;;  %333 = vmatpush1.bf16.msra.mxu0 %v547_v3  ;;  %s235_s25 = scalar_lea.vmem %s665_s4, %s614_s24 }
  0x10   : > { %v521_v4 = vld.sshfl [vmem:[%s231_s29] sm:$0x33 pattern:$0x76325410]  ;;  %334 = vmatprep.subr.bf16.mxu0 %v568_v1  ;;  %s239_s28 = scalar_lea.vmem %s666_s5, %s614_s24 }
  0x11   : > { %v268_v6 = vcombine.high %v521_v4, %v521_v4  ;;  %v417_v53 = vld [vmem:[%s235_s25] sm:$0xf] }
  0x13   : > { %531 = vmatprep.mubr.msk.bf16.mxu0 %vm324_vm0, %v268_v6  ;;  %335 = vmatpush1.bf16.msra.mxu0 %v548_v5 }
  0x14   : > { %336 = vmatprep.subr.bf16.mxu0 %v568_v1 }
  0x17   : > { %337 = vmatpush1.bf16.msra.mxu0 %v549_v7 }
  0x18   : > { %338 = vmatprep.subr.bf16.mxu0 %v568_v1 }
  0x1b   : > { %339 = vmatpush1.bf16.msra.mxu0 %v550_v8 }
  0x1c   : > { %340 = vmatprep.subr.bf16.mxu0 %v568_v1 }
  0x1f   : > { %341 = vmatpush1.bf16.msra.mxu0 %v551_v9 }
  0x20   : > { %342 = vmatprep.subr.bf16.mxu0 %v568_v1 }
  0x23   : > { %343 = vmatpush1.bf16.msra.mxu0 %v552_v10 }
  0x24   : > { %344 = vmatprep.subr.bf16.mxu0 %v568_v1 }
  0x27   : > { %345 = vmatpush1.bf16.msra.mxu0 %v553_v11 }
  0x2a   : > { %361 = vmatmul.mubr.bf16.vlgmr.msra.gmra.mrb[0].mxu0 %v521_v4 }
  0xfd   : > { %v362_v12 = vpop.f32.mrb[0].mxu0 }
  0xfe   : > { %v364_v13 = vpop.f32.mrb[1].mxu0  ;;  %v369_v14 = vsel %vm368_vm1, %v362_v12, 0.0  ;;  %v380_v15 = vmul.f32 %v362_v12, %v362_v12 }
  0xff   : > { %370 = vadd.xlane.f32.xlu0 %v369_v14  ;;  %v365_v16 = vpop.f32.mrb[2].mxu0 }
 0x100   : > { %v366_v17 = vpop.f32.mrb[3].mxu0  ;;  %v381_v18 = vsel %vm368_vm1, %v380_v15, 0.0 }
 0x103   : > { %382 = vadd.xlane.f32.xlu0 %v381_v18 }
 0x18c   : > { %v371_v19 = vpop.xlane.xlu0 %370 }
 0x18d   : > { %v373_v20 = vsel %vm372_vm2, %v371_v19, 0.0 }
 0x18e   : > { %v374_v21 = vrot.slane %v373_v20, 4 }
 0x190   : > { %v375_v22 = vadd.f32 %v374_v21, %v373_v20  ;;  %v383_v23 = vpop.xlane.xlu0 %382 }
 0x191   : > { %v384_v24 = vsel %vm372_vm2, %v383_v23, 0.0 }
 0x192   : > { %v376_v25 = vrot.slane %v375_v22, 2  ;;  %v385_v26 = vrot.slane %v384_v24, 4 }
 0x194   : > { %v377_v27 = vadd.f32 %v376_v25, %v375_v22  ;;  %v386_v28 = vadd.f32 %v385_v26, %v384_v24 }
 0x196   : > { %v378_v29 = vrot.slane %v377_v27, 1  ;;  %v387_v30 = vrot.slane %v386_v28, 2 }
 0x198   : > { %v379_v31 = vadd.f32 %v378_v29, %v377_v27  ;;  %v388_v32 = vadd.f32 %v387_v30, %v386_v28 }
 0x19a   : > { %v391_v33 = vmul.f32 0.015625, %v379_v31  ;;  %v389_v34 = vrot.slane %v388_v32, 1 }
 0x19c   : > { %v390_v35 = vadd.f32 %v389_v34, %v388_v32  ;;  %v393_v36 = vmul.f32 %v391_v33, %v391_v33 }
 0x19e   : > { %v392_v37 = vmul.f32 0.015625, %v390_v35 }
 0x1a0   : > { %v394_v38 = vsub.f32 %v392_v37, %v393_v36 }
 0x1a2   : > { %v395_v39 = vmax.f32 %v394_v38, 0.0 }
 0x1a4   : > { %v397_v40 = vadd.f32 1e-05, %v395_v39 }
 0x1a6   : > { %554 = vrsqrt.f32 %v397_v40 }
 0x1b0   : > { %v555_v45 = vpop.eup %554 }
 0x1b1   : > { %v399_v46 = vmul.f32 %v555_v45, %v396_v43 }
 0x1b3   : > { %v401_v48 = vmul.f32 %v399_v46, %v391_v33  ;;  %v407_v49 = vrot.slane %v399_v46, %v406_v44 }
 0x1b5   : > { %v402_v50 = vsub.f32 %v400_v47, %v401_v48  ;;  %v409_v51 = vmul.f32 %v407_v49, %v362_v12  ;;  %v569_v12 = vmov -1.0  }
 0x1b7   : > { %v414_v52 = vrot.slane %v402_v50, %v406_v44 }
 0x1b9   : > { %v416_v54 = vadd.f32 %v414_v52, %v409_v51 }
 0x1bb   : > { %v418_v55 = vadd.f32 %v417_v53, %v416_v54 }
 0x1bd   : > { %v420_v56 = vmul.f32 0.70710677, %v418_v55  ;;  %v419_v15 = vmul.f32 0.5, %v418_v55 }
 0x1bf   : > { %v423_v57 = vand.u32 2147483647, %v420_v56  ;;  %vm421_vm3 = vcmp.ge.f32.partialorder %v420_v56, 0.0 }
 0x1c0   : > { %v422_v13 = vsel %vm421_vm3, 1.0, %v569_v12 }
 0x1c1   : > { %v424_v58 = vmul.f32 0.3275911, %v423_v57  ;;  %v437_v60 = vsub.f32 0.0, %v423_v57 }
 0x1c3   : > { %v425_v59 = vadd.f32 1.0, %v424_v58  ;;  %v438_v62 = vmul.f32 %v437_v60, %v423_v57 }
 0x1c5   : > { %556 = vrcp.f32 %v425_v59  ;;  %v439_v1 = vmul.f32 1.442695, %v438_v62 }
 0x1c7   : > { %558 = vpow2.f32 %v439_v1 }
 0x1cf   : > { %v557_v61 = vpop.eup %556 }
 0x1d0   : > { %v428_v63 = vmul.f32 1.0614054, %v557_v61 }
 0x1d1   : > { %v559_v9 = vpop.eup %558 }
 0x1d2   : > { %v429_v0 = vadd.f32 -1.4531521, %v428_v63 }
 0x1d4   : > { %v430_v2 = vmul.f32 %v557_v61, %v429_v0 }
 0x1d6   : > { %v431_v3 = vadd.f32 1.4214138, %v430_v2 }
 0x1d8   : > { %v432_v4 = vmul.f32 %v557_v61, %v431_v3 }
 0x1da   : > { %v433_v5 = vadd.f32 -0.28449672, %v432_v4 }
 0x1dc   : > { %v434_v6 = vmul.f32 %v557_v61, %v433_v5 }
 0x1de   : > { %v435_v7 = vadd.f32 0.2548296, %v434_v6 }
 0x1e0   : > { %v436_v8 = vmul.f32 %v557_v61, %v435_v7 }
 0x1e2   : > { %v441_v10 = vmul.f32 %v559_v9, %v436_v8 }
 0x1e4   : > { %v442_v11 = vsub.f32 1.0, %v441_v10 }
 0x1e6   : > { %v443_v14 = vmul.f32 %v442_v11, %v422_v13 }
 0x1e8   : > { %v444_v16 = vadd.f32 1.0, %v443_v14 }
 0x1ea   : > { %v445_v17 = vmul.f32 %v444_v16, %v419_v15 }
 0x1ec   : > { %446 = vst.msk [vmem:[%s239_s28] sm:$0xf] %vm368_vm1, %v445_v17 }
 0x1ed PF: > { %s15_s18 = sadd.s32 1, %s566_s18  }
 0x1ee   : > { %p12_p4 = scmp.ge.s32.totalorder %s15_s18, 4  }
 0x1f0   :  { %14 = sbr.rel (!%p12_p4) target bundleno = 1 (0x1), region = 73 }

// kernel: _lambda_.36
= control target key start
LH: loop header
LB: loop body
LE: loop exit
PB: predicated region body
PF: predicated region fallthrough
CT: control target
= control target key end

     0   :  { %s481_s15 = smov 0   ;;  %s538_s0 = inlined_call_operand.vmem [shape: bf16[2,1,144], index: 0, kind: input, shape index: {}]   ;;  %s539_s1 = inlined_call_operand.vmem [shape: bf16[144,32], index: 1, kind: input, shape index: {}]   ;;  %s540_s2 = inlined_call_operand.vmem [shape: f32[1,32], index: 2, kind: input, shape index: {}]   ;;  %s541_s3 = inlined_call_operand.vmem [shape: f32[1,32], index: 3, kind: input, shape index: {}]   ;;  %s542_s4 = inlined_call_operand.vmem [shape: f32[2,1,32], index: 4, kind: output, shape index: {}]  }
   0x1 LB: > { %s406_s16 = sadd.s32 4294967295, %s452_s15   ;;  %p410_p0 = scmp.ge.s32.totalorder %s452_s15, 1  ;;  %s452_s15 = sphi %s481_s15, %s14_s15  }
   0x2   : > { %p161_p1 = scmp.lt.s32.totalorder %s452_s15, 3 }
   0x4   : > { %p162_p2 = pnand %p410_p0, %p161_p1 }
   0x5   : > { %v435_v0 = vld [vmem:[%s539_s1] sm:$0xff] (!%p162_p2)   ;;  %v454_v1 = vmov (!%p162_p2), 0   ;;  %p184_p3 = scmp.lt.s32.totalorder (!%p162_p2), %s406_s16, 1  ;;  %v436_v2 = vld [vmem:[%s539_s1 + $0x8] sm:$0xff] (!%p162_p2)   ;;  %v437_v3 = vld [vmem:[%s539_s1 + $0x10] sm:$0xff] (!%p162_p2)   ;;  %v223_v4 = vlaneseq (!%p162_p2)  ;;  %vm289_vm0 = vcmask (!%p162_p2), 130048  }
   0x6   : > { %165 = sbr.rel (%p162_p2) target bundleno = 431 (0x1af), region = 36  ;;  %293 = vmatprep.subr.bf16.mxu0 (!%p162_p2), %v454_v1  ;;  %v438_v6 = vld [vmem:[%s539_s1 + $0x18] sm:$0xff] (!%p162_p2)   ;;  %v455_v7 = vmov (!%p162_p2), 1966171168   ;;  %v439_v12 = vld [vmem:[%s539_s1 + $0x20] sm:$0xff] (!%p162_p2)   ;;  %v440_v15 = vld [vmem:[%s539_s1 + $0x28] sm:$0xff] (!%p162_p2)  }
   0x7   : > { %294 = vmatpush1.bf16.msra.mxu0 (!%p162_p2), %v435_v0  ;;  %v221_v8 = vunpack.c.l.s4 (!%p162_p2), %v455_v7  ;;  %v224_v9 = vshrl.u32 (!%p162_p2), %v223_v4, 7  ;;  %v441_v16 = vld [vmem:[%s539_s1 + $0x30] sm:$0xff] (!%p162_p2)   ;;  %v442_v17 = vld [vmem:[%s539_s1 + $0x38] sm:$0xff] (!%p162_p2)   ;;  %v443_v18 = vld [vmem:[%s539_s1 + $0x40] sm:$0xff] (!%p162_p2)   ;;  %vm333_vm1 = vcmask (!%p162_p2), 253952  }
   0x8   : > { %295 = vmatprep.subr.bf16.mxu0 (!%p162_p2), %v454_v1  ;;  %v348_v35 = vld [vmem:[%s540_s2] sm:$0x1] (!%p162_p2) }
   0x9   : > { %v222_v11 = vunpack.c.0.s8 (!%p162_p2), %v221_v8  ;;  %v352_v38 = vld [vmem:[%s541_s3] sm:$0x1] (!%p162_p2) }
   0xb   : > { %296 = vmatpush1.bf16.msra.mxu0 (!%p162_p2), %v436_v2  ;;  %v225_v13 = vsub.s32 (!%p162_p2), %v222_v11, %v224_v9 }
   0xc   : > { %297 = vmatprep.subr.bf16.mxu0 (!%p162_p2), %v454_v1 }
   0xd   : > { %s544_s16 = smov (!%p184_p3, %s406_s16), 1 }
   0xe   : > { %s411_s21 = sshll.u32 %s544_s16, 1 }
   0xf   : > { %s187_s26 = scalar_lea.vmem %s538_s0, %s411_s21  ;;  %298 = vmatpush1.bf16.msra.mxu0 %v437_v3  ;;  %s190_s21 = scalar_lea.vmem %s542_s4, %s544_s16 }
  0x10   : > { %v412_v5 = vld.sshfl [vmem:[%s187_s26] sm:$0x11 pattern:$0x75316420]  ;;  %299 = vmatprep.subr.bf16.mxu0 %v454_v1 }
  0x11   : > { %v219_v10 = vcombine.high %v412_v5, %v412_v5  ;;  %v226_v19 = vrot.slane %v412_v5, %v225_v13 }
  0x13   : > { %300 = vmatpush1.bf16.msra.mxu0 %v438_v6  ;;  %v233_v14 = vrot.slane %v219_v10, %v225_v13 }
  0x14   : > { %301 = vmatprep.subr.bf16.mxu0 %v454_v1 }
  0x15   : > { %422 = vmatprep.mubr.msk.bf16.mxu0 %vm289_vm0, %v233_v14 }
  0x17   : > { %302 = vmatpush1.bf16.msra.mxu0 %v439_v12 }
  0x18   : > { %303 = vmatprep.subr.bf16.mxu0 %v454_v1 }
  0x1b   : > { %304 = vmatpush1.bf16.msra.mxu0 %v440_v15 }
  0x1c   : > { %305 = vmatprep.subr.bf16.mxu0 %v454_v1 }
  0x1f   : > { %306 = vmatpush1.bf16.msra.mxu0 %v441_v16 }
  0x20   : > { %307 = vmatprep.subr.bf16.mxu0 %v454_v1 }
  0x23   : > { %308 = vmatpush1.bf16.msra.mxu0 %v442_v17 }
  0x24   : > { %309 = vmatprep.subr.bf16.mxu0 %v454_v1 }
  0x27   : > { %310 = vmatpush1.bf16.msra.mxu0 %v443_v18 }
  0x2a   : > { %326 = vmatmul.mubr.bf16.vlgmr.msra.gmra.mrb[0].mxu0 %v226_v19 }
  0xfd   : > { %v327_v20 = vpop.f32.mrb[0].mxu0 }
  0xfe   : > { %v329_v21 = vpop.f32.mrb[1].mxu0  ;;  %v334_v22 = vsel %vm333_vm1, %v327_v20, 0.0  ;;  %v338_v23 = vmul.f32 %v327_v20, %v327_v20 }
  0xff   : > { %335 = vadd.xlane.f32.xlu0 %v334_v22  ;;  %v330_v24 = vpop.f32.mrb[2].mxu0 }
 0x100   : > { %v331_v25 = vpop.f32.mrb[3].mxu0  ;;  %v339_v26 = vsel %vm333_vm1, %v338_v23, 0.0 }
 0x103   : > { %340 = vadd.xlane.f32.xlu0 %v339_v26 }
 0x18c   : > { %v336_v27 = vpop.xlane.xlu0 %335 }
 0x18d   : > { %v343_v28 = vmul.f32 0.03125, %v336_v27 }
 0x18f   : > { %v345_v30 = vmul.f32 %v343_v28, %v343_v28 }
 0x190   : > { %v341_v29 = vpop.xlane.xlu0 %340 }
 0x191   : > { %v344_v31 = vmul.f32 0.03125, %v341_v29 }
 0x193   : > { %v346_v32 = vsub.f32 %v344_v31, %v345_v30 }
 0x195   : > { %v347_v33 = vmax.f32 %v346_v32, 0.0 }
 0x197   : > { %v349_v34 = vadd.f32 1e-05, %v347_v33 }
 0x199   : > { %444 = vrsqrt.f32 %v349_v34 }
 0x1a3   : > { %v445_v36 = vpop.eup %444 }
 0x1a4   : > { %v351_v37 = vmul.f32 %v445_v36, %v348_v35 }
 0x1a6   : > { %v353_v39 = vmul.f32 %v351_v37, %v343_v28  ;;  %v355_v41 = vmul.f32 %v351_v37, %v327_v20 }
 0x1a8   : > { %v354_v40 = vsub.f32 %v352_v38, %v353_v39 }
 0x1aa   : > { %v356_v42 = vadd.f32 %v355_v41, %v354_v40 }
 0x1ac   : > { %v357_v43 = vmax.f32 %v356_v42, 0.0 }
 0x1ae   : > { %358 = vst.msk [vmem:[%s190_s21] sm:$0x1] %vm333_vm1, %v357_v43 }
 0x1af PF: > { %s14_s15 = sadd.s32 1, %s452_s15  }
 0x1b0   : > { %p11_p4 = scmp.ge.s32.totalorder %s14_s15, 4  }
 0x1b2   :  { %13 = sbr.rel (!%p11_p4) target bundleno = 1 (0x1), region = 66 }

// kernel: _lambda_.37
= control target key start
LH: loop header
LB: loop body
LE: loop exit
PB: predicated region body
PF: predicated region fallthrough
CT: control target
= control target key end

     0   :  { %s376_s15 = smov 0   ;;  %s409_s0 = inlined_call_operand.vmem [shape: bf16[2,1,16], index: 0, kind: input, shape index: {}]   ;;  %s410_s1 = inlined_call_operand.vmem [shape: bf16[16,32], index: 1, kind: input, shape index: {}]   ;;  %s411_s2 = inlined_call_operand.vmem [shape: f32[1,32], index: 2, kind: input, shape index: {}]   ;;  %s412_s3 = inlined_call_operand.vmem [shape: f32[1,32], index: 3, kind: input, shape index: {}]   ;;  %s413_s4 = inlined_call_operand.vmem [shape: f32[2,1,32], index: 4, kind: output, shape index: {}]  }
   0x1 LB: > { %s311_s16 = sadd.s32 4294967295, %s347_s15   ;;  %p315_p0 = scmp.ge.s32.totalorder %s347_s15, 1  ;;  %s347_s15 = sphi %s376_s15, %s14_s15  }
   0x2   : > { %p160_p1 = scmp.lt.s32.totalorder %s347_s15, 3 }
   0x4   : > { %p161_p2 = pnand %p315_p0, %p160_p1 }
   0x5   : > { %v338_v0 = vld [vmem:[%s410_s1] sm:$0xff] (!%p161_p2)   ;;  %v349_v1 = vmov (!%p161_p2), 0.0   ;;  %p182_p3 = scmp.lt.s32.totalorder (!%p161_p2), %s311_s16, 1  ;;  %vm350_vm0 = vmmov (!%p161_p2), 0   ;;  %vm198_vm1 = vcmask (!%p161_p2), 130048   ;;  %vm242_vm2 = vcmask (!%p161_p2), 253952  }
   0x6   : > { %164 = sbr.rel (%p161_p2) target bundleno = 403 (0x193), region = 36  ;;  %322 = vmatprep.subr.bf16.mxu0 (!%p161_p2), %v349_v1  ;;  %324 = vmatprep.mubr.msk.bf16.mxu0 (!%p161_p2), %vm350_vm0, %v349_v1  ;;  %v257_v18 = vld [vmem:[%s411_s2] sm:$0x1] (!%p161_p2) }
   0x7   : > { %323 = vmatpush3.bf16.msra.mxu0 (!%p161_p2), %v338_v0  ;;  %v261_v21 = vld [vmem:[%s412_s3] sm:$0x1] (!%p161_p2) }
   0xd   : > { %s415_s16 = smov (!%p182_p3, %s311_s16), 1 }
   0xe   : > { %s184_s21 = scalar_lea.vmem %s409_s0, %s415_s16  ;;  %s187_s28 = scalar_lea.vmem %s413_s4, %s415_s16 }
   0xf   : > { %v189_v2 = vld [vmem:[%s184_s21] sm:$0x1] }
  0x10   : > { %325 = vmatmul.mubr.msk.bf16.vlgmr.msra.gmra.mrb[0].mxu0 %vm198_vm1, %v189_v2 }
  0xe3   : > { %v236_v3 = vpop.f32.mrb[0].mxu0 }
  0xe4   : > { %v326_v4 = vpop.f32.mrb[1].mxu0  ;;  %v243_v5 = vsel %vm242_vm2, %v236_v3, 0.0  ;;  %v247_v6 = vmul.f32 %v236_v3, %v236_v3 }
  0xe5   : > { %244 = vadd.xlane.f32.xlu0 %v243_v5  ;;  %v239_v7 = vpop.f32.mrb[2].mxu0 }
  0xe6   : > { %v327_v8 = vpop.f32.mrb[3].mxu0  ;;  %v248_v9 = vsel %vm242_vm2, %v247_v6, 0.0 }
  0xe9   : > { %249 = vadd.xlane.f32.xlu0 %v248_v9 }
 0x172   : > { %v245_v10 = vpop.xlane.xlu0 %244 }
 0x173   : > { %v252_v11 = vmul.f32 0.03125, %v245_v10 }
 0x175   : > { %v254_v13 = vmul.f32 %v252_v11, %v252_v11 }
 0x176   : > { %v250_v12 = vpop.xlane.xlu0 %249 }
 0x177   : > { %v253_v14 = vmul.f32 0.03125, %v250_v12 }
 0x179   : > { %v255_v15 = vsub.f32 %v253_v14, %v254_v13 }
 0x17b   : > { %v256_v16 = vmax.f32 %v255_v15, 0.0 }
 0x17d   : > { %v258_v17 = vadd.f32 1e-05, %v256_v16 }
 0x17f   : > { %339 = vrsqrt.f32 %v258_v17 }
 0x189   : > { %v340_v19 = vpop.eup %339 }
 0x18a   : > { %v260_v20 = vmul.f32 %v340_v19, %v257_v18 }
 0x18c   : > { %v262_v22 = vmul.f32 %v260_v20, %v252_v11  ;;  %v264_v24 = vmul.f32 %v260_v20, %v236_v3 }
 0x18e   : > { %v263_v23 = vsub.f32 %v261_v21, %v262_v22 }
 0x190   : > { %v265_v25 = vadd.f32 %v264_v24, %v263_v23 }
 0x192   : > { %266 = vst.msk [vmem:[%s187_s28] sm:$0x1] %vm242_vm2, %v265_v25 }
 0x193 PF: > { %s14_s15 = sadd.s32 1, %s347_s15  }
 0x194   : > { %p11_p4 = scmp.ge.s32.totalorder %s14_s15, 4  }
 0x196   :  { %13 = sbr.rel (!%p11_p4) target bundleno = 1 (0x1), region = 66 }

// kernel: _lambda_.38
= control target key start
LH: loop header
LB: loop body
LE: loop exit
PB: predicated region body
PF: predicated region fallthrough
CT: control target
= control target key end

     0   :  { %s737_s18 = smov 0   ;;  %s825_s0 = inlined_call_operand.vmem [shape: bf16[2,1,288], index: 0, kind: input, shape index: {}]   ;;  %s826_s1 = inlined_call_operand.vmem [shape: bf16[288,32], index: 1, kind: input, shape index: {}]   ;;  %s827_s2 = inlined_call_operand.vmem [shape: f32[1,32], index: 2, kind: input, shape index: {}]   ;;  %s828_s3 = inlined_call_operand.vmem [shape: f32[1,32], index: 3, kind: input, shape index: {}]   ;;  %s829_s4 = inlined_call_operand.vmem [shape: f32[2,1,32], index: 4, kind: input, shape index: {}]   ;;  %s830_s5 = inlined_call_operand.vmem [shape: f32[2,1,32], index: 5, kind: output, shape index: {}]  }
   0x1 LB: > { %s598_s19 = sadd.s32 4294967295, %s701_s18   ;;  %p602_p0 = scmp.ge.s32.totalorder %s701_s18, 1  ;;  %s701_s18 = sphi %s737_s18, %s15_s18  }
   0x2   : > { %p194_p1 = scmp.lt.s32.totalorder %s701_s18, 3 }
   0x4   : > { %p195_p2 = pnand %p602_p0, %p194_p1 }
   0x5   : > { %v671_v0 = vld [vmem:[%s826_s1 + $0x40] sm:$0xff] (!%p195_p2)   ;;  %v703_v2 = vmov (!%p195_p2), 0.0   ;;  %v673_v3 = vld [vmem:[%s826_s1 + $0x48] sm:$0xff] (!%p195_p2)   ;;  %p222_p3 = scmp.lt.s32.totalorder (!%p195_p2), %s598_s19, 1  ;;  %v675_v5 = vld [vmem:[%s826_s1 + $0x50] sm:$0xff] (!%p195_p2)   ;;  %vm704_vm0 = vmmov (!%p195_p2), 0   ;;  %v282_v12 = vlaneseq (!%p195_p2) }
   0x6   : > { %198 = sbr.rel (%p195_p2) target bundleno = 479 (0x1df), region = 40  ;;  %v672_v1 = vld [vmem:[%s826_s1] sm:$0xff] (!%p195_p2)   ;;  %650 = vmatprep.subr.bf16.mxu1 (!%p195_p2), %v703_v2  ;;  %625 = vmatprep.subr.bf16.mxu0 (!%p195_p2), %v671_v0  ;;  %v674_v4 = vld [vmem:[%s826_s1 + $0x8] sm:$0xff] (!%p195_p2)   ;;  %v676_v6 = vld [vmem:[%s826_s1 + $0x10] sm:$0xff] (!%p195_p2)   ;;  %v705_v17 = vmov (!%p195_p2), 1966171168  }
   0x7   : > { %626 = vmatpush3.bf16.msra.mxu0 (!%p195_p2), %v672_v1  ;;  %654 = vmatprep.mubr.msk.bf16.mxu1 (!%p195_p2), %vm704_vm0, %v703_v2  ;;  %v677_v7 = vld [vmem:[%s826_s1 + $0x58] sm:$0xff] (!%p195_p2)   ;;  %v679_v9 = vld [vmem:[%s826_s1 + $0x60] sm:$0xff] (!%p195_p2)   ;;  %v681_v13 = vld [vmem:[%s826_s1 + $0x68] sm:$0xff] (!%p195_p2)   ;;  %v280_v18 = vunpack.c.l.s4 (!%p195_p2), %v705_v17  ;;  %v283_v19 = vshrl.u32 (!%p195_p2), %v282_v12, 7  ;;  %vm404_vm1 = vcmask (!%p195_p2), 261120   ;;  %vm488_vm2 = vcmask (!%p195_p2), 253952  }
   0x8   : > { %627 = vmatprep.subr.bf16.mxu0 (!%p195_p2), %v673_v3  ;;  %v678_v8 = vld [vmem:[%s826_s1 + $0x18] sm:$0xff] (!%p195_p2)   ;;  %v685_v10 = vld [vmem:[%s826_s1 + $0x80] sm:$0xff] (!%p195_p2)   ;;  %v688_v14 = vld [vmem:[%s826_s1 + $0x88] sm:$0xff] (!%p195_p2)   ;;  %v706_v17 = vmov (!%p195_p2), -1.0  }
   0x9   : > { %v680_v11 = vld [vmem:[%s826_s1 + $0x20] sm:$0xff] (!%p195_p2)   ;;  %651 = vmatpush3.bf16.msra.mxu1 (!%p195_p2), %v685_v10  ;;  %v682_v16 = vld [vmem:[%s826_s1 + $0x28] sm:$0xff] (!%p195_p2)   ;;  %v683_v20 = vld [vmem:[%s826_s1 + $0x70] sm:$0xff] (!%p195_p2)   ;;  %v281_v22 = vunpack.c.0.s8 (!%p195_p2), %v280_v18 }
   0xa   : > { %652 = vmatprep.subr.bf16.mxu1 (!%p195_p2), %v703_v2  ;;  %v684_v23 = vld [vmem:[%s826_s1 + $0x30] sm:$0xff] (!%p195_p2)   ;;  %v686_v25 = vld [vmem:[%s826_s1 + $0x78] sm:$0xff] (!%p195_p2)   ;;  %v503_v51 = vld [vmem:[%s827_s2] sm:$0x1] (!%p195_p2) }
   0xb   : > { %628 = vmatpush3.bf16.msra.mxu0 (!%p195_p2), %v674_v4  ;;  %v284_v24 = vsub.s32 (!%p195_p2), %v281_v22, %v283_v19  ;;  %v687_v28 = vld [vmem:[%s826_s1 + $0x38] sm:$0xff] (!%p195_p2)   ;;  %v507_v54 = vld [vmem:[%s828_s3] sm:$0x1] (!%p195_p2) }
   0xc   : > { %629 = vmatprep.subr.bf16.mxu0 (!%p195_p2), %v675_v5 }
   0xd   : > { %s832_s19 = smov (!%p222_p3, %s598_s19), 1  ;;  %653 = vmatpush3.bf16.msra.mxu1 %v688_v14 }
   0xe   : > { %s658_s11 = smul.u32 3, %s832_s19  ;;  %s228_s20 = scalar_lea.vmem %s829_s4, %s832_s19 }
   0xf   : > { %630 = vmatpush3.bf16.msra.mxu0 %v676_v6  ;;  %v512_v58 = vld [vmem:[%s228_s20] sm:$0x1]  ;;  %s231_s23 = scalar_lea.vmem %s830_s5, %s832_s19 }
  0x10   : > { %631 = vmatprep.subr.bf16.mxu0 %v677_v7  ;;  %s225_s22 = scalar_lea.vmem %s825_s0, %s658_s11 }
  0x11   : > { %v603_v15 = vld.sshfl [vmem:[%s225_s22] sm:$0x13 pattern:$0x75316420] }
  0x12   : > { %v278_v21 = vcombine.high %v603_v15, %v603_v15  ;;  %v285_v27 = vrot.slane %v603_v15, %v284_v24 }
  0x13   : > { %632 = vmatpush3.bf16.msra.mxu0 %v678_v8 }
  0x14   : > { %633 = vmatprep.subr.bf16.mxu0 %v679_v9  ;;  %v292_v26 = vrot.slane %v278_v21, %v284_v24  ;;  %v293_v29 = vcombine.high %v285_v27, %v285_v27 }
  0x16   : > { %440 = vmatprep.mubr.bf16.mxu0 %v292_v26  ;;  %655 = vmatmul.mubr.msk.bf16.vlgmr.msra.gmra.mrb[0].mxu1 %vm404_vm1, %v293_v29 }
  0x17   : > { %634 = vmatpush3.bf16.msra.mxu0 %v680_v11 }
  0x18   : > { %635 = vmatprep.subr.bf16.mxu0 %v681_v13 }
  0x1b   : > { %636 = vmatpush3.bf16.msra.mxu0 %v682_v16 }
  0x1c   : > { %637 = vmatprep.subr.bf16.mxu0 %v683_v20 }
  0x1f   : > { %638 = vmatpush3.bf16.msra.mxu0 %v684_v23 }
  0x20   : > { %639 = vmatprep.subr.bf16.mxu0 %v686_v25 }
  0x23   : > { %640 = vmatpush3.bf16.msra.mxu0 %v687_v28 }
  0x26   : > { %441 = vmatmul.mubr.bf16.vlgmr.msra.gmra.mrb[0].mxu0 %v285_v27 }
  0xe9   : > { %v482_v30 = vpop.f32.mrb[0].mxu1 }
  0xea   : > { %v656_v31 = vpop.f32.mrb[1].mxu1 }
  0xeb   : > { %v485_v32 = vpop.f32.mrb[2].mxu1 }
  0xec   : > { %v657_v33 = vpop.f32.mrb[3].mxu1 }
  0xf9   : > { %v641_v34 = vpop.f32.mrb[0].mxu0 }
  0xfa   : > { %v642_v35 = vpop.f32.mrb[1].mxu0 }
  0xfb   : > { %v643_v36 = vadd.f32 %v642_v35, %v641_v34  ;;  %v644_v37 = vpop.f32.mrb[2].mxu0 }
  0xfc   : > { %v645_v38 = vpop.f32.mrb[3].mxu0 }
  0xfd   : > { %v483_v39 = vadd.f32 %v643_v36, %v482_v30 }
  0xff   : > { %v489_v40 = vsel %vm488_vm2, %v483_v39, 0.0  ;;  %v493_v41 = vmul.f32 %v483_v39, %v483_v39 }
 0x100   : > { %490 = vadd.xlane.f32.xlu0 %v489_v40 }
 0x101   : > { %v494_v42 = vsel %vm488_vm2, %v493_v41, 0.0 }
 0x104   : > { %495 = vadd.xlane.f32.xlu0 %v494_v42 }
 0x18d   : > { %v491_v43 = vpop.xlane.xlu0 %490 }
 0x18e   : > { %v498_v44 = vmul.f32 0.03125, %v491_v43 }
 0x190   : > { %v500_v46 = vmul.f32 %v498_v44, %v498_v44 }
 0x191   : > { %v496_v45 = vpop.xlane.xlu0 %495 }
 0x192   : > { %v499_v47 = vmul.f32 0.03125, %v496_v45 }
 0x194   : > { %v501_v48 = vsub.f32 %v499_v47, %v500_v46 }
 0x196   : > { %v502_v49 = vmax.f32 %v501_v48, 0.0 }
 0x198   : > { %v504_v50 = vadd.f32 1e-05, %v502_v49 }
 0x19a   : > { %689 = vrsqrt.f32 %v504_v50 }
 0x1a4   : > { %v690_v52 = vpop.eup %689 }
 0x1a5   : > { %v506_v53 = vmul.f32 %v690_v52, %v503_v51 }
 0x1a7   : > { %v508_v55 = vmul.f32 %v506_v53, %v498_v44  ;;  %v510_v57 = vmul.f32 %v506_v53, %v483_v39 }
 0x1a9   : > { %v509_v56 = vsub.f32 %v507_v54, %v508_v55 }
 0x1ab   : > { %v511_v59 = vadd.f32 %v510_v57, %v509_v56 }
 0x1ad   : > { %v513_v60 = vadd.f32 %v512_v58, %v511_v59 }
 0x1af   : > { %v515_v61 = vmul.f32 0.70710677, %v513_v60  ;;  %v514_v20 = vmul.f32 0.5, %v513_v60 }
 0x1b1   : > { %v518_v62 = vand.u32 2147483647, %v515_v61  ;;  %vm516_vm3 = vcmp.ge.f32.partialorder %v515_v61, 0.0 }
 0x1b2   : > { %v517_v18 = vsel %vm516_vm3, 1.0, %v706_v17 }
 0x1b3   : > { %v519_v63 = vmul.f32 0.3275911, %v518_v62  ;;  %v532_v1 = vsub.f32 0.0, %v518_v62 }
 0x1b5   : > { %v520_v0 = vadd.f32 1.0, %v519_v63  ;;  %v533_v3 = vmul.f32 %v532_v1, %v518_v62 }
 0x1b7   : > { %691 = vrcp.f32 %v520_v0  ;;  %v534_v6 = vmul.f32 1.442695, %v533_v3 }
 0x1b9   : > { %693 = vpow2.f32 %v534_v6 }
 0x1c1   : > { %v692_v2 = vpop.eup %691 }
 0x1c2   : > { %v523_v4 = vmul.f32 1.0614054, %v692_v2 }
 0x1c3   : > { %v694_v14 = vpop.eup %693 }
 0x1c4   : > { %v524_v5 = vadd.f32 -1.4531521, %v523_v4 }
 0x1c6   : > { %v525_v7 = vmul.f32 %v692_v2, %v524_v5 }
 0x1c8   : > { %v526_v8 = vadd.f32 1.4214138, %v525_v7 }
 0x1ca   : > { %v527_v9 = vmul.f32 %v692_v2, %v526_v8 }
 0x1cc   : > { %v528_v10 = vadd.f32 -0.28449672, %v527_v9 }
 0x1ce   : > { %v529_v11 = vmul.f32 %v692_v2, %v528_v10 }
 0x1d0   : > { %v530_v12 = vadd.f32 0.2548296, %v529_v11 }
 0x1d2   : > { %v531_v13 = vmul.f32 %v692_v2, %v530_v12 }
 0x1d4   : > { %v536_v15 = vmul.f32 %v694_v14, %v531_v13 }
 0x1d6   : > { %v537_v16 = vsub.f32 1.0, %v536_v15 }
 0x1d8   : > { %v538_v19 = vmul.f32 %v537_v16, %v517_v18 }
 0x1da   : > { %v539_v21 = vadd.f32 1.0, %v538_v19 }
 0x1dc   : > { %v540_v22 = vmul.f32 %v539_v21, %v514_v20 }
 0x1de   : > { %541 = vst.msk [vmem:[%s231_s23] sm:$0x1] %vm488_vm2, %v540_v22 }
 0x1df PF: > { %s15_s18 = sadd.s32 1, %s701_s18  }
 0x1e0   : > { %p12_p4 = scmp.ge.s32.totalorder %s15_s18, 4  }
 0x1e2   :  { %14 = sbr.rel (!%p12_p4) target bundleno = 1 (0x1), region = 73 }

// kernel: _lambda_.39
= control target key start
LH: loop header
LB: loop body
LE: loop exit
PB: predicated region body
PF: predicated region fallthrough
CT: control target
= control target key end

     0   :  { %s648_s15 = smov 0   ;;  %s732_s0 = inlined_call_operand.vmem [shape: bf16[2,1,288], index: 0, kind: input, shape index: {}]   ;;  %s733_s1 = inlined_call_operand.vmem [shape: bf16[288,32], index: 1, kind: input, shape index: {}]   ;;  %s734_s2 = inlined_call_operand.vmem [shape: f32[1,32], index: 2, kind: input, shape index: {}]   ;;  %s735_s3 = inlined_call_operand.vmem [shape: f32[1,32], index: 3, kind: input, shape index: {}]   ;;  %s736_s4 = inlined_call_operand.vmem [shape: f32[2,1,32], index: 4, kind: output, shape index: {}]  }
   0x1 LB: > { %s520_s16 = sadd.s32 4294967295, %s618_s15   ;;  %p524_p0 = scmp.ge.s32.totalorder %s618_s15, 1  ;;  %s618_s15 = sphi %s648_s15, %s14_s15  }
   0x2   : > { %p161_p1 = scmp.lt.s32.totalorder %s618_s15, 3 }
   0x4   : > { %p162_p2 = pnand %p524_p0, %p161_p1 }
   0x5   : > { %v592_v0 = vld [vmem:[%s733_s1 + $0x40] sm:$0xff] (!%p162_p2)   ;;  %v620_v2 = vmov (!%p162_p2), 0.0   ;;  %v594_v3 = vld [vmem:[%s733_s1 + $0x48] sm:$0xff] (!%p162_p2)   ;;  %p184_p3 = scmp.lt.s32.totalorder (!%p162_p2), %s520_s16, 1  ;;  %v596_v5 = vld [vmem:[%s733_s1 + $0x50] sm:$0xff] (!%p162_p2)   ;;  %vm621_vm0 = vmmov (!%p162_p2), 0   ;;  %v241_v12 = vlaneseq (!%p162_p2) }
   0x6   : > { %165 = sbr.rel (%p162_p2) target bundleno = 432 (0x1b0), region = 36  ;;  %v593_v1 = vld [vmem:[%s733_s1] sm:$0xff] (!%p162_p2)   ;;  %572 = vmatprep.subr.bf16.mxu1 (!%p162_p2), %v620_v2  ;;  %547 = vmatprep.subr.bf16.mxu0 (!%p162_p2), %v592_v0  ;;  %v595_v4 = vld [vmem:[%s733_s1 + $0x8] sm:$0xff] (!%p162_p2)   ;;  %v597_v6 = vld [vmem:[%s733_s1 + $0x10] sm:$0xff] (!%p162_p2)   ;;  %v622_v17 = vmov (!%p162_p2), 1966171168  }
   0x7   : > { %548 = vmatpush3.bf16.msra.mxu0 (!%p162_p2), %v593_v1  ;;  %576 = vmatprep.mubr.msk.bf16.mxu1 (!%p162_p2), %vm621_vm0, %v620_v2  ;;  %v598_v7 = vld [vmem:[%s733_s1 + $0x58] sm:$0xff] (!%p162_p2)   ;;  %v600_v9 = vld [vmem:[%s733_s1 + $0x60] sm:$0xff] (!%p162_p2)   ;;  %v602_v13 = vld [vmem:[%s733_s1 + $0x68] sm:$0xff] (!%p162_p2)   ;;  %v239_v18 = vunpack.c.l.s4 (!%p162_p2), %v622_v17  ;;  %v242_v19 = vshrl.u32 (!%p162_p2), %v241_v12, 7  ;;  %vm363_vm1 = vcmask (!%p162_p2), 261120   ;;  %vm447_vm2 = vcmask (!%p162_p2), 253952  }
   0x8   : > { %549 = vmatprep.subr.bf16.mxu0 (!%p162_p2), %v594_v3  ;;  %v599_v8 = vld [vmem:[%s733_s1 + $0x18] sm:$0xff] (!%p162_p2)   ;;  %v606_v10 = vld [vmem:[%s733_s1 + $0x80] sm:$0xff] (!%p162_p2)   ;;  %v609_v14 = vld [vmem:[%s733_s1 + $0x88] sm:$0xff] (!%p162_p2)  }
   0x9   : > { %v601_v11 = vld [vmem:[%s733_s1 + $0x20] sm:$0xff] (!%p162_p2)   ;;  %573 = vmatpush3.bf16.msra.mxu1 (!%p162_p2), %v606_v10  ;;  %v603_v16 = vld [vmem:[%s733_s1 + $0x28] sm:$0xff] (!%p162_p2)   ;;  %v604_v20 = vld [vmem:[%s733_s1 + $0x70] sm:$0xff] (!%p162_p2)   ;;  %v240_v22 = vunpack.c.0.s8 (!%p162_p2), %v239_v18 }
   0xa   : > { %574 = vmatprep.subr.bf16.mxu1 (!%p162_p2), %v620_v2  ;;  %v605_v23 = vld [vmem:[%s733_s1 + $0x30] sm:$0xff] (!%p162_p2)   ;;  %v607_v25 = vld [vmem:[%s733_s1 + $0x78] sm:$0xff] (!%p162_p2)   ;;  %v462_v51 = vld [vmem:[%s734_s2] sm:$0x1] (!%p162_p2) }
   0xb   : > { %550 = vmatpush3.bf16.msra.mxu0 (!%p162_p2), %v595_v4  ;;  %v243_v24 = vsub.s32 (!%p162_p2), %v240_v22, %v242_v19  ;;  %v608_v28 = vld [vmem:[%s733_s1 + $0x38] sm:$0xff] (!%p162_p2)   ;;  %v466_v54 = vld [vmem:[%s735_s3] sm:$0x1] (!%p162_p2) }
   0xc   : > { %551 = vmatprep.subr.bf16.mxu0 (!%p162_p2), %v596_v5 }
   0xd   : > { %s738_s16 = smov (!%p184_p3, %s520_s16), 1  ;;  %575 = vmatpush3.bf16.msra.mxu1 %v609_v14 }
   0xe   : > { %s580_s7 = smul.u32 3, %s738_s16  ;;  %s190_s13 = scalar_lea.vmem %s736_s4, %s738_s16 }
   0xf   : > { %552 = vmatpush3.bf16.msra.mxu0 %v597_v6 }
  0x10   : > { %553 = vmatprep.subr.bf16.mxu0 %v598_v7  ;;  %s187_s18 = scalar_lea.vmem %s732_s0, %s580_s7 }
  0x11   : > { %v525_v15 = vld.sshfl [vmem:[%s187_s18] sm:$0x13 pattern:$0x75316420] }
  0x12   : > { %v237_v21 = vcombine.high %v525_v15, %v525_v15  ;;  %v244_v27 = vrot.slane %v525_v15, %v243_v24 }
  0x13   : > { %554 = vmatpush3.bf16.msra.mxu0 %v599_v8 }
  0x14   : > { %555 = vmatprep.subr.bf16.mxu0 %v600_v9  ;;  %v251_v26 = vrot.slane %v237_v21, %v243_v24  ;;  %v252_v29 = vcombine.high %v244_v27, %v244_v27 }
  0x16   : > { %399 = vmatprep.mubr.bf16.mxu0 %v251_v26  ;;  %577 = vmatmul.mubr.msk.bf16.vlgmr.msra.gmra.mrb[0].mxu1 %vm363_vm1, %v252_v29 }
  0x17   : > { %556 = vmatpush3.bf16.msra.mxu0 %v601_v11 }
  0x18   : > { %557 = vmatprep.subr.bf16.mxu0 %v602_v13 }
  0x1b   : > { %558 = vmatpush3.bf16.msra.mxu0 %v603_v16 }
  0x1c   : > { %559 = vmatprep.subr.bf16.mxu0 %v604_v20 }
  0x1f   : > { %560 = vmatpush3.bf16.msra.mxu0 %v605_v23 }
  0x20   : > { %561 = vmatprep.subr.bf16.mxu0 %v607_v25 }
  0x23   : > { %562 = vmatpush3.bf16.msra.mxu0 %v608_v28 }
  0x26   : > { %400 = vmatmul.mubr.bf16.vlgmr.msra.gmra.mrb[0].mxu0 %v244_v27 }
  0xe9   : > { %v441_v30 = vpop.f32.mrb[0].mxu1 }
  0xea   : > { %v578_v31 = vpop.f32.mrb[1].mxu1 }
  0xeb   : > { %v444_v32 = vpop.f32.mrb[2].mxu1 }
  0xec   : > { %v579_v33 = vpop.f32.mrb[3].mxu1 }
  0xf9   : > { %v563_v34 = vpop.f32.mrb[0].mxu0 }
  0xfa   : > { %v564_v35 = vpop.f32.mrb[1].mxu0 }
  0xfb   : > { %v565_v36 = vadd.f32 %v564_v35, %v563_v34  ;;  %v566_v37 = vpop.f32.mrb[2].mxu0 }
  0xfc   : > { %v567_v38 = vpop.f32.mrb[3].mxu0 }
  0xfd   : > { %v442_v39 = vadd.f32 %v565_v36, %v441_v30 }
  0xff   : > { %v448_v40 = vsel %vm447_vm2, %v442_v39, 0.0  ;;  %v452_v41 = vmul.f32 %v442_v39, %v442_v39 }
 0x100   : > { %449 = vadd.xlane.f32.xlu0 %v448_v40 }
 0x101   : > { %v453_v42 = vsel %vm447_vm2, %v452_v41, 0.0 }
 0x104   : > { %454 = vadd.xlane.f32.xlu0 %v453_v42 }
 0x18d   : > { %v450_v43 = vpop.xlane.xlu0 %449 }
 0x18e   : > { %v457_v44 = vmul.f32 0.03125, %v450_v43 }
 0x190   : > { %v459_v46 = vmul.f32 %v457_v44, %v457_v44 }
 0x191   : > { %v455_v45 = vpop.xlane.xlu0 %454 }
 0x192   : > { %v458_v47 = vmul.f32 0.03125, %v455_v45 }
 0x194   : > { %v460_v48 = vsub.f32 %v458_v47, %v459_v46 }
 0x196   : > { %v461_v49 = vmax.f32 %v460_v48, 0.0 }
 0x198   : > { %v463_v50 = vadd.f32 1e-05, %v461_v49 }
 0x19a   : > { %610 = vrsqrt.f32 %v463_v50 }
 0x1a4   : > { %v611_v52 = vpop.eup %610 }
 0x1a5   : > { %v465_v53 = vmul.f32 %v611_v52, %v462_v51 }
 0x1a7   : > { %v467_v55 = vmul.f32 %v465_v53, %v457_v44  ;;  %v469_v57 = vmul.f32 %v465_v53, %v442_v39 }
 0x1a9   : > { %v468_v56 = vsub.f32 %v466_v54, %v467_v55 }
 0x1ab   : > { %v470_v58 = vadd.f32 %v469_v57, %v468_v56 }
 0x1ad   : > { %v471_v59 = vmax.f32 %v470_v58, 0.0 }
 0x1af   : > { %472 = vst.msk [vmem:[%s190_s13] sm:$0x1] %vm447_vm2, %v471_v59 }
 0x1b0 PF: > { %s14_s15 = sadd.s32 1, %s618_s15  }
 0x1b1   : > { %p11_p4 = scmp.ge.s32.totalorder %s14_s15, 4  }
 0x1b3   :  { %13 = sbr.rel (!%p11_p4) target bundleno = 1 (0x1), region = 66 }

// kernel: _lambda_.41
= control target key start
LH: loop header
LB: loop body
LE: loop exit
PB: predicated region body
PF: predicated region fallthrough
CT: control target
= control target key end

     0   :  { %s729_s0 = inlined_call_operand.vmem [shape: f32[2,1,32], index: 0, kind: input, shape index: {}]   ;;  %s730_s1 = inlined_call_operand.vmem [shape: f32[8,1], index: 1, kind: input, shape index: {}]   ;;  %s731_s2 = inlined_call_operand.vmem [shape: f32[1,16], index: 2, kind: input, shape index: {}]   ;;  %s732_s3 = inlined_call_operand.vmem [shape: f32[1,16], index: 3, kind: input, shape index: {}, may-alias: {3,5,7}]   ;;  %s733_s4 = inlined_call_operand.vmem [shape: f32[16,16], index: 4, kind: input, shape index: {}]   ;;  %s734_s5 = inlined_call_operand.vmem [shape: f32[1,16], index: 5, kind: input, shape index: {}, may-alias: {3,5,7}]   ;;  %s735_s6 = inlined_call_operand.vmem [shape: f32[16,16], index: 6, kind: input, shape index: {}]   ;;  %s736_s7 = inlined_call_operand.vmem [shape: f32[1,16], index: 7, kind: input, shape index: {}, may-alias: {3,5,7}]   ;;  %s737_s8 = inlined_call_operand.vmem [shape: f32[16,32], index: 8, kind: input, shape index: {}]   ;;  %s738_s9 = inlined_call_operand.vmem [shape: f32[1,32], index: 9, kind: input, shape index: {}]   ;;  %s739_s10 = inlined_call_operand.<no memory space> [shape: f32[1,1], index: 10, kind: input, shape index: {}]   ;;  %s740_s11 = inlined_call_operand.hbm [shape: f32[2,8], index: 11, kind: output, shape index: {}]  }
   0x1   :  { %v16_v0 = vstv %s739_s10 }
   0x2   :  { %17 = vst [vmem:[#allocation2] sm:$0x1] %v16_v0 }
   0x3   :  { %v46_v1 = vld [vmem:[%s731_s2] sm:$0x1]  ;;  %vm58_vm0 = vcmask 1040384   ;;  %v598_v3 = vmov 0.0   ;;  %vm599_vm1 = vmmov 0   ;;  %vm54_vm2 = vcmask 7168  }
   0x4   :  { %v45_v2 = vld [vmem:[%s730_s1] sm:$0xff]  ;;  %527 = vmatprep.subr.mxu0 %v598_v3  ;;  %529 = vmatprep.mubr.msk.f32.mxu0 %vm599_vm1, %v598_v3 }
   0x5   :  { %18 = vsyncpa [#allocation4], 0  ;;  %528 = vmatpush3.msk.msra.mxu0 %vm58_vm0, %v46_v1  ;;  %536 = vmatprep.mubr.msk.f32.mxu1 %vm599_vm1, %v598_v3  ;;  %v133_v4 = vld [vmem:[%s733_s4] sm:$0xff]  ;;  %v134_v5 = vld [vmem:[%s733_s4 + $0x8] sm:$0xff]  ;;  %v600_v7 = vmov 0.0|0.0   ;;  %vm142_vm3 = vcmask 130048   ;;  %v399_v33 = vlaneseq }
   0x6   :  { %530 = vmatmul.mubr.msk.f32.vlgmr.msra.gmra.mrb[0].mxu0 %vm54_vm2, %v45_v2  ;;  %v559_v6 = vpack.c.bf16 %v134_v5, %v133_v4  ;;  %558 = vmatprep.subr.bf16.mxu1 %v600_v7  ;;  %v502_v8 = vld [vmem:[%s732_s3] ss:$0 sm:$0xff]  ;;  %v218_v14 = vld [vmem:[%s735_s6 + $0x8] sm:$0xff]  ;;  %v601_v30 = vmov 0   ;;  %v602_v31 = vmov 1966171168  }
   0x7   :  { %543 = vmatprep.mubr.msk.f32.mxu0 %vm599_vm1, %v598_v3  ;;  %561 = vmatprep.subr.bf16.mxu0 %v600_v7  ;;  %v217_v13 = vld [vmem:[%s735_s6] sm:$0xff]  ;;  %v301_v22 = vld [vmem:[%s737_s8 + $0x8] sm:$0xff]  ;;  %v397_v32 = vunpack.c.l.s4 %v602_v31  ;;  %v400_v35 = vshrl.u32 %v399_v33, 7  ;;  %vm410_vm4 = vcmask 261120   ;;  %s603_s19 = smov [#allocation3]   ;;  %vm486_vm5 = vcmask 58368  }
   0x8   :  { %560 = vmatpush3.bf16.msra.mxu1 %v559_v6  ;;  %v562_v15 = vpack.c.bf16 %v218_v14, %v217_v13  ;;  %v505_v16 = vld [vmem:[%s734_s5] ss:$0 sm:$0xff]  ;;  %573 = vset.pattern.permute.xlu0 %v601_v30  ;;  %v42_v37 = vld [vmem:[%s729_s0 + $0x1] sm:$0x1]  ;;  %s494_s20 = sshll.u32 %s603_s19, 4  ;;  %s495_s20 = int_to_ptr.vmem [resolvable:$true] %s494_s20 }
   0x9   :  { %564 = vmatprep.subr.bf16.mxu1 %v600_v7  ;;  %v300_v21 = vld [vmem:[%s737_s8] sm:$0xff]  ;;  %v398_v34 = vunpack.c.0.s8 %v397_v32  ;;  %p579_p1 = scmp.lt.s32.totalorder %s495_s20, %s495_s20 }
   0xa   :  { %563 = vmatpush3.bf16.msra.mxu0 %v562_v15  ;;  %v565_v23 = vpack.c.bf16 %v301_v22, %v300_v21  ;;  %v507_v24 = vld [vmem:[%s736_s7] ss:$0 sm:$0xff] }
   0xb   :  { %553 = vmatprep.subr.mxu0 %v598_v3  ;;  %v511_v29 = vld [vmem:[#allocation2] ss:$0 sm:$0xff]  ;;  %v401_v39 = vsub.s32 %v398_v34, %v400_v35 }
   0xc   :  { %390 = vperm.xlu0 %573, %v511_v29   ;;  %v41_v36 = vld [vmem:[%s729_s0] sm:$0x1]  ;;  %s574_s0 = scalar_lea.vmem %s495_s20, 32 }
   0xd   :  { %v395_v38 = vcombine.low %v41_v36, %v42_v37  ;;  %v509_v40 = vld [vmem:[%s738_s9] ss:$0 sm:$0xff]  ;;  %p575_p0 = scmp.ne.s32.totalorder %s495_s20, %s574_s0  ;;  %p580_p2 = scmp.lt.s32.totalorder %s574_s0, %s574_s0 }
   0xf   :  { %v402_v42 = vrot.slane %v395_v38, %v401_v39  ;;  %p581_p3 = por %p580_p2, %p579_p1 }
  0x11   :  { %v409_v46 = vrot.slane %v402_v42, %v401_v39  ;;  %p582_p4 = pnand %p581_p3, %p575_p0 }
  0x8b   :  { %v391_v47 = vpop.permute.xlu0 %390 }
  0xd9   :  { %v128_v9 = vpop.f32.mrb[0].mxu0 }
  0xda   :  { %v129_v10 = vadd.f32 %v502_v8, %v128_v9  ;;  %v531_v11 = vpop.f32.mrb[1].mxu0 }
  0xdc   :  { %v132_v12 = vmax.f32 %v129_v10, 0.0 }
  0xde   :  { %537 = vmatmul.mubr.msk.f32.vlgmr.msra.gmra.mrb[0].mxu1 %vm142_vm3, %v132_v12 }
  0xdf   :  { %550 = vmatprep.mubr.msk.f32.mxu1 %vm599_vm1, %v598_v3  ;;  %566 = vmatpush3.bf16.msra.mxu1 %v565_v23 }
 0x1b1   :  { %v212_v17 = vpop.f32.mrb[0].mxu1 }
 0x1b2   :  { %v213_v18 = vadd.f32 %v505_v16, %v212_v17  ;;  %v538_v19 = vpop.f32.mrb[1].mxu1 }
 0x1b4   :  { %v216_v20 = vmax.f32 %v213_v18, 0.0 }
 0x1b6   :  { %544 = vmatmul.mubr.msk.f32.vlgmr.msra.gmra.mrb[2].mxu0 %vm142_vm3, %v216_v20 }
 0x1b7   :  { %555 = vmatprep.mubr.msk.f32.mxu0 %vm599_vm1, %v598_v3 }
 0x289   :  { %v295_v25 = vpop.f32.mrb[2].mxu0 }
 0x28a   :  { %v296_v26 = vadd.f32 %v507_v24, %v295_v25  ;;  %v545_v27 = vpop.f32.mrb[3].mxu0 }
 0x28c   :  { %v299_v28 = vmax.f32 %v296_v26, 0.0 }
 0x28e   :  { %551 = vmatmul.mubr.msk.f32.vlgmr.msra.gmra.mrb[2].mxu1 %vm142_vm3, %v299_v28 }
 0x361   :  { %v378_v41 = vpop.f32.mrb[2].mxu1 }
 0x362   :  { %v379_v43 = vadd.f32 %v509_v40, %v378_v41  ;;  %v552_v44 = vpop.f32.mrb[3].mxu1 }
 0x364   :  { %v382_v45 = vmax.f32 %v379_v43, 0.0 }
 0x366   :  { %554 = vmatpush3.xpose.msk.msra.mxu0 %vm410_vm4, %v382_v45 }
 0x369   :  { %556 = vmatmul.mubr.msk.f32.vlgmr.msra.gmra.mrb[4].mxu0 %vm410_vm4, %v409_v46 }
 0x43c   :  { %v482_v48 = vpop.f32.mrb[4].mxu0 }
 0x43d   :  { %v483_v49 = vadd.f32 %v482_v48, %v391_v47  ;;  %v557_v50 = vpop.f32.mrb[5].mxu0 }
 0x43f   :  { %487 = vst.msk [vmem:[#allocation3] sm:$0x3] %vm486_vm5, %v483_v49 }
 0x440   :  { %585 = shalt.err (!%p582_p4)
}
 0x441   :  { %s586_s22 = scalar_lea.hbm %s740_s11, 32 }
 0x442   :  { %p587_p5 = scmp.ne.s32.totalorder %s740_s11, %s586_s22  ;;  %p590_p6 = scmp.lt.u32.totalorder %s586_s22, %s740_s11 }
 0x444   :  { %p592_p7 = pnand %p590_p6, %p587_p5 }
 0x446   :  { %595 = shalt.err (!%p592_p7)
}
 0x447   :  { %497 = dma.vmem_to_hbm [thread:$0]  %s495_s20, 32, %s740_s11, [#allocation4]  }
 0x448   :  { %596 = dma.done.wait [#allocation4], 32  }
 0x449   :  { %597 = vsyncadd [#allocation4], 4294967264 }
 0x44a   :  { %501 = vsyncpa [#allocation4], 1 }

</bundles_post_ra>
